<compile_context>
chip_gen: v5e
topology: v5e:2x2
jax: 0.10.0
libtpu: 0.0.40
codegen_flags: <defaults>
</compile_context>

<pallas_src>
import jax
import jax.numpy as jnp
from jax import lax
from jax.experimental import pallas as pl
from jax.experimental.pallas import tpu as pltpu

EPS = 1e-5          # torch.nn.InstanceNorm2d default
NEG_SLOPE = 0.01    # torch.nn.LeakyReLU default

# Set to jnp.bfloat16 on v6e/v7x for higher MXU throughput (accumulation stays
# f32 via preferred_element_type); kept f32 here to match the f32 reference
# within 1e-4.
_MXU_OPERAND_DTYPE = jnp.float32


def _instance_norm_lrelu(acc, hw):
    """InstanceNorm2d(affine=False) + LeakyReLU on an (H*W, C) f32 tile.

    Single-pass statistics: var = E[x^2] - mean^2 (biased, matching torch).
    """
    inv_hw = 1.0 / float(hw)
    mean = jnp.sum(acc, axis=0, keepdims=True) * inv_hw
    mean_sq = jnp.sum(acc * acc, axis=0, keepdims=True) * inv_hw
    var = mean_sq - mean * mean
    y = (acc - mean) * lax.rsqrt(var + EPS)
    return jnp.where(y >= 0, y, NEG_SLOPE * y)


def _fused_conv_block_kernel(x_ref, w1_ref, w2_ref, o_ref,
                             xpad1_ref, col1_ref, xpad2_ref, col2_ref):
    """Both ConvBlock layers for one batch sample, entirely in VMEM.

    x_ref:  (1, H, W, Cin)        unpadded input sample (NHWC)
    w1_ref: (9*Cin,  Cmid)        layer-1 weights, (kh, kw, cin) flattened
    w2_ref: (9*Cmid, Cout)        layer-2 weights
    o_ref:  (1, H*W, Cout)        output sample
    xpad*_ref: padded activation scratch (halo built in VMEM)
    col*_ref:  im2col scratch for the fat matmul
    """
    H, W, Cin = x_ref.shape[1], x_ref.shape[2], x_ref.shape[3]
    Cmid = w1_ref.shape[1]
    Cout = w2_ref.shape[1]
    HW = H * W

    # ---------------- layer 1 ----------------
    # In-kernel halo padding (padding=1): zero scratch, write interior.
    xpad1_ref[...] = jnp.zeros_like(xpad1_ref)
    xpad1_ref[pl.ds(1, H), pl.ds(1, W), :] = x_ref[0]

    # im2col: col1[:, (kh*3+kw)*Cin + c] = xpad1[h+kh, w+kw, c]
    for kh in range(3):
        for kw in range(3):
            t = kh * 3 + kw
            col1_ref[:, pl.ds(t * Cin, Cin)] = (
                xpad1_ref[pl.ds(kh, H), pl.ds(kw, W), :].reshape(HW, Cin))

    # One fat MXU matmul: (H*W, 9*Cin) x (9*Cin, Cmid), f32 accumulation.
    acc1 = jnp.dot(col1_ref[...].astype(_MXU_OPERAND_DTYPE),
                   w1_ref[...].astype(_MXU_OPERAND_DTYPE),
                   preferred_element_type=jnp.float32)
    # (conv bias omitted: cancels exactly under InstanceNorm(affine=False))
    y1 = _instance_norm_lrelu(acc1, HW)

    # ---------------- layer 2 (no HBM round-trip) ----------------
    xpad2_ref[...] = jnp.zeros_like(xpad2_ref)
    xpad2_ref[pl.ds(1, H), pl.ds(1, W), :] = y1.reshape(H, W, Cmid)

    for kh in range(3):
        for kw in range(3):
            t = kh * 3 + kw
            col2_ref[:, pl.ds(t * Cmid, Cmid)] = (
                xpad2_ref[pl.ds(kh, H), pl.ds(kw, W), :].reshape(HW, Cmid))

    acc2 = jnp.dot(col2_ref[...].astype(_MXU_OPERAND_DTYPE),
                   w2_ref[...].astype(_MXU_OPERAND_DTYPE),
                   preferred_element_type=jnp.float32)
    y2 = _instance_norm_lrelu(acc2, HW)

    o_ref[0] = y2.astype(o_ref.dtype)


def _vmem_limit_bytes(H, W, Cin, Cmid, Cout):
    """Rough double-buffered block + scratch footprint, with headroom."""
    f32 = 4
    io_blocks = 2 * (H * W * Cin + 9 * Cin * Cmid
                     + 9 * Cmid * Cout + H * W * Cout) * f32
    scratch = ((H + 2) * (W + 2) * (Cin + Cmid)
               + H * W * 9 * (Cin + Cmid)) * f32
    est = io_blocks + scratch
    # generous headroom for layout (lane/sublane) padding + compiler scratch;
    # capped so we never exceed v7x's smaller physical VMEM.
    return int(min(max(2 * est + (8 << 20), 16 << 20), 48 << 20))


@jax.jit
def conv_block_forward(x_nchw, params):
    """ConvBlock forward. x_nchw: (N, Cin, H, W) -> (N, Cout, H, W)."""
    assert len(params) == 2, "fused kernel implements the default num_convs=2"
    (w1, _b1), (w2, _b2) = params   # biases cancel under InstanceNorm(affine=False)

    N, Cin, H, W = x_nchw.shape
    Cmid = w1.shape[-1]
    Cout = w2.shape[-1]

    x = jnp.transpose(x_nchw, (0, 2, 3, 1))          # NCHW -> NHWC (no pad!)
    w1c = w1.reshape(9 * Cin, Cmid)                  # (kh,kw,cin) -> K axis
    w2c = w2.reshape(9 * Cmid, Cout)

    out = pl.pallas_call(
        _fused_conv_block_kernel,
        out_shape=jax.ShapeDtypeStruct((N, H * W, Cout), x.dtype),
        grid_spec=pltpu.PrefetchScalarGridSpec(
            num_scalar_prefetch=0,
            grid=(N,),
            in_specs=[
                pl.BlockSpec((1, H, W, Cin), lambda n: (n, 0, 0, 0)),
                pl.BlockSpec((9 * Cin, Cmid), lambda n: (0, 0)),
                pl.BlockSpec((9 * Cmid, Cout), lambda n: (0, 0)),
            ],
            out_specs=pl.BlockSpec((1, H * W, Cout), lambda n: (n, 0, 0)),
            scratch_shapes=[
                pltpu.VMEM((H + 2, W + 2, Cin), jnp.float32),   # padded input
                pltpu.VMEM((H * W, 9 * Cin), jnp.float32),      # im2col layer 1
                pltpu.VMEM((H + 2, W + 2, Cmid), jnp.float32),  # padded layer-1 act
                pltpu.VMEM((H * W, 9 * Cmid), jnp.float32),     # im2col layer 2
            ],
        ),
        compiler_params=pltpu.CompilerParams(
            dimension_semantics=("parallel",),
            vmem_limit_bytes=_vmem_limit_bytes(H, W, Cin, Cmid, Cout),
        ),
    )(x, w1c, w2c)

    y = out.reshape(N, H, W, Cout)
    return jnp.transpose(y, (0, 3, 1, 2))            # NHWC -> NCHW


def make_params(key, in_channels, out_channels, num_convs=2, kernel_size=3):
    """Deterministic synthetic Conv2d weights/biases (HWIO layout)."""
    params = []
    cin = in_channels
    for _ in range(num_convs):
        key, kw_, kb_ = jax.random.split(key, 3)
        fan_in = cin * kernel_size * kernel_size
        bound = 1.0 / jnp.sqrt(fan_in)
        w = jax.random.uniform(
            kw_, (kernel_size, kernel_size, cin, out_channels),
            jnp.float32, -bound, bound)
        b = jax.random.uniform(kb_, (out_channels,), jnp.float32, -bound, bound)
        params.append((w, b))
        cin = out_channels
    return params


def _reference_forward(x_nchw, params):
    """Pure-JAX reference (XLA conv, two-pass IN, bias kept) for checking."""
    x = jnp.transpose(x_nchw, (0, 2, 3, 1))
    for (w, b) in params:
        y = lax.conv_general_dilated(
            x, w, window_strides=(1, 1), padding=((1, 1), (1, 1)),
            dimension_numbers=("NHWC", "HWIO", "NHWC"))
        y = y + b                                   # bias (cancels under IN)
        mean = jnp.mean(y, axis=(1, 2), keepdims=True)
        var = jnp.mean((y - mean) ** 2, axis=(1, 2), keepdims=True)
        y = (y - mean) * lax.rsqrt(var + EPS)
        x = jnp.where(y >= 0, y, NEG_SLOPE * y)
    return jnp.transpose(x, (0, 3, 1, 2))


if __name__ == "__main__":
    key = jax.random.PRNGKey(0)
    k_x, k_p = jax.random.split(key)

    N, CIN, COUT, H, W = 2, 4, 8, 16, 16
    x = jax.random.normal(k_x, (N, CIN, H, W), jnp.float32)
    params = make_params(k_p, CIN, COUT, num_convs=2)

    out = jax.block_until_ready(conv_block_forward(x, params))
    ref = _reference_forward(x, params)

    assert out.shape == (N, COUT, H, W), out.shape
    max_err = float(jnp.max(jnp.abs(out - ref)))
    assert jnp.allclose(out, ref, atol=1e-4, rtol=1e-4), max_err

    print("KERNEL_OK")
</pallas_src>

<mosaic_0001>
module attributes {stable_mosaic.version = 11 : i64} {
  func.func @_fused_conv_block_kernel(%arg0: i32, %arg1: memref<1x16x16x4xf32, #tpu.memory_space<vmem>>, %arg2: memref<36x8xf32, #tpu.memory_space<vmem>>, %arg3: memref<72x8xf32, #tpu.memory_space<vmem>>, %arg4: memref<1x256x8xf32, #tpu.memory_space<vmem>>, %arg5: memref<18x18x4xf32, #tpu.memory_space<vmem>>, %arg6: memref<256x36xf32, #tpu.memory_space<vmem>>, %arg7: memref<18x18x8xf32, #tpu.memory_space<vmem>>, %arg8: memref<256x72xf32, #tpu.memory_space<vmem>>) attributes {dimension_semantics = [#tpu.dimension_semantics<parallel>], iteration_bounds = array<i64: 2>, scalar_prefetch = 0 : i64, scratch_operands = 4 : i64, tpu.core_type = #tpu.core_type<tc>, window_params = [{transform_indices = @transform_0, window_bounds = array<i64: 1, 16, 16, 4>}, {pipeline_mode = #tpu.pipeline_mode<synchronous>, transform_indices = @transform_1, window_bounds = array<i64: 36, 8>}, {pipeline_mode = #tpu.pipeline_mode<synchronous>, transform_indices = @transform_2, window_bounds = array<i64: 72, 8>}, {transform_indices = @transform_3, window_bounds = array<i64: 1, 256, 8>}]} {
    %cst = arith.constant 0.000000e+00 : f32
    %0 = vector.broadcast %cst : f32 to vector<18x18x4xf32>
    %c0 = arith.constant 0 : index
    %c0_0 = arith.constant 0 : index
    %c0_1 = arith.constant 0 : index
    %1 = vector.load %arg5[%c0, %c0_0, %c0_1] : memref<18x18x4xf32, #tpu.memory_space<vmem>>, vector<18x18x4xf32>
    tpu.vector_store %arg5[%c0, %c0_0, %c0_1], %0 {strides = array<i32>} : memref<18x18x4xf32, #tpu.memory_space<vmem>>, vector<18x18x4xf32>,
    %c0_2 = arith.constant 0 : index
    %c0_3 = arith.constant 0 : index
    %c0_4 = arith.constant 0 : index
    %c0_5 = arith.constant 0 : index
    %2 = vector.load %arg1[%c0_2, %c0_3, %c0_4, %c0_5] : memref<1x16x16x4xf32, #tpu.memory_space<vmem>>, vector<1x16x16x4xf32>
    %3 = vector.shape_cast %2 : vector<1x16x16x4xf32> to vector<16x16x4xf32>
    %c1 = arith.constant 1 : index
    %c1_6 = arith.constant 1 : index
    %c0_7 = arith.constant 0 : index
    %4 = vector.load %arg5[%c1, %c1_6, %c0_7] : memref<18x18x4xf32, #tpu.memory_space<vmem>>, vector<16x16x4xf32>
    tpu.vector_store %arg5[%c1, %c1_6, %c0_7], %3 {strides = array<i32>} : memref<18x18x4xf32, #tpu.memory_space<vmem>>, vector<16x16x4xf32>,
    %c0_8 = arith.constant 0 : index
    %c0_9 = arith.constant 0 : index
    %c0_10 = arith.constant 0 : index
    %5 = vector.load %arg5[%c0_8, %c0_9, %c0_10] : memref<18x18x4xf32, #tpu.memory_space<vmem>>, vector<16x16x4xf32>
    %6 = vector.shape_cast %5 : vector<16x16x4xf32> to vector<256x4xf32>
    %c0_11 = arith.constant 0 : index
    %c0_12 = arith.constant 0 : index
    %7 = vector.load %arg6[%c0_11, %c0_12] : memref<256x36xf32, #tpu.memory_space<vmem>>, vector<256x4xf32>
    tpu.vector_store %arg6[%c0_11, %c0_12], %6 {strides = array<i32>} : memref<256x36xf32, #tpu.memory_space<vmem>>, vector<256x4xf32>,
    %c0_13 = arith.constant 0 : index
    %c1_14 = arith.constant 1 : index
    %c0_15 = arith.constant 0 : index
    %8 = vector.load %arg5[%c0_13, %c1_14, %c0_15] : memref<18x18x4xf32, #tpu.memory_space<vmem>>, vector<16x16x4xf32>
    %9 = vector.shape_cast %8 : vector<16x16x4xf32> to vector<256x4xf32>
    %c0_16 = arith.constant 0 : index
    %c4 = arith.constant 4 : index
    %10 = vector.load %arg6[%c0_16, %c4] : memref<256x36xf32, #tpu.memory_space<vmem>>, vector<256x4xf32>
    tpu.vector_store %arg6[%c0_16, %c4], %9 {strides = array<i32>} : memref<256x36xf32, #tpu.memory_space<vmem>>, vector<256x4xf32>,
    %c0_17 = arith.constant 0 : index
    %c2 = arith.constant 2 : index
    %c0_18 = arith.constant 0 : index
    %11 = vector.load %arg5[%c0_17, %c2, %c0_18] : memref<18x18x4xf32, #tpu.memory_space<vmem>>, vector<16x16x4xf32>
    %12 = vector.shape_cast %11 : vector<16x16x4xf32> to vector<256x4xf32>
    %c0_19 = arith.constant 0 : index
    %c8 = arith.constant 8 : index
    %13 = vector.load %arg6[%c0_19, %c8] : memref<256x36xf32, #tpu.memory_space<vmem>>, vector<256x4xf32>
    tpu.vector_store %arg6[%c0_19, %c8], %12 {strides = array<i32>} : memref<256x36xf32, #tpu.memory_space<vmem>>, vector<256x4xf32>,
    %c1_20 = arith.constant 1 : index
    %c0_21 = arith.constant 0 : index
    %c0_22 = arith.constant 0 : index
    %14 = vector.load %arg5[%c1_20, %c0_21, %c0_22] : memref<18x18x4xf32, #tpu.memory_space<vmem>>, vector<16x16x4xf32>
    %15 = vector.shape_cast %14 : vector<16x16x4xf32> to vector<256x4xf32>
    %c0_23 = arith.constant 0 : index
    %c12 = arith.constant 12 : index
    %16 = vector.load %arg6[%c0_23, %c12] : memref<256x36xf32, #tpu.memory_space<vmem>>, vector<256x4xf32>
    tpu.vector_store %arg6[%c0_23, %c12], %15 {strides = array<i32>} : memref<256x36xf32, #tpu.memory_space<vmem>>, vector<256x4xf32>,
    %c1_24 = arith.constant 1 : index
    %c1_25 = arith.constant 1 : index
    %c0_26 = arith.constant 0 : index
    %17 = vector.load %arg5[%c1_24, %c1_25, %c0_26] : memref<18x18x4xf32, #tpu.memory_space<vmem>>, vector<16x16x4xf32>
    %18 = vector.shape_cast %17 : vector<16x16x4xf32> to vector<256x4xf32>
    %c0_27 = arith.constant 0 : index
    %c16 = arith.constant 16 : index
    %19 = vector.load %arg6[%c0_27, %c16] : memref<256x36xf32, #tpu.memory_space<vmem>>, vector<256x4xf32>
    tpu.vector_store %arg6[%c0_27, %c16], %18 {strides = array<i32>} : memref<256x36xf32, #tpu.memory_space<vmem>>, vector<256x4xf32>,
    %c1_28 = arith.constant 1 : index
    %c2_29 = arith.constant 2 : index
    %c0_30 = arith.constant 0 : index
    %20 = vector.load %arg5[%c1_28, %c2_29, %c0_30] : memref<18x18x4xf32, #tpu.memory_space<vmem>>, vector<16x16x4xf32>
    %21 = vector.shape_cast %20 : vector<16x16x4xf32> to vector<256x4xf32>
    %c0_31 = arith.constant 0 : index
    %c20 = arith.constant 20 : index
    %22 = vector.load %arg6[%c0_31, %c20] : memref<256x36xf32, #tpu.memory_space<vmem>>, vector<256x4xf32>
    tpu.vector_store %arg6[%c0_31, %c20], %21 {strides = array<i32>} : memref<256x36xf32, #tpu.memory_space<vmem>>, vector<256x4xf32>,
    %c2_32 = arith.constant 2 : index
    %c0_33 = arith.constant 0 : index
    %c0_34 = arith.constant 0 : index
    %23 = vector.load %arg5[%c2_32, %c0_33, %c0_34] : memref<18x18x4xf32, #tpu.memory_space<vmem>>, vector<16x16x4xf32>
    %24 = vector.shape_cast %23 : vector<16x16x4xf32> to vector<256x4xf32>
    %c0_35 = arith.constant 0 : index
    %c24 = arith.constant 24 : index
    %25 = vector.load %arg6[%c0_35, %c24] : memref<256x36xf32, #tpu.memory_space<vmem>>, vector<256x4xf32>
    tpu.vector_store %arg6[%c0_35, %c24], %24 {strides = array<i32>} : memref<256x36xf32, #tpu.memory_space<vmem>>, vector<256x4xf32>,
    %c2_36 = arith.constant 2 : index
    %c1_37 = arith.constant 1 : index
    %c0_38 = arith.constant 0 : index
    %26 = vector.load %arg5[%c2_36, %c1_37, %c0_38] : memref<18x18x4xf32, #tpu.memory_space<vmem>>, vector<16x16x4xf32>
    %27 = vector.shape_cast %26 : vector<16x16x4xf32> to vector<256x4xf32>
    %c0_39 = arith.constant 0 : index
    %c28 = arith.constant 28 : index
    %28 = vector.load %arg6[%c0_39, %c28] : memref<256x36xf32, #tpu.memory_space<vmem>>, vector<256x4xf32>
    tpu.vector_store %arg6[%c0_39, %c28], %27 {strides = array<i32>} : memref<256x36xf32, #tpu.memory_space<vmem>>, vector<256x4xf32>,
    %c2_40 = arith.constant 2 : index
    %c2_41 = arith.constant 2 : index
    %c0_42 = arith.constant 0 : index
    %29 = vector.load %arg5[%c2_40, %c2_41, %c0_42] : memref<18x18x4xf32, #tpu.memory_space<vmem>>, vector<16x16x4xf32>
    %30 = vector.shape_cast %29 : vector<16x16x4xf32> to vector<256x4xf32>
    %c0_43 = arith.constant 0 : index
    %c32 = arith.constant 32 : index
    %31 = vector.load %arg6[%c0_43, %c32] : memref<256x36xf32, #tpu.memory_space<vmem>>, vector<256x4xf32>
    tpu.vector_store %arg6[%c0_43, %c32], %30 {strides = array<i32>} : memref<256x36xf32, #tpu.memory_space<vmem>>, vector<256x4xf32>,
    %c0_44 = arith.constant 0 : index
    %c0_45 = arith.constant 0 : index
    %32 = vector.load %arg6[%c0_44, %c0_45] : memref<256x36xf32, #tpu.memory_space<vmem>>, vector<256x36xf32>
    %c0_46 = arith.constant 0 : index
    %c0_47 = arith.constant 0 : index
    %33 = vector.load %arg2[%c0_46, %c0_47] : memref<36x8xf32, #tpu.memory_space<vmem>>, vector<36x8xf32>
    %cst_48 = arith.constant dense<0.000000e+00> : vector<256x8xf32>
    %34 = tpu.matmul %32, %33, %cst_48 {dimension_numbers = #tpu.dot_dimension_numbers<[1], [0], [0], [1], [0, 0, 1, 1], [], []>} : vector<256x36xf32>, vector<36x8xf32>, vector<256x8xf32> -> vector<256x8xf32>
    %cst_49 = arith.constant dense<0.000000e+00> : vector<8xf32>
    %35 = vector.multi_reduction <add>, %34, %cst_49 [0] : vector<256x8xf32> to vector<8xf32>
    %36 = vector.shape_cast %35 : vector<8xf32> to vector<1x8xf32>
    %cst_50 = arith.constant 3.906250e-03 : f32
    %37 = vector.broadcast %cst_50 : f32 to vector<1x8xf32>
    %38 = arith.mulf %36, %37 : vector<1x8xf32>
    %39 = arith.mulf %34, %34 : vector<256x8xf32>
    %cst_51 = arith.constant dense<0.000000e+00> : vector<8xf32>
    %40 = vector.multi_reduction <add>, %39, %cst_51 [0] : vector<256x8xf32> to vector<8xf32>
    %41 = vector.shape_cast %40 : vector<8xf32> to vector<1x8xf32>
    %cst_52 = arith.constant 3.906250e-03 : f32
    %42 = vector.broadcast %cst_52 : f32 to vector<1x8xf32>
    %43 = arith.mulf %41, %42 : vector<1x8xf32>
    %44 = arith.mulf %38, %38 : vector<1x8xf32>
    %45 = arith.subf %43, %44 : vector<1x8xf32>
    %46 = vector.broadcast %38 : vector<1x8xf32> to vector<256x8xf32>
    %47 = arith.subf %34, %46 : vector<256x8xf32>
    %cst_53 = arith.constant 9.99999974E-6 : f32
    %48 = vector.broadcast %cst_53 : f32 to vector<1x8xf32>
    %49 = arith.addf %45, %48 : vector<1x8xf32>
    %50 = math.rsqrt %49 : vector<1x8xf32>
    %51 = vector.broadcast %50 : vector<1x8xf32> to vector<256x8xf32>
    %52 = arith.mulf %47, %51 : vector<256x8xf32>
    %cst_54 = arith.constant 0.000000e+00 : f32
    %53 = vector.broadcast %cst_54 : f32 to vector<256x8xf32>
    %54 = arith.cmpf oge, %52, %53 : vector<256x8xf32>
    %cst_55 = arith.constant 0.00999999977 : f32
    %55 = vector.broadcast %cst_55 : f32 to vector<256x8xf32>
    %56 = arith.mulf %55, %52 : vector<256x8xf32>
    %57 = arith.select %54, %52, %56 : vector<256x8xi1>, vector<256x8xf32>
    %cst_56 = arith.constant 0.000000e+00 : f32
    %58 = vector.broadcast %cst_56 : f32 to vector<18x18x8xf32>
    %c0_57 = arith.constant 0 : index
    %c0_58 = arith.constant 0 : index
    %c0_59 = arith.constant 0 : index
    %59 = vector.load %arg7[%c0_57, %c0_58, %c0_59] : memref<18x18x8xf32, #tpu.memory_space<vmem>>, vector<18x18x8xf32>
    tpu.vector_store %arg7[%c0_57, %c0_58, %c0_59], %58 {strides = array<i32>} : memref<18x18x8xf32, #tpu.memory_space<vmem>>, vector<18x18x8xf32>,
    %60 = vector.shape_cast %57 : vector<256x8xf32> to vector<16x16x8xf32>
    %c1_60 = arith.constant 1 : index
    %c1_61 = arith.constant 1 : index
    %c0_62 = arith.constant 0 : index
    %61 = vector.load %arg7[%c1_60, %c1_61, %c0_62] : memref<18x18x8xf32, #tpu.memory_space<vmem>>, vector<16x16x8xf32>
    tpu.vector_store %arg7[%c1_60, %c1_61, %c0_62], %60 {strides = array<i32>} : memref<18x18x8xf32, #tpu.memory_space<vmem>>, vector<16x16x8xf32>,
    %c0_63 = arith.constant 0 : index
    %c0_64 = arith.constant 0 : index
    %c0_65 = arith.constant 0 : index
    %62 = vector.load %arg7[%c0_63, %c0_64, %c0_65] : memref<18x18x8xf32, #tpu.memory_space<vmem>>, vector<16x16x8xf32>
    %63 = vector.shape_cast %62 : vector<16x16x8xf32> to vector<256x8xf32>
    %c0_66 = arith.constant 0 : index
    %c0_67 = arith.constant 0 : index
    %64 = vector.load %arg8[%c0_66, %c0_67] : memref<256x72xf32, #tpu.memory_space<vmem>>, vector<256x8xf32>
    tpu.vector_store %arg8[%c0_66, %c0_67], %63 {strides = array<i32>} : memref<256x72xf32, #tpu.memory_space<vmem>>, vector<256x8xf32>,
    %c0_68 = arith.constant 0 : index
    %c1_69 = arith.constant 1 : index
    %c0_70 = arith.constant 0 : index
    %65 = vector.load %arg7[%c0_68, %c1_69, %c0_70] : memref<18x18x8xf32, #tpu.memory_space<vmem>>, vector<16x16x8xf32>
    %66 = vector.shape_cast %65 : vector<16x16x8xf32> to vector<256x8xf32>
    %c0_71 = arith.constant 0 : index
    %c8_72 = arith.constant 8 : index
    %67 = vector.load %arg8[%c0_71, %c8_72] : memref<256x72xf32, #tpu.memory_space<vmem>>, vector<256x8xf32>
    tpu.vector_store %arg8[%c0_71, %c8_72], %66 {strides = array<i32>} : memref<256x72xf32, #tpu.memory_space<vmem>>, vector<256x8xf32>,
    %c0_73 = arith.constant 0 : index
    %c2_74 = arith.constant 2 : index
    %c0_75 = arith.constant 0 : index
    %68 = vector.load %arg7[%c0_73, %c2_74, %c0_75] : memref<18x18x8xf32, #tpu.memory_space<vmem>>, vector<16x16x8xf32>
    %69 = vector.shape_cast %68 : vector<16x16x8xf32> to vector<256x8xf32>
    %c0_76 = arith.constant 0 : index
    %c16_77 = arith.constant 16 : index
    %70 = vector.load %arg8[%c0_76, %c16_77] : memref<256x72xf32, #tpu.memory_space<vmem>>, vector<256x8xf32>
    tpu.vector_store %arg8[%c0_76, %c16_77], %69 {strides = array<i32>} : memref<256x72xf32, #tpu.memory_space<vmem>>, vector<256x8xf32>,
    %c1_78 = arith.constant 1 : index
    %c0_79 = arith.constant 0 : index
    %c0_80 = arith.constant 0 : index
    %71 = vector.load %arg7[%c1_78, %c0_79, %c0_80] : memref<18x18x8xf32, #tpu.memory_space<vmem>>, vector<16x16x8xf32>
    %72 = vector.shape_cast %71 : vector<16x16x8xf32> to vector<256x8xf32>
    %c0_81 = arith.constant 0 : index
    %c24_82 = arith.constant 24 : index
    %73 = vector.load %arg8[%c0_81, %c24_82] : memref<256x72xf32, #tpu.memory_space<vmem>>, vector<256x8xf32>
    tpu.vector_store %arg8[%c0_81, %c24_82], %72 {strides = array<i32>} : memref<256x72xf32, #tpu.memory_space<vmem>>, vector<256x8xf32>,
    %c1_83 = arith.constant 1 : index
    %c1_84 = arith.constant 1 : index
    %c0_85 = arith.constant 0 : index
    %74 = vector.load %arg7[%c1_83, %c1_84, %c0_85] : memref<18x18x8xf32, #tpu.memory_space<vmem>>, vector<16x16x8xf32>
    %75 = vector.shape_cast %74 : vector<16x16x8xf32> to vector<256x8xf32>
    %c0_86 = arith.constant 0 : index
    %c32_87 = arith.constant 32 : index
    %76 = vector.load %arg8[%c0_86, %c32_87] : memref<256x72xf32, #tpu.memory_space<vmem>>, vector<256x8xf32>
    tpu.vector_store %arg8[%c0_86, %c32_87], %75 {strides = array<i32>} : memref<256x72xf32, #tpu.memory_space<vmem>>, vector<256x8xf32>,
    %c1_88 = arith.constant 1 : index
    %c2_89 = arith.constant 2 : index
    %c0_90 = arith.constant 0 : index
    %77 = vector.load %arg7[%c1_88, %c2_89, %c0_90] : memref<18x18x8xf32, #tpu.memory_space<vmem>>, vector<16x16x8xf32>
    %78 = vector.shape_cast %77 : vector<16x16x8xf32> to vector<256x8xf32>
    %c0_91 = arith.constant 0 : index
    %c40 = arith.constant 40 : index
    %79 = vector.load %arg8[%c0_91, %c40] : memref<256x72xf32, #tpu.memory_space<vmem>>, vector<256x8xf32>
    tpu.vector_store %arg8[%c0_91, %c40], %78 {strides = array<i32>} : memref<256x72xf32, #tpu.memory_space<vmem>>, vector<256x8xf32>,
    %c2_92 = arith.constant 2 : index
    %c0_93 = arith.constant 0 : index
    %c0_94 = arith.constant 0 : index
    %80 = vector.load %arg7[%c2_92, %c0_93, %c0_94] : memref<18x18x8xf32, #tpu.memory_space<vmem>>, vector<16x16x8xf32>
    %81 = vector.shape_cast %80 : vector<16x16x8xf32> to vector<256x8xf32>
    %c0_95 = arith.constant 0 : index
    %c48 = arith.constant 48 : index
    %82 = vector.load %arg8[%c0_95, %c48] : memref<256x72xf32, #tpu.memory_space<vmem>>, vector<256x8xf32>
    tpu.vector_store %arg8[%c0_95, %c48], %81 {strides = array<i32>} : memref<256x72xf32, #tpu.memory_space<vmem>>, vector<256x8xf32>,
    %c2_96 = arith.constant 2 : index
    %c1_97 = arith.constant 1 : index
    %c0_98 = arith.constant 0 : index
    %83 = vector.load %arg7[%c2_96, %c1_97, %c0_98] : memref<18x18x8xf32, #tpu.memory_space<vmem>>, vector<16x16x8xf32>
    %84 = vector.shape_cast %83 : vector<16x16x8xf32> to vector<256x8xf32>
    %c0_99 = arith.constant 0 : index
    %c56 = arith.constant 56 : index
    %85 = vector.load %arg8[%c0_99, %c56] : memref<256x72xf32, #tpu.memory_space<vmem>>, vector<256x8xf32>
    tpu.vector_store %arg8[%c0_99, %c56], %84 {strides = array<i32>} : memref<256x72xf32, #tpu.memory_space<vmem>>, vector<256x8xf32>,
    %c2_100 = arith.constant 2 : index
    %c2_101 = arith.constant 2 : index
    %c0_102 = arith.constant 0 : index
    %86 = vector.load %arg7[%c2_100, %c2_101, %c0_102] : memref<18x18x8xf32, #tpu.memory_space<vmem>>, vector<16x16x8xf32>
    %87 = vector.shape_cast %86 : vector<16x16x8xf32> to vector<256x8xf32>
    %c0_103 = arith.constant 0 : index
    %c64 = arith.constant 64 : index
    %88 = vector.load %arg8[%c0_103, %c64] : memref<256x72xf32, #tpu.memory_space<vmem>>, vector<256x8xf32>
    tpu.vector_store %arg8[%c0_103, %c64], %87 {strides = array<i32>} : memref<256x72xf32, #tpu.memory_space<vmem>>, vector<256x8xf32>,
    %c0_104 = arith.constant 0 : index
    %c0_105 = arith.constant 0 : index
    %89 = vector.load %arg8[%c0_104, %c0_105] : memref<256x72xf32, #tpu.memory_space<vmem>>, vector<256x72xf32>
    %c0_106 = arith.constant 0 : index
    %c0_107 = arith.constant 0 : index
    %90 = vector.load %arg3[%c0_106, %c0_107] : memref<72x8xf32, #tpu.memory_space<vmem>>, vector<72x8xf32>
    %cst_108 = arith.constant dense<0.000000e+00> : vector<256x8xf32>
    %91 = tpu.matmul %89, %90, %cst_108 {dimension_numbers = #tpu.dot_dimension_numbers<[1], [0], [0], [1], [0, 0, 1, 1], [], []>} : vector<256x72xf32>, vector<72x8xf32>, vector<256x8xf32> -> vector<256x8xf32>
    %cst_109 = arith.constant dense<0.000000e+00> : vector<8xf32>
    %92 = vector.multi_reduction <add>, %91, %cst_109 [0] : vector<256x8xf32> to vector<8xf32>
    %93 = vector.shape_cast %92 : vector<8xf32> to vector<1x8xf32>
    %cst_110 = arith.constant 3.906250e-03 : f32
    %94 = vector.broadcast %cst_110 : f32 to vector<1x8xf32>
    %95 = arith.mulf %93, %94 : vector<1x8xf32>
    %96 = arith.mulf %91, %91 : vector<256x8xf32>
    %cst_111 = arith.constant dense<0.000000e+00> : vector<8xf32>
    %97 = vector.multi_reduction <add>, %96, %cst_111 [0] : vector<256x8xf32> to vector<8xf32>
    %98 = vector.shape_cast %97 : vector<8xf32> to vector<1x8xf32>
    %cst_112 = arith.constant 3.906250e-03 : f32
    %99 = vector.broadcast %cst_112 : f32 to vector<1x8xf32>
    %100 = arith.mulf %98, %99 : vector<1x8xf32>
    %101 = arith.mulf %95, %95 : vector<1x8xf32>
    %102 = arith.subf %100, %101 : vector<1x8xf32>
    %103 = vector.broadcast %95 : vector<1x8xf32> to vector<256x8xf32>
    %104 = arith.subf %91, %103 : vector<256x8xf32>
    %cst_113 = arith.constant 9.99999974E-6 : f32
    %105 = vector.broadcast %cst_113 : f32 to vector<1x8xf32>
    %106 = arith.addf %102, %105 : vector<1x8xf32>
    %107 = math.rsqrt %106 : vector<1x8xf32>
    %108 = vector.broadcast %107 : vector<1x8xf32> to vector<256x8xf32>
    %109 = arith.mulf %104, %108 : vector<256x8xf32>
    %cst_114 = arith.constant 0.000000e+00 : f32
    %110 = vector.broadcast %cst_114 : f32 to vector<256x8xf32>
    %111 = arith.cmpf oge, %109, %110 : vector<256x8xf32>
    %cst_115 = arith.constant 0.00999999977 : f32
    %112 = vector.broadcast %cst_115 : f32 to vector<256x8xf32>
    %113 = arith.mulf %112, %109 : vector<256x8xf32>
    %114 = arith.select %111, %109, %113 : vector<256x8xi1>, vector<256x8xf32>
    %c0_116 = arith.constant 0 : index
    %c0_117 = arith.constant 0 : index
    %c0_118 = arith.constant 0 : index
    %115 = vector.load %arg4[%c0_116, %c0_117, %c0_118] : memref<1x256x8xf32, #tpu.memory_space<vmem>>, vector<1x256x8xf32>
    %116 = vector.shape_cast %115 : vector<1x256x8xf32> to vector<256x8xf32>
    %117 = vector.shape_cast %114 : vector<256x8xf32> to vector<1x256x8xf32>
    tpu.vector_store %arg4[%c0_116, %c0_117, %c0_118], %117 {strides = array<i32>} : memref<1x256x8xf32, #tpu.memory_space<vmem>>, vector<1x256x8xf32>,
    return
  }
  func.func @transform_0(%arg0: i32) -> (i32, i32, i32, i32) {
    %c0_i32 = arith.constant 0 : i32
    %c0_i32_0 = arith.constant 0 : i32
    %c0_i32_1 = arith.constant 0 : i32
    %c0_i32_2 = arith.constant 0 : i32
    return %arg0, %c0_i32, %c0_i32_0, %c0_i32_1 : i32, i32, i32, i32
  }
  func.func @transform_1(%arg0: i32) -> (i32, i32) {
    %c0_i32 = arith.constant 0 : i32
    %c0_i32_0 = arith.constant 0 : i32
    %c0_i32_1 = arith.constant 0 : i32
    return %c0_i32, %c0_i32_0 : i32, i32
  }
  func.func @transform_2(%arg0: i32) -> (i32, i32) {
    %c0_i32 = arith.constant 0 : i32
    %c0_i32_0 = arith.constant 0 : i32
    %c0_i32_1 = arith.constant 0 : i32
    return %c0_i32, %c0_i32_0 : i32, i32
  }
  func.func @transform_3(%arg0: i32) -> (i32, i32, i32) {
    %c0_i32 = arith.constant 0 : i32
    %c0_i32_0 = arith.constant 0 : i32
    %c0_i32_1 = arith.constant 0 : i32
    return %arg0, %c0_i32, %c0_i32_0 : i32, i32, i32
  }
}

</mosaic_0001>

<bundles_post_ra>
// kernel: conv_block_forward.1
= control target key start
LH: loop header
LB: loop body
LE: loop exit
PB: predicated region body
PF: predicated region fallthrough
CT: control target
= control target key end

     0   :  { %s5036_s12 = smov 0   ;;  %s8126_s0 = inlined_call_operand.vmem [shape: f32[2,16,16,4], index: 0, kind: input, shape index: {}]   ;;  %s8127_s1 = inlined_call_operand.vmem [shape: f32[36,8], index: 1, kind: input, shape index: {}]   ;;  %s8128_s2 = inlined_call_operand.vmem [shape: f32[72,8], index: 2, kind: input, shape index: {}]   ;;  %s8129_s3 = inlined_call_operand.vmem [shape: f32[2,256,8], index: 3, kind: output, shape index: {}]  }
   0x1 LB: > { %s4878_s13 = sadd.s32 4294967295, %s5001_s12   ;;  %p4882_p0 = scmp.ge.s32.totalorder %s5001_s12, 1  ;;  %s5001_s12 = sphi %s5036_s12, %s13_s12  }
   0x2   : > { %p137_p1 = scmp.lt.s32.totalorder %s5001_s12, 3 }
   0x4   : > { %p138_p2 = pnand %p4882_p0, %p137_p1 }
   0x6   : > { %141 = sbr.rel (%p138_p2) target bundleno = 2137 (0x859), region = 32 }
   0xb   : > { %vm171_vm0 = vcmask 31744   ;;  %v8130_v0 = vmov 0.0   ;;  %s5004_s14 = smov 4   ;;  %p161_p3 = scmp.lt.s32.totalorder %s4878_s13, 1  ;;  %vm174_vm1 = vcmask 25600   ;;  %vm516_vm2 = vcmask 64544  }
   0xc   : > { %172 = vst.msk [vmem:[#allocation2] sm:$0xff] %vm171_vm0, %v8130_v0  ;;  %s5005_s19 = smov 8   ;;  %s5006_s20 = smov 12   ;;  %vm709_vm3 = vcmask 97344   ;;  %vm902_vm4 = vcmask 130144   ;;  %vm1095_vm5 = vcmask 162944  }
   0xd   : > { %173 = vst.msk [vmem:[#allocation2 + $0x8] sm:$0xff] %vm171_vm0, %v8130_v0  ;;  %s8279_s13 = smov (!%p161_p3, %s4878_s13), 1  ;;  %s5007_s21 = smov 16   ;;  %vm1288_vm6 = vcmask 195744   ;;  %vm1482_vm7 = vcmask 228544   ;;  %vm1675_vm8 = vcmask 261344  }
   0xe   : > { %176 = vst.msk [vmem:[#allocation2 + $0x18] sm:$0xff] %vm171_vm0, %v8130_v0  ;;  %s4954_s15 = sshll.u32 %s8279_s13, 8  ;;  %s5008_s22 = smov 20   ;;  %vm2035_vm9 = vcmask 1043456   ;;  %vm1868_vm10 = vcmask 294144   ;;  %vm1938_vm11 = vcmask 293888  }
   0xf   : > { %177 = vst.msk [vmem:[#allocation2 + $0x20] sm:$0xff] %vm171_vm0, %v8130_v0  ;;  %s5119_s18 = scalar_lea.vmem %s8126_s0, %s4954_s15  ;;  %s5009_s23 = smov 24   ;;  %vm2152_vm12 = vcmask 64512   ;;  %vm2500_vm13 = vcmask 58368  }
  0x10   : > { %179 = vst.msk [vmem:[#allocation2 + $0x30] sm:$0xff] %vm171_vm0, %v8130_v0  ;;  %v227_v2 = vld [vmem:[%s5119_s18] sm:$0xff]  ;;  %v228_v5 = vld [vmem:[%s5119_s18 + $0x8] sm:$0xff]  ;;  %v234_v8 = vld [vmem:[%s5119_s18 + $0x38] sm:$0xff]  ;;  %s5010_s24 = smov 28   ;;  %s5011_s25 = smov 32  }
  0x11   : > { %180 = vst.msk [vmem:[#allocation2 + $0x38] sm:$0xff] %vm171_vm0, %v8130_v0  ;;  %v231_v6 = vld [vmem:[%s5119_s18 + $0x20] sm:$0xff]  ;;  %v232_v7 = vld [vmem:[%s5119_s18 + $0x28] sm:$0xff]  ;;  %v229_v9 = vld [vmem:[%s5119_s18 + $0x10] sm:$0xff]  ;;  %s5012_s9 = smov 40   ;;  %s5013_s10 = smov 56  }
  0x12   : > { %182 = vst.msk [vmem:[#allocation2 + $0x48] sm:$0xff] %vm171_vm0, %v8130_v0  ;;  %v235_v10 = vld [vmem:[%s5119_s18 + $0x40] sm:$0xff]  ;;  %v237_v11 = vld [vmem:[%s5119_s18 + $0x50] sm:$0xff]  ;;  %v230_v12 = vld [vmem:[%s5119_s18 + $0x18] sm:$0xff]  ;;  %s5014_s11 = smov 48  }
  0x13   : > { %183 = vst.msk [vmem:[#allocation2 + $0x50] sm:$0xff] %vm171_vm0, %v8130_v0  ;;  %v238_v13 = vld [vmem:[%s5119_s18 + $0x58] sm:$0xff]  ;;  %v240_v14 = vld [vmem:[%s5119_s18 + $0x68] sm:$0xff]  ;;  %v233_v16 = vld [vmem:[%s5119_s18 + $0x30] sm:$0xff] }
  0x14   : > { %v356_v1 = vld [vmem:[#allocation2 + $0x1] sm:$0xff]  ;;  %185 = vst.msk [vmem:[#allocation2 + $0x60] sm:$0xff] %vm171_vm0, %v8130_v0  ;;  %v241_v18 = vld [vmem:[%s5119_s18 + $0x70] sm:$0xff]  ;;  %v246_v23 = vld [vmem:[%s5119_s18 + $0x98] sm:$0xff] }
  0x15   : > { %420 = vrot.lane.b32.xlu0 %v356_v1, %s5004_s14  ;;  %186 = vst.msk [vmem:[#allocation2 + $0x68] sm:$0xff] %vm171_vm0, %v8130_v0  ;;  %v243_v19 = vld [vmem:[%s5119_s18 + $0x80] sm:$0xff]  ;;  %v236_v20 = vld [vmem:[%s5119_s18 + $0x48] sm:$0xff]  ;;  %v249_v29 = vld [vmem:[%s5119_s18 + $0xb0] sm:$0xff] }
  0x16   : > { %188 = vst.msk [vmem:[#allocation2 + $0x78] sm:$0xff] %vm171_vm0, %v8130_v0  ;;  %v244_v22 = vld [vmem:[%s5119_s18 + $0x88] sm:$0xff]  ;;  %v239_v25 = vld [vmem:[%s5119_s18 + $0x60] sm:$0xff]  ;;  %v242_v30 = vld [vmem:[%s5119_s18 + $0x78] sm:$0xff] }
  0x17   : > { %189 = vst.msk [vmem:[#allocation2 + $0x80] sm:$0xff] %vm171_vm0, %v8130_v0  ;;  %v247_v27 = vld [vmem:[%s5119_s18 + $0xa0] sm:$0xff]  ;;  %v250_v33 = vld [vmem:[%s5119_s18 + $0xb8] sm:$0xff]  ;;  %v252_v35 = vld [vmem:[%s5119_s18 + $0xc8] sm:$0xff] }
  0x18   : > { %191 = vst.msk [vmem:[#allocation2 + $0x90] sm:$0xff] %vm171_vm0, %v8130_v0  ;;  %v245_v36 = vld [vmem:[%s5119_s18 + $0x90] sm:$0xff]  ;;  %v255_v41 = vld [vmem:[%s5119_s18 + $0xe0] sm:$0xff]  ;;  %v248_v42 = vld [vmem:[%s5119_s18 + $0xa8] sm:$0xff] }
  0x19   : > { %192 = vst.msk [vmem:[#allocation2 + $0x98] sm:$0xff] %vm171_vm0, %v8130_v0  ;;  %v253_v39 = vld [vmem:[%s5119_s18 + $0xd0] sm:$0xff]  ;;  %v256_v45 = vld [vmem:[%s5119_s18 + $0xe8] sm:$0xff]  ;;  %v251_v47 = vld [vmem:[%s5119_s18 + $0xc0] sm:$0xff] }
  0x1a   : > { %194 = vst.msk [vmem:[#allocation2 + $0xa8] sm:$0xff] %vm171_vm0, %v8130_v0  ;;  %v254_v51 = vld [vmem:[%s5119_s18 + $0xd8] sm:$0xff]  ;;  %v292_v61 = vld [vmem:[#allocation2] sm:$0xff] }
  0x1b   : > { %195 = vst.msk [vmem:[#allocation2 + $0xb0] sm:$0xff] %vm171_vm0, %v8130_v0 }
  0x1c   : > { %197 = vst.msk [vmem:[#allocation2 + $0xc0] sm:$0xff] %vm171_vm0, %v8130_v0 }
  0x1d   : > { %198 = vst.msk [vmem:[#allocation2 + $0xc8] sm:$0xff] %vm171_vm0, %v8130_v0 }
  0x1e   : > { %200 = vst.msk [vmem:[#allocation2 + $0xd8] sm:$0xff] %vm171_vm0, %v8130_v0 }
  0x1f   : > { %201 = vst.msk [vmem:[#allocation2 + $0xe0] sm:$0xff] %vm171_vm0, %v8130_v0 }
  0x20   : > { %203 = vst.msk [vmem:[#allocation2 + $0xf0] sm:$0xff] %vm171_vm0, %v8130_v0 }
  0x21   : > { %204 = vst.msk [vmem:[#allocation2 + $0xf8] sm:$0xff] %vm171_vm0, %v8130_v0 }
  0x22   : > { %206 = vst.msk [vmem:[#allocation2 + $0x108] sm:$0xff] %vm171_vm0, %v8130_v0 }
  0x23   : > { %207 = vst.msk [vmem:[#allocation2 + $0x110] sm:$0xff] %vm171_vm0, %v8130_v0 }
  0x24   : > { %209 = vst.msk [vmem:[#allocation2 + $0x120] sm:$0xff] %vm171_vm0, %v8130_v0 }
  0x25   : > { %210 = vst.msk [vmem:[#allocation2 + $0x128] sm:$0xff] %vm171_vm0, %v8130_v0 }
  0x26   : > { %212 = vst.msk [vmem:[#allocation2 + $0x138] sm:$0xff] %vm171_vm0, %v8130_v0 }
  0x27   : > { %213 = vst.msk [vmem:[#allocation2 + $0x140] sm:$0xff] %vm171_vm0, %v8130_v0 }
  0x28   : > { %215 = vst.msk [vmem:[#allocation2 + $0x150] sm:$0xff] %vm171_vm0, %v8130_v0 }
  0x29   : > { %216 = vst.msk [vmem:[#allocation2 + $0x158] sm:$0xff] %vm171_vm0, %v8130_v0 }
  0x2a   : > { %218 = vst.msk [vmem:[#allocation2 + $0x168] sm:$0xff] %vm171_vm0, %v8130_v0 }
  0x2b   : > { %219 = vst.msk [vmem:[#allocation2 + $0x170] sm:$0xff] %vm171_vm0, %v8130_v0 }
  0x2c   : > { %221 = vst.msk [vmem:[#allocation2 + $0x180] sm:$0xff] %vm171_vm0, %v8130_v0 }
  0x2d   : > { %222 = vst.msk [vmem:[#allocation2 + $0x188] sm:$0xff] %vm171_vm0, %v8130_v0 }
  0x2e   : > { %224 = vst.msk [vmem:[#allocation2 + $0x198] sm:$0xff] %vm171_vm0, %v8130_v0 }
  0x2f   : > { %225 = vst.msk [vmem:[#allocation2 + $0x1a0] sm:$0xff] %vm171_vm0, %v8130_v0 }
  0x30   : > { %260 = vst.msk [vmem:[#allocation2 + $0x19] sm:$0xff] %vm171_vm0, %v227_v2 }
  0x31   : > { %175 = vst.msk [vmem:[#allocation2 + $0x10] sm:$0x3] %vm174_vm1, %v8130_v0 }
  0x32   : > { %178 = vst.msk [vmem:[#allocation2 + $0x28] sm:$0x3] %vm174_vm1, %v8130_v0 }
  0x33   : > { %181 = vst.msk [vmem:[#allocation2 + $0x40] sm:$0x3] %vm174_vm1, %v8130_v0 }
  0x34   : > { %184 = vst.msk [vmem:[#allocation2 + $0x58] sm:$0x3] %vm174_vm1, %v8130_v0 }
  0x35   : > { %187 = vst.msk [vmem:[#allocation2 + $0x70] sm:$0x3] %vm174_vm1, %v8130_v0 }
  0x36   : > { %190 = vst.msk [vmem:[#allocation2 + $0x88] sm:$0x3] %vm174_vm1, %v8130_v0 }
  0x37   : > { %v5145_v3 = vld [vmem:[#allocation2 + $0x19] sm:$0xff]  ;;  %193 = vst.msk [vmem:[#allocation2 + $0xa0] sm:$0x3] %vm174_vm1, %v8130_v0 }
  0x38   : > { %424 = vrot.lane.b32.xlu1 %v5145_v3, %s5004_s14  ;;  %v357_v4 = vld [vmem:[#allocation2 + $0x9] sm:$0xff]  ;;  %196 = vst.msk [vmem:[#allocation2 + $0xb8] sm:$0x3] %vm174_vm1, %v8130_v0 }
  0x39   : > { %422 = vrot.lane.b32.xlu0 %v357_v4, %s5004_s14  ;;  %199 = vst.msk [vmem:[#allocation2 + $0xd0] sm:$0x3] %vm174_vm1, %v8130_v0  ;;  %v550_v2 = vld [vmem:[#allocation2 + $0xa] sm:$0xff] }
  0x3a   : > { %202 = vst.msk [vmem:[#allocation2 + $0xe8] sm:$0x3] %vm174_vm1, %v8130_v0 }
  0x3b   : > { %205 = vst.msk [vmem:[#allocation2 + $0x100] sm:$0x3] %vm174_vm1, %v8130_v0 }
  0x3c   : > { %208 = vst.msk [vmem:[#allocation2 + $0x118] sm:$0x3] %vm174_vm1, %v8130_v0 }
  0x3d   : > { %211 = vst.msk [vmem:[#allocation2 + $0x130] sm:$0x3] %vm174_vm1, %v8130_v0 }
  0x3e   : > { %214 = vst.msk [vmem:[#allocation2 + $0x148] sm:$0x3] %vm174_vm1, %v8130_v0 }
  0x3f   : > { %217 = vst.msk [vmem:[#allocation2 + $0x160] sm:$0x3] %vm174_vm1, %v8130_v0 }
  0x40   : > { %220 = vst.msk [vmem:[#allocation2 + $0x178] sm:$0x3] %vm174_vm1, %v8130_v0 }
  0x41   : > { %223 = vst.msk [vmem:[#allocation2 + $0x190] sm:$0x3] %vm174_vm1, %v8130_v0 }
  0x42   : > { %226 = vst.msk [vmem:[#allocation2 + $0x1a8] sm:$0x3] %vm174_vm1, %v8130_v0 }
  0x43   : > { %261 = vst.msk [vmem:[#allocation2 + $0x21] sm:$0xff] %vm171_vm0, %v228_v5  ;;  %v5353_v5 = vld [vmem:[#allocation2 + $0x18] sm:$0xff] }
  0x44   : > { %264 = vst.msk [vmem:[#allocation2 + $0x49] sm:$0xff] %vm171_vm0, %v231_v6  ;;  %v293_v6 = vld [vmem:[#allocation2 + $0x8] sm:$0xff] }
  0x45   : > { %265 = vst.msk [vmem:[#allocation2 + $0x51] sm:$0xff] %vm171_vm0, %v232_v7 }
  0x46   : > { %267 = vst.msk [vmem:[#allocation2 + $0x69] sm:$0xff] %vm171_vm0, %v234_v8 }
  0x47   : > { %262 = vst.msk [vmem:[#allocation2 + $0x31] sm:$0xff] %vm171_vm0, %v229_v9 }
  0x48   : > { %268 = vst.msk [vmem:[#allocation2 + $0x79] sm:$0xff] %vm171_vm0, %v235_v10  ;;  %v549_v10 = vld [vmem:[#allocation2 + $0x2] sm:$0xff] }
  0x49   : > { %270 = vst.msk [vmem:[#allocation2 + $0x91] sm:$0xff] %vm171_vm0, %v237_v11 }
  0x4a   : > { %v5191_v15 = vld [vmem:[#allocation2 + $0x21] sm:$0xff]  ;;  %263 = vst.msk [vmem:[#allocation2 + $0x39] sm:$0xff] %vm171_vm0, %v230_v12 }
  0x4b   : > { %426 = vrot.lane.b32.xlu1 %v5191_v15, %s5004_s14  ;;  %v5197_v17 = vld [vmem:[#allocation2 + $0x49] sm:$0xff]  ;;  %271 = vst.msk [vmem:[#allocation2 + $0x99] sm:$0xff] %vm171_vm0, %v238_v13  ;;  %v5364_v8 = vld [vmem:[#allocation2 + $0x1a] sm:$0xff] }
  0x4c   : > { %432 = vrot.lane.b32.xlu0 %v5197_v17, %s5004_s14  ;;  %273 = vst.msk [vmem:[#allocation2 + $0xb1] sm:$0xff] %vm171_vm0, %v240_v14  ;;  %v5215_v24 = vld [vmem:[#allocation2 + $0x51] sm:$0xff]  ;;  %v5372_v11 = vld [vmem:[#allocation2 + $0x20] sm:$0xff]  ;;  %v5376_v12 = vld [vmem:[#allocation2 + $0x48] sm:$0xff] }
  0x4d   : > { %266 = vst.msk [vmem:[#allocation2 + $0x61] sm:$0xff] %vm171_vm0, %v233_v16  ;;  %v5219_v26 = vld [vmem:[#allocation2 + $0x69] sm:$0xff]  ;;  %v5387_v16 = vld [vmem:[#allocation2 + $0x52] sm:$0xff] }
  0x4e   : > { %v5207_v21 = vld [vmem:[#allocation2 + $0x31] sm:$0xff]  ;;  %274 = vst.msk [vmem:[#allocation2 + $0xc1] sm:$0xff] %vm171_vm0, %v241_v18  ;;  %v5393_v18 = vld [vmem:[#allocation2 + $0x22] sm:$0xff] }
  0x4f   : > { %428 = vrot.lane.b32.xlu2 %v5207_v21, %s5004_s14  ;;  %276 = vst.msk [vmem:[#allocation2 + $0xd9] sm:$0xff] %vm171_vm0, %v243_v19  ;;  %v5238_v31 = vld [vmem:[#allocation2 + $0x79] sm:$0xff]  ;;  %v5338_v62 = vld [vmem:[#allocation2 + $0x30] sm:$0xff] }
  0x50   : > { %269 = vst.msk [vmem:[#allocation2 + $0x81] sm:$0xff] %vm171_vm0, %v236_v20  ;;  %v5240_v32 = vld [vmem:[#allocation2 + $0x91] sm:$0xff] }
  0x51   : > { %277 = vst.msk [vmem:[#allocation2 + $0xe1] sm:$0xff] %vm171_vm0, %v244_v22  ;;  %v5229_v28 = vld [vmem:[#allocation2 + $0x39] sm:$0xff]  ;;  %v5395_v19 = vld [vmem:[#allocation2 + $0x50] sm:$0xff] }
  0x52   : > { %279 = vst.msk [vmem:[#allocation2 + $0xf9] sm:$0xff] %vm171_vm0, %v246_v23  ;;  %v5256_v37 = vld [vmem:[#allocation2 + $0x99] sm:$0xff] }
  0x53   : > { %434 = vrot.lane.b32.xlu1 %v5215_v24, %s5004_s14  ;;  %272 = vst.msk [vmem:[#allocation2 + $0xa9] sm:$0xff] %vm171_vm0, %v239_v25  ;;  %v5258_v38 = vld [vmem:[#allocation2 + $0xb1] sm:$0xff]  ;;  %v5383_v14 = vld [vmem:[#allocation2 + $0x3a] sm:$0xff] }
  0x54   : > { %438 = vrot.lane.b32.xlu0 %v5219_v26, %s5004_s14  ;;  %280 = vst.msk [vmem:[#allocation2 + $0x109] sm:$0xff] %vm171_vm0, %v247_v27  ;;  %v5248_v34 = vld [vmem:[#allocation2 + $0x61] sm:$0xff]  ;;  %v5357_v7 = vld [vmem:[#allocation2 + $0x38] sm:$0xff] }
  0x55   : > { %282 = vst.msk [vmem:[#allocation2 + $0x121] sm:$0xff] %vm171_vm0, %v249_v29  ;;  %v5274_v43 = vld [vmem:[#allocation2 + $0xc1] sm:$0xff]  ;;  %v5366_v9 = vld [vmem:[#allocation2 + $0x32] sm:$0xff] }
  0x56   : > { %275 = vst.msk [vmem:[#allocation2 + $0xc9] sm:$0xff] %vm171_vm0, %v242_v30  ;;  %v5276_v44 = vld [vmem:[#allocation2 + $0xd9] sm:$0xff]  ;;  %v5399_v20 = vld [vmem:[#allocation2 + $0x68] sm:$0xff] }
  0x57   : > { %430 = vrot.lane.b32.xlu2 %v5229_v28, %s5004_s14  ;;  %283 = vst.msk [vmem:[#allocation2 + $0x129] sm:$0xff] %vm171_vm0, %v250_v33  ;;  %v5266_v40 = vld [vmem:[#allocation2 + $0x81] sm:$0xff]  ;;  %v5419_v33 = vld [vmem:[#allocation2 + $0x4a] sm:$0xff]  ;;  %v5477_v0 = vld [vmem:[#allocation2 + $0xd8] sm:$0xff] }
  0x58   : > { %285 = vst.msk [vmem:[#allocation2 + $0x141] sm:$0xff] %vm171_vm0, %v252_v35  ;;  %v5290_v48 = vld [vmem:[#allocation2 + $0xe1] sm:$0xff]  ;;  %v5422_v35 = vld [vmem:[#allocation2 + $0x78] sm:$0xff] }
  0x59   : > { %278 = vst.msk [vmem:[#allocation2 + $0xf1] sm:$0xff] %vm171_vm0, %v245_v36  ;;  %v5292_v49 = vld [vmem:[#allocation2 + $0xf9] sm:$0xff]  ;;  %v5407_v23 = vld [vmem:[#allocation2 + $0x62] sm:$0xff]  ;;  %v5426_v36 = vld [vmem:[#allocation2 + $0x90] sm:$0xff] }
  0x5a   : > { %286 = vst.msk [vmem:[#allocation2 + $0x151] sm:$0xff] %vm171_vm0, %v253_v39  ;;  %v5284_v46 = vld [vmem:[#allocation2 + $0xa9] sm:$0xff]  ;;  %v5381_v13 = vld [vmem:[#allocation2 + $0x60] sm:$0xff] }
  0x5b   : > { %440 = vrot.lane.b32.xlu1 %v5238_v31, %s5004_s14  ;;  %288 = vst.msk [vmem:[#allocation2 + $0x169] sm:$0xff] %vm171_vm0, %v255_v41  ;;  %v5304_v52 = vld [vmem:[#allocation2 + $0x109] sm:$0xff]  ;;  %v5405_v22 = vld [vmem:[#allocation2 + $0x80] sm:$0xff] }
  0x5c   : > { %444 = vrot.lane.b32.xlu0 %v5240_v32, %s5004_s14  ;;  %281 = vst.msk [vmem:[#allocation2 + $0x111] sm:$0xff] %vm171_vm0, %v248_v42  ;;  %v5306_v53 = vld [vmem:[#allocation2 + $0x121] sm:$0xff] }
  0x5d   : > { %289 = vst.msk [vmem:[#allocation2 + $0x171] sm:$0xff] %vm171_vm0, %v256_v45  ;;  %v5298_v50 = vld [vmem:[#allocation2 + $0xc9] sm:$0xff]  ;;  %v5411_v25 = vld [vmem:[#allocation2 + $0x7a] sm:$0xff] }
  0x5e   : > { %284 = vst.msk [vmem:[#allocation2 + $0x139] sm:$0xff] %vm171_vm0, %v251_v47  ;;  %v5316_v55 = vld [vmem:[#allocation2 + $0x129] sm:$0xff]  ;;  %v5438_v42 = vld [vmem:[#allocation2 + $0x9a] sm:$0xff] }
  0x5f   : > { %436 = vrot.lane.b32.xlu2 %v5248_v34, %s5004_s14  ;;  %287 = vst.msk [vmem:[#allocation2 + $0x159] sm:$0xff] %vm171_vm0, %v254_v51  ;;  %v5318_v56 = vld [vmem:[#allocation2 + $0x141] sm:$0xff]  ;;  %v5445_v47 = vld [vmem:[#allocation2 + $0x6a] sm:$0xff]  ;;  %v5447_v51 = vld [vmem:[#allocation2 + $0x98] sm:$0xff] }
  0x60   : > { %v5312_v54 = vld [vmem:[#allocation2 + $0xf1] sm:$0xff]  ;;  %324 = vst.msk [vmem:[#allocation3] sm:$0xff] %vm171_vm0, %v292_v61  ;;  %v5432_v39 = vld [vmem:[#allocation2 + $0xa8] sm:$0xff] }
  0x61   : > { %v5328_v58 = vld [vmem:[#allocation2 + $0x151] sm:$0xff]  ;;  %328 = vst.msk [vmem:[#allocation3 + $0x20] sm:$0xff] %vm171_vm0, %v5338_v62  ;;  %v5434_v41 = vld [vmem:[#allocation2 + $0x82] sm:$0xff] }
  0x62   : > { %8183 = vst [vmem:[#allocation6_spill] sm:$0xff] %v5328_v58  ;;  %v5330_v59 = vld [vmem:[#allocation2 + $0x169] sm:$0xff] }
  0x63   : > { %446 = vrot.lane.b32.xlu1 %v5256_v37, %s5004_s14  ;;  %v5324_v57 = vld [vmem:[#allocation2 + $0x111] sm:$0xff]  ;;  %326 = vst.msk [vmem:[#allocation3 + $0x10] sm:$0xff] %vm171_vm0, %v5353_v5 }
  0x64   : > { %450 = vrot.lane.b32.xlu0 %v5258_v38, %s5004_s14  ;;  %v5346_v1 = vld [vmem:[#allocation2 + $0x171] sm:$0xff]  ;;  %325 = vst.msk [vmem:[#allocation3 + $0x8] sm:$0xff] %vm171_vm0, %v293_v6  ;;  %v5463_v6 = vld [vmem:[#allocation2 + $0xc2] sm:$0xff] }
  0x65   : > { %v5336_v60 = vld [vmem:[#allocation2 + $0x139] sm:$0xff]  ;;  %8184 = vst [vmem:[#allocation7_spill] sm:$0xff] %v5346_v1  ;;  %v5451_v61 = vld [vmem:[#allocation2 + $0xb0] sm:$0xff] }
  0x66   : > { %v5351_v4 = vld [vmem:[#allocation2 + $0x159] sm:$0xff]  ;;  %329 = vst.msk [vmem:[#allocation3 + $0x28] sm:$0xff] %vm171_vm0, %v5357_v7 }
  0x67   : > { %442 = vrot.lane.b32.xlu2 %v5266_v40, %s5004_s14  ;;  %8185 = vst [vmem:[#allocation8_spill] sm:$0xff] %v5364_v8 }
  0x68   : > { %8186 = vst [vmem:[#allocation9_spill] sm:$0xff] %v5366_v9 }
  0x69   : > { %327 = vst.msk [vmem:[#allocation3 + $0x18] sm:$0xff] %vm171_vm0, %v5372_v11 }
  0x6a   : > { %330 = vst.msk [vmem:[#allocation3 + $0x30] sm:$0xff] %vm171_vm0, %v5376_v12 }
  0x6b   : > { %452 = vrot.lane.b32.xlu1 %v5274_v43, %s5004_s14  ;;  %8187 = vst [vmem:[#allocation10_spill] sm:$0xff] %v5383_v14 }
  0x6c   : > { %456 = vrot.lane.b32.xlu0 %v5276_v44, %s5004_s14  ;;  %332 = vst.msk [vmem:[#allocation3 + $0x40] sm:$0xff] %vm171_vm0, %v5381_v13 }
  0x6d   : > { %8188 = vst [vmem:[#allocation11_spill] sm:$0xff] %v5387_v16 }
  0x6e   : > { %8189 = vst [vmem:[#allocation12_spill] sm:$0xff] %v5393_v18 }
  0x6f   : > { %448 = vrot.lane.b32.xlu2 %v5284_v46, %s5004_s14  ;;  %331 = vst.msk [vmem:[#allocation3 + $0x38] sm:$0xff] %vm171_vm0, %v5395_v19 }
  0x70   : > { %333 = vst.msk [vmem:[#allocation3 + $0x48] sm:$0xff] %vm171_vm0, %v5399_v20 }
  0x71   : > { %8190 = vst [vmem:[#allocation13_spill] sm:$0xff] %v5407_v23 }
  0x72   : > { %335 = vst.msk [vmem:[#allocation3 + $0x58] sm:$0xff] %vm171_vm0, %v5405_v22 }
  0x73   : > { %458 = vrot.lane.b32.xlu1 %v5290_v48, %s5004_s14  ;;  %8191 = vst [vmem:[#allocation14_spill] sm:$0xff] %v5411_v25 }
  0x74   : > { %462 = vrot.lane.b32.xlu0 %v5292_v49, %s5004_s14  ;;  %8192 = vst [vmem:[#allocation15_spill] sm:$0xff] %v5419_v33 }
  0x75   : > { %334 = vst.msk [vmem:[#allocation3 + $0x50] sm:$0xff] %vm171_vm0, %v5422_v35 }
  0x76   : > { %336 = vst.msk [vmem:[#allocation3 + $0x60] sm:$0xff] %vm171_vm0, %v5426_v36 }
  0x77   : > { %454 = vrot.lane.b32.xlu2 %v5298_v50, %s5004_s14  ;;  %8193 = vst [vmem:[#allocation16_spill] sm:$0xff] %v5434_v41 }
  0x78   : > { %338 = vst.msk [vmem:[#allocation3 + $0x70] sm:$0xff] %vm171_vm0, %v5432_v39 }
  0x79   : > { %8194 = vst [vmem:[#allocation17_spill] sm:$0xff] %v5438_v42 }
  0x7a   : > { %8195 = vst [vmem:[#allocation18_spill] sm:$0xff] %v5445_v47 }
  0x7b   : > { %464 = vrot.lane.b32.xlu1 %v5304_v52, %s5004_s14  ;;  %337 = vst.msk [vmem:[#allocation3 + $0x68] sm:$0xff] %vm171_vm0, %v5447_v51 }
  0x7c   : > { %468 = vrot.lane.b32.xlu0 %v5306_v53, %s5004_s14  ;;  %339 = vst.msk [vmem:[#allocation3 + $0x78] sm:$0xff] %vm171_vm0, %v5451_v61 }
  0x7d   : > { %8197 = vst [vmem:[#allocation20_spill] sm:$0xff] %v5463_v6 }
  0x7e   : > { %342 = vst.msk [vmem:[#allocation3 + $0x90] sm:$0xff] %vm171_vm0, %v5477_v0 }
  0x7f   : > { %460 = vrot.lane.b32.xlu2 %v5312_v54, %s5004_s14 }
  0x83   : > { %470 = vrot.lane.b32.xlu1 %v5316_v55, %s5004_s14 }
  0x84   : > { %474 = vrot.lane.b32.xlu0 %v5318_v56, %s5004_s14 }
  0x87   : > { %466 = vrot.lane.b32.xlu2 %v5324_v57, %s5004_s14  ;;  %v421_v63 = vpop.permute.xlu0 %420 }
  0x88   : > { %517 = vst.msk [vmem:[#allocation3] sm:$0xff] %vm516_vm2, %v421_v63  ;;  %v5457_v63 = vld [vmem:[#allocation2 + $0xc8] sm:$0xff] }
  0x89   : > { %341 = vst.msk [vmem:[#allocation3 + $0x88] sm:$0xff] %vm171_vm0, %v5457_v63 }
  0x8b   : > { %476 = vrot.lane.b32.xlu1 %v5328_v58, %s5004_s14 }
  0x8c   : > { %480 = vrot.lane.b32.xlu0 %v5330_v59, %s5004_s14 }
  0x8f   : > { %472 = vrot.lane.b32.xlu2 %v5336_v60, %s5004_s14 }
  0x93   : > { %482 = vrot.lane.b32.xlu1 %v5346_v1, %s5004_s14 }
  0x94   : > { %615 = vrot.lane.b32.xlu0 %v550_v2, %s5005_s19  ;;  %v5459_v2 = vld [vmem:[#allocation2 + $0xaa] sm:$0xff] }
  0x95   : > { %8196 = vst [vmem:[#allocation19_spill] sm:$0xff] %v5459_v2 }
  0x97   : > { %478 = vrot.lane.b32.xlu2 %v5351_v4, %s5004_s14  ;;  %s5015_s14 = smov 64  }
  0x9b   : > { %617 = vrot.lane.b32.xlu1 %v5364_v8, %s5005_s19 }
  0x9c   : > { %621 = vrot.lane.b32.xlu0 %v5366_v9, %s5005_s19 }
  0x9f   : > { %613 = vrot.lane.b32.xlu2 %v549_v10, %s5005_s19 }
  0xa3   : > { %623 = vrot.lane.b32.xlu1 %v5383_v14, %s5005_s19 }
  0xa4   : > { %627 = vrot.lane.b32.xlu0 %v5387_v16, %s5005_s19 }
  0xa7   : > { %619 = vrot.lane.b32.xlu2 %v5393_v18, %s5005_s19  ;;  %v5585_v18 = vld [vmem:[#allocation2 + $0x168] sm:$0xff] }
  0xa8   : > { %354 = vst.msk [vmem:[#allocation3 + $0xf0] sm:$0xff] %vm171_vm0, %v5585_v18 }
  0xa9   : > { %v429_v27 = vpop.permute.xlu2 %428 }
  0xaa   : > { %521 = vst.msk [vmem:[#allocation3 + $0x20] sm:$0xff] %vm516_vm2, %v429_v27  ;;  %v425_v29 = vpop.permute.xlu1 %424  ;;  %v5470_v27 = vld [vmem:[#allocation2 + $0x92] sm:$0xff] }
  0xab   : > { %629 = vrot.lane.b32.xlu1 %v5407_v23, %s5005_s19  ;;  %519 = vst.msk [vmem:[#allocation3 + $0x10] sm:$0xff] %vm516_vm2, %v425_v29  ;;  %v423_v30 = vpop.permute.xlu0 %422  ;;  %v5472_v29 = vld [vmem:[#allocation2 + $0xc0] sm:$0xff] }
  0xac   : > { %633 = vrot.lane.b32.xlu0 %v5411_v25, %s5005_s19  ;;  %518 = vst.msk [vmem:[#allocation3 + $0x8] sm:$0xff] %vm516_vm2, %v423_v30 }
  0xad   : > { %8198 = vst [vmem:[#allocation21_spill] sm:$0xff] %v5470_v27 }
  0xae   : > { %340 = vst.msk [vmem:[#allocation3 + $0x80] sm:$0xff] %vm171_vm0, %v5472_v29 }
  0xaf   : > { %625 = vrot.lane.b32.xlu2 %v5419_v33, %s5005_s19  ;;  %v5558_v33 = vld [vmem:[#allocation2 + $0x140] sm:$0xff] }
  0xb0   : > { %351 = vst.msk [vmem:[#allocation3 + $0xd8] sm:$0xff] %vm171_vm0, %v5558_v33 }
  0xb1   : > { %v431_v45 = vpop.permute.xlu2 %430 }
  0xb2   : > { %522 = vst.msk [vmem:[#allocation3 + $0x28] sm:$0xff] %vm516_vm2, %v431_v45 }
  0xb3   : > { %635 = vrot.lane.b32.xlu1 %v5434_v41, %s5005_s19 }
  0xb4   : > { %639 = vrot.lane.b32.xlu0 %v5438_v42, %s5005_s19 }
  0xb7   : > { %631 = vrot.lane.b32.xlu2 %v5445_v47, %s5005_s19  ;;  %v5531_v47 = vld [vmem:[#allocation2 + $0x120] sm:$0xff] }
  0xb8   : > { %348 = vst.msk [vmem:[#allocation3 + $0xc0] sm:$0xff] %vm171_vm0, %v5531_v47 }
  0xb9   : > { %v437_v10 = vpop.permute.xlu2 %436 }
  0xba   : > { %525 = vst.msk [vmem:[#allocation3 + $0x40] sm:$0xff] %vm516_vm2, %v437_v10  ;;  %v5482_v10 = vld [vmem:[#allocation2 + $0xf0] sm:$0xff] }
  0xbb   : > { %641 = vrot.lane.b32.xlu1 %v5459_v2, %s5005_s19  ;;  %v5484_v2 = vld [vmem:[#allocation2 + $0xca] sm:$0xff]  ;;  %344 = vst.msk [vmem:[#allocation3 + $0xa0] sm:$0xff] %vm171_vm0, %v5482_v10 }
  0xbc   : > { %645 = vrot.lane.b32.xlu0 %v5463_v6, %s5005_s19  ;;  %8199 = vst [vmem:[#allocation22_spill] sm:$0xff] %v5484_v2  ;;  %v5488_v6 = vld [vmem:[#allocation2 + $0xe2] sm:$0xff] }
  0xbd   : > { %v427_v30 = vpop.permute.xlu1 %426  ;;  %8200 = vst [vmem:[#allocation23_spill] sm:$0xff] %v5488_v6 }
  0xbe   : > { %520 = vst.msk [vmem:[#allocation3 + $0x18] sm:$0xff] %vm516_vm2, %v427_v30  ;;  %v433_v45 = vpop.permute.xlu0 %432  ;;  %v5497_v30 = vld [vmem:[#allocation2 + $0xb2] sm:$0xff] }
  0xbf   : > { %523 = vst.msk [vmem:[#allocation3 + $0x30] sm:$0xff] %vm516_vm2, %v433_v45  ;;  %637 = vrot.lane.b32.xlu2 %v5470_v27, %s5005_s19  ;;  %v5499_v45 = vld [vmem:[#allocation2 + $0xe0] sm:$0xff]  ;;  %v5504_v27 = vld [vmem:[#allocation2 + $0xf8] sm:$0xff] }
  0xc0   : > { %8201 = vst [vmem:[#allocation24_spill] sm:$0xff] %v5497_v30 }
  0xc1   : > { %v443_v41 = vpop.permute.xlu2 %442  ;;  %343 = vst.msk [vmem:[#allocation3 + $0x98] sm:$0xff] %vm171_vm0, %v5499_v45 }
  0xc2   : > { %528 = vst.msk [vmem:[#allocation3 + $0x58] sm:$0xff] %vm516_vm2, %v443_v41  ;;  %v5509_v41 = vld [vmem:[#allocation2 + $0x110] sm:$0xff] }
  0xc3   : > { %647 = vrot.lane.b32.xlu1 %v5484_v2, %s5005_s19  ;;  %v5511_v2 = vld [vmem:[#allocation2 + $0xf2] sm:$0xff]  ;;  %345 = vst.msk [vmem:[#allocation3 + $0xa8] sm:$0xff] %vm171_vm0, %v5504_v27 }
  0xc4   : > { %651 = vrot.lane.b32.xlu0 %v5488_v6, %s5005_s19  ;;  %8202 = vst [vmem:[#allocation25_spill] sm:$0xff] %v5511_v2  ;;  %v5515_v6 = vld [vmem:[#allocation2 + $0x10a] sm:$0xff] }
  0xc5   : > { %v435_v42 = vpop.permute.xlu1 %434  ;;  %8203 = vst [vmem:[#allocation26_spill] sm:$0xff] %v5515_v6 }
  0xc6   : > { %524 = vst.msk [vmem:[#allocation3 + $0x38] sm:$0xff] %vm516_vm2, %v435_v42  ;;  %v439_v23 = vpop.permute.xlu0 %438  ;;  %v5526_v42 = vld [vmem:[#allocation2 + $0x108] sm:$0xff] }
  0xc7   : > { %526 = vst.msk [vmem:[#allocation3 + $0x48] sm:$0xff] %vm516_vm2, %v439_v23  ;;  %643 = vrot.lane.b32.xlu2 %v5497_v30, %s5005_s19  ;;  %v5524_v23 = vld [vmem:[#allocation2 + $0xda] sm:$0xff] }
  0xc8   : > { %347 = vst.msk [vmem:[#allocation3 + $0xb8] sm:$0xff] %vm171_vm0, %v5509_v41 }
  0xc9   : > { %v449_v25 = vpop.permute.xlu2 %448  ;;  %8204 = vst [vmem:[#allocation27_spill] sm:$0xff] %v5524_v23 }
  0xca   : > { %531 = vst.msk [vmem:[#allocation3 + $0x70] sm:$0xff] %vm516_vm2, %v449_v25  ;;  %v5536_v25 = vld [vmem:[#allocation2 + $0x138] sm:$0xff] }
  0xcb   : > { %653 = vrot.lane.b32.xlu1 %v5511_v2, %s5005_s19  ;;  %346 = vst.msk [vmem:[#allocation3 + $0xb0] sm:$0xff] %vm171_vm0, %v5526_v42  ;;  %v5538_v2 = vld [vmem:[#allocation2 + $0x112] sm:$0xff] }
  0xcc   : > { %657 = vrot.lane.b32.xlu0 %v5515_v6, %s5005_s19  ;;  %8205 = vst [vmem:[#allocation28_spill] sm:$0xff] %v5538_v2  ;;  %v5542_v6 = vld [vmem:[#allocation2 + $0x12a] sm:$0xff] }
  0xcd   : > { %v441_v30 = vpop.permute.xlu1 %440  ;;  %8206 = vst [vmem:[#allocation29_spill] sm:$0xff] %v5542_v6 }
  0xce   : > { %527 = vst.msk [vmem:[#allocation3 + $0x50] sm:$0xff] %vm516_vm2, %v441_v30  ;;  %v445_v14 = vpop.permute.xlu0 %444  ;;  %v5553_v30 = vld [vmem:[#allocation2 + $0x128] sm:$0xff] }
  0xcf   : > { %529 = vst.msk [vmem:[#allocation3 + $0x60] sm:$0xff] %vm516_vm2, %v445_v14  ;;  %649 = vrot.lane.b32.xlu2 %v5524_v23, %s5005_s19  ;;  %v5551_v14 = vld [vmem:[#allocation2 + $0xfa] sm:$0xff] }
  0xd0   : > { %350 = vst.msk [vmem:[#allocation3 + $0xd0] sm:$0xff] %vm171_vm0, %v5536_v25 }
  0xd1   : > { %v455_v16 = vpop.permute.xlu2 %454  ;;  %8207 = vst [vmem:[#allocation30_spill] sm:$0xff] %v5551_v14 }
  0xd2   : > { %534 = vst.msk [vmem:[#allocation3 + $0x88] sm:$0xff] %vm516_vm2, %v455_v16  ;;  %v5563_v16 = vld [vmem:[#allocation2 + $0x158] sm:$0xff] }
  0xd3   : > { %659 = vrot.lane.b32.xlu1 %v5538_v2, %s5005_s19  ;;  %349 = vst.msk [vmem:[#allocation3 + $0xc8] sm:$0xff] %vm171_vm0, %v5553_v30  ;;  %v5565_v2 = vld [vmem:[#allocation2 + $0x13a] sm:$0xff] }
  0xd4   : > { %663 = vrot.lane.b32.xlu0 %v5542_v6, %s5005_s19  ;;  %8208 = vst [vmem:[#allocation31_spill] sm:$0xff] %v5565_v2  ;;  %v5569_v6 = vld [vmem:[#allocation2 + $0x152] sm:$0xff] }
  0xd5   : > { %v447_v23 = vpop.permute.xlu1 %446  ;;  %8209 = vst [vmem:[#allocation32_spill] sm:$0xff] %v5569_v6 }
  0xd6   : > { %530 = vst.msk [vmem:[#allocation3 + $0x68] sm:$0xff] %vm516_vm2, %v447_v23  ;;  %v451_v8 = vpop.permute.xlu0 %450  ;;  %v5580_v23 = vld [vmem:[#allocation2 + $0x150] sm:$0xff] }
  0xd7   : > { %532 = vst.msk [vmem:[#allocation3 + $0x78] sm:$0xff] %vm516_vm2, %v451_v8  ;;  %655 = vrot.lane.b32.xlu2 %v5551_v14, %s5005_s19  ;;  %v5578_v8 = vld [vmem:[#allocation2 + $0x122] sm:$0xff] }
  0xd8   : > { %353 = vst.msk [vmem:[#allocation3 + $0xe8] sm:$0xff] %vm171_vm0, %v5563_v16 }
  0xd9   : > { %v461_v9 = vpop.permute.xlu2 %460  ;;  %8210 = vst [vmem:[#allocation33_spill] sm:$0xff] %v5578_v8 }
  0xda   : > { %537 = vst.msk [vmem:[#allocation3 + $0xa0] sm:$0xff] %vm516_vm2, %v461_v9  ;;  %v5590_v9 = vld [vmem:[#allocation2 + $0x15a] sm:$0xff] }
  0xdb   : > { %665 = vrot.lane.b32.xlu1 %v5565_v2, %s5005_s19  ;;  %352 = vst.msk [vmem:[#allocation3 + $0xe0] sm:$0xff] %vm171_vm0, %v5580_v23  ;;  %v5594_v2 = vld [vmem:[#allocation2 + $0x172] sm:$0xff] }
  0xdc   : > { %669 = vrot.lane.b32.xlu0 %v5569_v6, %s5005_s19  ;;  %8211 = vst [vmem:[#allocation34_spill] sm:$0xff] %v5590_v9 }
  0xdd   : > { %v453_v14 = vpop.permute.xlu1 %452  ;;  %8212 = vst [vmem:[#allocation35_spill] sm:$0xff] %v5594_v2 }
  0xde   : > { %533 = vst.msk [vmem:[#allocation3 + $0x80] sm:$0xff] %vm516_vm2, %v453_v14  ;;  %v457_v1 = vpop.permute.xlu0 %456  ;;  %v5603_v14 = vld [vmem:[#allocation2 + $0x170] sm:$0xff] }
  0xdf   : > { %535 = vst.msk [vmem:[#allocation3 + $0x90] sm:$0xff] %vm516_vm2, %v457_v1  ;;  %661 = vrot.lane.b32.xlu2 %v5578_v8, %s5005_s19  ;;  %v5601_v1 = vld [vmem:[#allocation2 + $0x142] sm:$0xff] }
  0xe0   : > { %355 = vst.msk [vmem:[#allocation3 + $0xf8] sm:$0xff] %vm171_vm0, %v5603_v14 }
  0xe1   : > { %v467_v6 = vpop.permute.xlu2 %466 }
  0xe2   : > { %540 = vst.msk [vmem:[#allocation3 + $0xb8] sm:$0xff] %vm516_vm2, %v467_v6 }
  0xe3   : > { %671 = vrot.lane.b32.xlu1 %v5590_v9, %s5005_s19  ;;  %v5616_v9 = vld [vmem:[#allocation2 + $0x16a] sm:$0xff] }
  0xe4   : > { %675 = vrot.lane.b32.xlu0 %v5594_v2, %s5005_s19 }
  0xe5   : > { %v459_v8 = vpop.permute.xlu1 %458 }
  0xe6   : > { %536 = vst.msk [vmem:[#allocation3 + $0x98] sm:$0xff] %vm516_vm2, %v459_v8  ;;  %v463_v58 = vpop.permute.xlu0 %462 }
  0xe7   : > { %538 = vst.msk [vmem:[#allocation3 + $0xa8] sm:$0xff] %vm516_vm2, %v463_v58  ;;  %667 = vrot.lane.b32.xlu2 %v5601_v1, %s5005_s19 }
  0xe9   : > { %v473_v6 = vpop.permute.xlu2 %472 }
  0xea   : > { %543 = vst.msk [vmem:[#allocation3 + $0xd0] sm:$0xff] %vm516_vm2, %v473_v6 }
  0xeb   : > { %806 = vrot.lane.b32.xlu1 %v5353_v5, %s5006_s20 }
  0xec   : > { %810 = vrot.lane.b32.xlu0 %v5338_v62, %s5006_s20 }
  0xed   : > { %v465_v2 = vpop.permute.xlu1 %464 }
  0xee   : > { %539 = vst.msk [vmem:[#allocation3 + $0xb0] sm:$0xff] %vm516_vm2, %v465_v2  ;;  %v469_v8 = vpop.permute.xlu0 %468 }
  0xef   : > { %541 = vst.msk [vmem:[#allocation3 + $0xc0] sm:$0xff] %vm516_vm2, %v469_v8  ;;  %673 = vrot.lane.b32.xlu2 %v5616_v9, %s5005_s19 }
  0xf1   : > { %v479_v58 = vpop.permute.xlu2 %478 }
  0xf2   : > { %546 = vst.msk [vmem:[#allocation3 + $0xe8] sm:$0xff] %vm516_vm2, %v479_v58 }
  0xf3   : > { %812 = vrot.lane.b32.xlu1 %v5357_v7, %s5006_s20 }
  0xf4   : > { %816 = vrot.lane.b32.xlu0 %v5395_v19, %s5006_s20 }
  0xf5   : > { %v471_v62 = vpop.permute.xlu1 %470 }
  0xf6   : > { %542 = vst.msk [vmem:[#allocation3 + $0xc8] sm:$0xff] %vm516_vm2, %v471_v62  ;;  %v475_v5 = vpop.permute.xlu0 %474 }
  0xf7   : > { %544 = vst.msk [vmem:[#allocation3 + $0xd8] sm:$0xff] %vm516_vm2, %v475_v5  ;;  %808 = vrot.lane.b32.xlu2 %v5372_v11, %s5006_s20 }
  0xf9   : > { %v614_v2 = vpop.permute.xlu2 %613 }
  0xfa   : > { %710 = vst.msk [vmem:[#allocation3] sm:$0xff] %vm709_vm3, %v614_v2  ;;  %v257_v2 = vld [vmem:[%s5119_s18 + $0xf0] sm:$0xff] }
  0xfb   : > { %818 = vrot.lane.b32.xlu1 %v5381_v13, %s5006_s20  ;;  %290 = vst.msk [vmem:[#allocation2 + $0x181] sm:$0xff] %vm171_vm0, %v257_v2 }
  0xfc   : > { %822 = vrot.lane.b32.xlu0 %v5422_v35, %s5006_s20 }
  0xfd   : > { %v477_v7 = vpop.permute.xlu1 %476 }
  0xfe   : > { %545 = vst.msk [vmem:[#allocation3 + $0xe0] sm:$0xff] %vm516_vm2, %v477_v7  ;;  %v481_v6 = vpop.permute.xlu0 %480 }
  0xff   : > { %547 = vst.msk [vmem:[#allocation3 + $0xf0] sm:$0xff] %vm516_vm2, %v481_v6  ;;  %814 = vrot.lane.b32.xlu2 %v5376_v12, %s5006_s20 }
 0x101   : > { %v620_v11 = vpop.permute.xlu2 %619 }
 0x102   : > { %713 = vst.msk [vmem:[#allocation3 + $0x18] sm:$0xff] %vm709_vm3, %v620_v11 }
 0x103   : > { %824 = vrot.lane.b32.xlu1 %v5405_v22, %s5006_s20 }
 0x104   : > { %828 = vrot.lane.b32.xlu0 %v5447_v51, %s5006_s20 }
 0x105   : > { %v483_v13 = vpop.permute.xlu1 %482 }
 0x106   : > { %548 = vst.msk [vmem:[#allocation3 + $0xf8] sm:$0xff] %vm516_vm2, %v483_v13  ;;  %v616_v8 = vpop.permute.xlu0 %615 }
 0x107   : > { %711 = vst.msk [vmem:[#allocation3 + $0x8] sm:$0xff] %vm709_vm3, %v616_v8  ;;  %820 = vrot.lane.b32.xlu2 %v5399_v20, %s5006_s20 }
 0x109   : > { %v626_v58 = vpop.permute.xlu2 %625 }
 0x10a   : > { %716 = vst.msk [vmem:[#allocation3 + $0x30] sm:$0xff] %vm709_vm3, %v626_v58 }
 0x10b   : > { %830 = vrot.lane.b32.xlu1 %v5432_v39, %s5006_s20 }
 0x10c   : > { %834 = vrot.lane.b32.xlu0 %v5472_v29, %s5006_s20 }
 0x10d   : > { %v618_v22 = vpop.permute.xlu1 %617 }
 0x10e   : > { %712 = vst.msk [vmem:[#allocation3 + $0x10] sm:$0xff] %vm709_vm3, %v618_v22  ;;  %v622_v62 = vpop.permute.xlu0 %621 }
 0x10f   : > { %714 = vst.msk [vmem:[#allocation3 + $0x20] sm:$0xff] %vm709_vm3, %v622_v62  ;;  %826 = vrot.lane.b32.xlu2 %v5426_v36, %s5006_s20 }
 0x111   : > { %v632_v5 = vpop.permute.xlu2 %631 }
 0x112   : > { %719 = vst.msk [vmem:[#allocation3 + $0x48] sm:$0xff] %vm709_vm3, %v632_v5 }
 0x113   : > { %836 = vrot.lane.b32.xlu1 %v5457_v63, %s5006_s20 }
 0x114   : > { %840 = vrot.lane.b32.xlu0 %v5499_v45, %s5006_s20 }
 0x115   : > { %v624_v39 = vpop.permute.xlu1 %623 }
 0x116   : > { %715 = vst.msk [vmem:[#allocation3 + $0x28] sm:$0xff] %vm709_vm3, %v624_v39  ;;  %v628_v7 = vpop.permute.xlu0 %627 }
 0x117   : > { %717 = vst.msk [vmem:[#allocation3 + $0x38] sm:$0xff] %vm709_vm3, %v628_v7  ;;  %832 = vrot.lane.b32.xlu2 %v5451_v61, %s5006_s20  ;;  %v5707_v7 = vld [vmem:[#allocation2 + $0x180] sm:$0xff] }
 0x119   : > { %v638_v6 = vpop.permute.xlu2 %637 }
 0x11a   : > { %722 = vst.msk [vmem:[#allocation3 + $0x60] sm:$0xff] %vm709_vm3, %v638_v6 }
 0x11b   : > { %842 = vrot.lane.b32.xlu1 %v5482_v10, %s5006_s20  ;;  %v258_v10 = vld [vmem:[%s5119_s18 + $0xf8] sm:$0xff] }
 0x11c   : > { %846 = vrot.lane.b32.xlu0 %v5526_v42, %s5006_s20  ;;  %291 = vst.msk [vmem:[#allocation2 + $0x189] sm:$0xff] %vm171_vm0, %v258_v10 }
 0x11d   : > { %v630_v63 = vpop.permute.xlu1 %629 }
 0x11e   : > { %718 = vst.msk [vmem:[#allocation3 + $0x40] sm:$0xff] %vm709_vm3, %v630_v63  ;;  %v634_v11 = vpop.permute.xlu0 %633 }
 0x11f   : > { %720 = vst.msk [vmem:[#allocation3 + $0x50] sm:$0xff] %vm709_vm3, %v634_v11  ;;  %838 = vrot.lane.b32.xlu2 %v5477_v0, %s5006_s20 }
 0x121   : > { %v644_v13 = vpop.permute.xlu2 %643 }
 0x122   : > { %725 = vst.msk [vmem:[#allocation3 + $0x78] sm:$0xff] %vm709_vm3, %v644_v13 }
 0x123   : > { %848 = vrot.lane.b32.xlu1 %v5509_v41, %s5006_s20  ;;  %v5723_v10 = vld [vmem:[#allocation2 + $0x188] sm:$0xff] }
 0x124   : > { %852 = vrot.lane.b32.xlu0 %v5553_v30, %s5006_s20 }
 0x125   : > { %v636_v8 = vpop.permute.xlu1 %635 }
 0x126   : > { %721 = vst.msk [vmem:[#allocation3 + $0x58] sm:$0xff] %vm709_vm3, %v636_v8  ;;  %v640_v58 = vpop.permute.xlu0 %639 }
 0x127   : > { %723 = vst.msk [vmem:[#allocation3 + $0x68] sm:$0xff] %vm709_vm3, %v640_v58  ;;  %844 = vrot.lane.b32.xlu2 %v5504_v27, %s5006_s20 }
 0x129   : > { %v650_v22 = vpop.permute.xlu2 %649 }
 0x12a   : > { %728 = vst.msk [vmem:[#allocation3 + $0x90] sm:$0xff] %vm709_vm3, %v650_v22 }
 0x12b   : > { %854 = vrot.lane.b32.xlu1 %v5536_v25, %s5006_s20 }
 0x12c   : > { %858 = vrot.lane.b32.xlu0 %v5580_v23, %s5006_s20 }
 0x12d   : > { %v642_v41 = vpop.permute.xlu1 %641 }
 0x12e   : > { %724 = vst.msk [vmem:[#allocation3 + $0x70] sm:$0xff] %vm709_vm3, %v642_v41  ;;  %v646_v62 = vpop.permute.xlu0 %645 }
 0x12f   : > { %726 = vst.msk [vmem:[#allocation3 + $0x80] sm:$0xff] %vm709_vm3, %v646_v62  ;;  %850 = vrot.lane.b32.xlu2 %v5531_v47, %s5006_s20  ;;  %v8213_v62 = vld [vmem:[#allocation6_spill] sm:$0xff] }
 0x131   : > { %v656_v5 = vpop.permute.xlu2 %655 }
 0x132   : > { %731 = vst.msk [vmem:[#allocation3 + $0xa8] sm:$0xff] %vm709_vm3, %v656_v5 }
 0x133   : > { %860 = vrot.lane.b32.xlu1 %v5563_v16, %s5006_s20 }
 0x134   : > { %864 = vrot.lane.b32.xlu0 %v5603_v14, %s5006_s20 }
 0x135   : > { %v648_v2 = vpop.permute.xlu1 %647 }
 0x136   : > { %727 = vst.msk [vmem:[#allocation3 + $0x88] sm:$0xff] %vm709_vm3, %v648_v2  ;;  %v652_v39 = vpop.permute.xlu0 %651 }
 0x137   : > { %729 = vst.msk [vmem:[#allocation3 + $0x98] sm:$0xff] %vm709_vm3, %v652_v39  ;;  %856 = vrot.lane.b32.xlu2 %v5558_v33, %s5006_s20 }
 0x139   : > { %v662_v6 = vpop.permute.xlu2 %661 }
 0x13a   : > { %734 = vst.msk [vmem:[#allocation3 + $0xc0] sm:$0xff] %vm709_vm3, %v662_v6  ;;  %v8215_v6 = vld [vmem:[#allocation7_spill] sm:$0xff] }
 0x13b   : > { %866 = vrot.lane.b32.xlu1 %v5707_v7, %s5006_s20 }
 0x13c   : > { %999 = vrot.lane.b32.xlu0 %v5145_v3, %s5007_s21 }
 0x13d   : > { %v654_v63 = vpop.permute.xlu1 %653 }
 0x13e   : > { %730 = vst.msk [vmem:[#allocation3 + $0xa0] sm:$0xff] %vm709_vm3, %v654_v63  ;;  %v658_v11 = vpop.permute.xlu0 %657 }
 0x13f   : > { %732 = vst.msk [vmem:[#allocation3 + $0xb0] sm:$0xff] %vm709_vm3, %v658_v11  ;;  %862 = vrot.lane.b32.xlu2 %v5585_v18, %s5006_s20  ;;  %v8216_v11 = vld [vmem:[#allocation9_spill] sm:$0xff] }
 0x141   : > { %v668_v13 = vpop.permute.xlu2 %667 }
 0x142   : > { %737 = vst.msk [vmem:[#allocation3 + $0xd8] sm:$0xff] %vm709_vm3, %v668_v13  ;;  %v8217_v13 = vld [vmem:[#allocation15_spill] sm:$0xff] }
 0x143   : > { %1001 = vrot.lane.b32.xlu1 %v5191_v15, %s5007_s21 }
 0x144   : > { %1005 = vrot.lane.b32.xlu0 %v5229_v28, %s5007_s21 }
 0x145   : > { %v660_v3 = vpop.permute.xlu1 %659 }
 0x146   : > { %733 = vst.msk [vmem:[#allocation3 + $0xb8] sm:$0xff] %vm709_vm3, %v660_v3  ;;  %v664_v8 = vpop.permute.xlu0 %663 }
 0x147   : > { %735 = vst.msk [vmem:[#allocation3 + $0xc8] sm:$0xff] %vm709_vm3, %v664_v8  ;;  %868 = vrot.lane.b32.xlu2 %v5723_v10, %s5006_s20 }
 0x149   : > { %v674_v58 = vpop.permute.xlu2 %673 }
 0x14a   : > { %740 = vst.msk [vmem:[#allocation3 + $0xf0] sm:$0xff] %vm709_vm3, %v674_v58  ;;  %v8218_v58 = vld [vmem:[#allocation8_spill] sm:$0xff] }
 0x14b   : > { %1007 = vrot.lane.b32.xlu1 %v5197_v17, %s5007_s21 }
 0x14c   : > { %1011 = vrot.lane.b32.xlu0 %v5248_v34, %s5007_s21 }
 0x14d   : > { %v666_v15 = vpop.permute.xlu1 %665 }
 0x14e   : > { %736 = vst.msk [vmem:[#allocation3 + $0xd0] sm:$0xff] %vm709_vm3, %v666_v15  ;;  %v670_v28 = vpop.permute.xlu0 %669 }
 0x14f   : > { %738 = vst.msk [vmem:[#allocation3 + $0xe0] sm:$0xff] %vm709_vm3, %v670_v28  ;;  %1003 = vrot.lane.b32.xlu2 %v5207_v21, %s5007_s21  ;;  %v8219_v28 = vld [vmem:[#allocation11_spill] sm:$0xff] }
 0x151   : > { %v809_v22 = vpop.permute.xlu2 %808 }
 0x152   : > { %904 = vst.msk [vmem:[#allocation3 + $0x8] sm:$0xff] %vm902_vm4, %v809_v22  ;;  %v8220_v22 = vld [vmem:[#allocation18_spill] sm:$0xff] }
 0x153   : > { %1013 = vrot.lane.b32.xlu1 %v5219_v26, %s5007_s21 }
 0x154   : > { %1017 = vrot.lane.b32.xlu0 %v5266_v40, %s5007_s21 }
 0x155   : > { %v672_v17 = vpop.permute.xlu1 %671 }
 0x156   : > { %739 = vst.msk [vmem:[#allocation3 + $0xe8] sm:$0xff] %vm709_vm3, %v672_v17  ;;  %v676_v34 = vpop.permute.xlu0 %675 }
 0x157   : > { %741 = vst.msk [vmem:[#allocation3 + $0xf8] sm:$0xff] %vm709_vm3, %v676_v34  ;;  %1009 = vrot.lane.b32.xlu2 %v5215_v24, %s5007_s21 }
 0x159   : > { %v815_v21 = vpop.permute.xlu2 %814 }
 0x15a   : > { %907 = vst.msk [vmem:[#allocation3 + $0x20] sm:$0xff] %vm902_vm4, %v815_v21  ;;  %v8221_v21 = vld [vmem:[#allocation10_spill] sm:$0xff] }
 0x15b   : > { %1019 = vrot.lane.b32.xlu1 %v5240_v32, %s5007_s21 }
 0x15c   : > { %1023 = vrot.lane.b32.xlu0 %v5284_v46, %s5007_s21 }
 0x15d   : > { %v807_v26 = vpop.permute.xlu1 %806 }
 0x15e   : > { %903 = vst.msk [vmem:[#allocation3] sm:$0xff] %vm902_vm4, %v807_v26  ;;  %v811_v40 = vpop.permute.xlu0 %810 }
 0x15f   : > { %905 = vst.msk [vmem:[#allocation3 + $0x10] sm:$0xff] %vm902_vm4, %v811_v40  ;;  %1015 = vrot.lane.b32.xlu2 %v5238_v31, %s5007_s21  ;;  %v8222_v40 = vld [vmem:[#allocation14_spill] sm:$0xff] }
 0x161   : > { %v821_v41 = vpop.permute.xlu2 %820 }
 0x162   : > { %910 = vst.msk [vmem:[#allocation3 + $0x38] sm:$0xff] %vm902_vm4, %v821_v41  ;;  %v8223_v41 = vld [vmem:[#allocation21_spill] sm:$0xff] }
 0x163   : > { %1025 = vrot.lane.b32.xlu1 %v5258_v38, %s5007_s21 }
 0x164   : > { %1029 = vrot.lane.b32.xlu0 %v5298_v50, %s5007_s21 }
 0x165   : > { %v813_v24 = vpop.permute.xlu1 %812 }
 0x166   : > { %906 = vst.msk [vmem:[#allocation3 + $0x18] sm:$0xff] %vm902_vm4, %v813_v24  ;;  %v817_v32 = vpop.permute.xlu0 %816 }
 0x167   : > { %908 = vst.msk [vmem:[#allocation3 + $0x28] sm:$0xff] %vm902_vm4, %v817_v32  ;;  %1021 = vrot.lane.b32.xlu2 %v5256_v37, %s5007_s21 }
 0x169   : > { %v827_v46 = vpop.permute.xlu2 %826 }
 0x16a   : > { %913 = vst.msk [vmem:[#allocation3 + $0x50] sm:$0xff] %vm902_vm4, %v827_v46  ;;  %v8224_v46 = vld [vmem:[#allocation13_spill] sm:$0xff] }
 0x16b   : > { %1031 = vrot.lane.b32.xlu1 %v5276_v44, %s5007_s21 }
 0x16c   : > { %1035 = vrot.lane.b32.xlu0 %v5312_v54, %s5007_s21 }
 0x16d   : > { %v819_v31 = vpop.permute.xlu1 %818 }
 0x16e   : > { %909 = vst.msk [vmem:[#allocation3 + $0x30] sm:$0xff] %vm902_vm4, %v819_v31  ;;  %v823_v38 = vpop.permute.xlu0 %822 }
 0x16f   : > { %911 = vst.msk [vmem:[#allocation3 + $0x40] sm:$0xff] %vm902_vm4, %v823_v38  ;;  %1027 = vrot.lane.b32.xlu2 %v5274_v43, %s5007_s21  ;;  %v8225_v38 = vld [vmem:[#allocation17_spill] sm:$0xff] }
 0x171   : > { %v833_v50 = vpop.permute.xlu2 %832 }
 0x172   : > { %916 = vst.msk [vmem:[#allocation3 + $0x68] sm:$0xff] %vm902_vm4, %v833_v50  ;;  %v8226_v50 = vld [vmem:[#allocation24_spill] sm:$0xff] }
 0x173   : > { %1037 = vrot.lane.b32.xlu1 %v5292_v49, %s5007_s21 }
 0x174   : > { %1041 = vrot.lane.b32.xlu0 %v5324_v57, %s5007_s21 }
 0x175   : > { %v825_v37 = vpop.permute.xlu1 %824 }
 0x176   : > { %912 = vst.msk [vmem:[#allocation3 + $0x48] sm:$0xff] %vm902_vm4, %v825_v37  ;;  %v829_v44 = vpop.permute.xlu0 %828 }
 0x177   : > { %914 = vst.msk [vmem:[#allocation3 + $0x58] sm:$0xff] %vm902_vm4, %v829_v44  ;;  %1033 = vrot.lane.b32.xlu2 %v5290_v48, %s5007_s21 }
 0x179   : > { %v839_v54 = vpop.permute.xlu2 %838 }
 0x17a   : > { %919 = vst.msk [vmem:[#allocation3 + $0x80] sm:$0xff] %vm902_vm4, %v839_v54  ;;  %v8227_v54 = vld [vmem:[#allocation16_spill] sm:$0xff] }
 0x17b   : > { %1043 = vrot.lane.b32.xlu1 %v5306_v53, %s5007_s21 }
 0x17c   : > { %1047 = vrot.lane.b32.xlu0 %v5336_v60, %s5007_s21  ;;  %v5801_v60 = vld [vmem:[#allocation2 + $0x181] sm:$0xff] }
 0x17d   : > { %v831_v43 = vpop.permute.xlu1 %830 }
 0x17e   : > { %915 = vst.msk [vmem:[#allocation3 + $0x60] sm:$0xff] %vm902_vm4, %v831_v43  ;;  %v835_v49 = vpop.permute.xlu0 %834 }
 0x17f   : > { %917 = vst.msk [vmem:[#allocation3 + $0x70] sm:$0xff] %vm902_vm4, %v835_v49  ;;  %1039 = vrot.lane.b32.xlu2 %v5304_v52, %s5007_s21  ;;  %v8228_v49 = vld [vmem:[#allocation20_spill] sm:$0xff] }
 0x181   : > { %v845_v57 = vpop.permute.xlu2 %844 }
 0x182   : > { %922 = vst.msk [vmem:[#allocation3 + $0x98] sm:$0xff] %vm902_vm4, %v845_v57  ;;  %v8229_v57 = vld [vmem:[#allocation27_spill] sm:$0xff] }
 0x183   : > { %1049 = vrot.lane.b32.xlu1 %v5318_v56, %s5007_s21 }
 0x184   : > { %1053 = vrot.lane.b32.xlu0 %v5351_v4, %s5007_s21 }
 0x185   : > { %v837_v48 = vpop.permute.xlu1 %836 }
 0x186   : > { %918 = vst.msk [vmem:[#allocation3 + $0x78] sm:$0xff] %vm902_vm4, %v837_v48  ;;  %v841_v53 = vpop.permute.xlu0 %840 }
 0x187   : > { %920 = vst.msk [vmem:[#allocation3 + $0x88] sm:$0xff] %vm902_vm4, %v841_v53  ;;  %1045 = vrot.lane.b32.xlu2 %v5316_v55, %s5007_s21  ;;  %v5812_v55 = vld [vmem:[#allocation2 + $0x189] sm:$0xff] }
 0x189   : > { %v851_v52 = vpop.permute.xlu2 %850 }
 0x18a   : > { %925 = vst.msk [vmem:[#allocation3 + $0xb0] sm:$0xff] %vm902_vm4, %v851_v52  ;;  %v8230_v52 = vld [vmem:[#allocation19_spill] sm:$0xff] }
 0x18b   : > { %1055 = vrot.lane.b32.xlu1 %v5330_v59, %s5007_s21  ;;  %v8214_v59 = vld [vmem:[#allocation12_spill] sm:$0xff] }
 0x18c   : > { %1059 = vrot.lane.b32.xlu0 %v5801_v60, %s5007_s21 }
 0x18d   : > { %v843_v56 = vpop.permute.xlu1 %842 }
 0x18e   : > { %921 = vst.msk [vmem:[#allocation3 + $0x90] sm:$0xff] %vm902_vm4, %v843_v56  ;;  %v847_v4 = vpop.permute.xlu0 %846 }
 0x18f   : > { %923 = vst.msk [vmem:[#allocation3 + $0xa0] sm:$0xff] %vm902_vm4, %v847_v4  ;;  %1051 = vrot.lane.b32.xlu2 %v8213_v62, %s5007_s21  ;;  %v8231_v4 = vld [vmem:[#allocation23_spill] sm:$0xff]  ;;  %v8232_v62 = vld [vmem:[#allocation30_spill] sm:$0xff] }
 0x191   : > { %v857_v5 = vpop.permute.xlu2 %856 }
 0x192   : > { %928 = vst.msk [vmem:[#allocation3 + $0xc8] sm:$0xff] %vm902_vm4, %v857_v5 }
 0x193   : > { %1061 = vrot.lane.b32.xlu1 %v5812_v55, %s5007_s21 }
 0x194   : > { %1194 = vrot.lane.b32.xlu0 %v8214_v59, %s5008_s22 }
 0x195   : > { %v849_v2 = vpop.permute.xlu1 %848 }
 0x196   : > { %924 = vst.msk [vmem:[#allocation3 + $0xa8] sm:$0xff] %vm902_vm4, %v849_v2  ;;  %v853_v39 = vpop.permute.xlu0 %852  ;;  %v8233_v2 = vld [vmem:[#allocation22_spill] sm:$0xff] }
 0x197   : > { %926 = vst.msk [vmem:[#allocation3 + $0xb8] sm:$0xff] %vm902_vm4, %v853_v39  ;;  %1057 = vrot.lane.b32.xlu2 %v8215_v6, %s5007_s21  ;;  %v8234_v6 = vld [vmem:[#allocation26_spill] sm:$0xff] }
 0x199   : > { %v863_v63 = vpop.permute.xlu2 %862 }
 0x19a   : > { %931 = vst.msk [vmem:[#allocation3 + $0xe0] sm:$0xff] %vm902_vm4, %v863_v63  ;;  %v8235_v63 = vld [vmem:[#allocation33_spill] sm:$0xff] }
 0x19b   : > { %1196 = vrot.lane.b32.xlu1 %v8216_v11, %s5008_s22 }
 0x19c   : > { %1200 = vrot.lane.b32.xlu0 %v8217_v13, %s5008_s22 }
 0x19d   : > { %v855_v3 = vpop.permute.xlu1 %854 }
 0x19e   : > { %927 = vst.msk [vmem:[#allocation3 + $0xc0] sm:$0xff] %vm902_vm4, %v855_v3  ;;  %v859_v8 = vpop.permute.xlu0 %858  ;;  %v8236_v3 = vld [vmem:[#allocation25_spill] sm:$0xff] }
 0x19f   : > { %929 = vst.msk [vmem:[#allocation3 + $0xd0] sm:$0xff] %vm902_vm4, %v859_v8  ;;  %1192 = vrot.lane.b32.xlu2 %v8218_v58, %s5008_s22  ;;  %v8237_v58 = vld [vmem:[#allocation29_spill] sm:$0xff] }
 0x1a1   : > { %v869_v15 = vpop.permute.xlu2 %868 }
 0x1a2   : > { %934 = vst.msk [vmem:[#allocation3 + $0xf8] sm:$0xff] %vm902_vm4, %v869_v15 }
 0x1a3   : > { %1202 = vrot.lane.b32.xlu1 %v8219_v28, %s5008_s22 }
 0x1a4   : > { %1206 = vrot.lane.b32.xlu0 %v8220_v22, %s5008_s22  ;;  %v8238_v22 = vld [vmem:[#allocation28_spill] sm:$0xff] }
 0x1a5   : > { %v861_v17 = vpop.permute.xlu1 %860 }
 0x1a6   : > { %930 = vst.msk [vmem:[#allocation3 + $0xd8] sm:$0xff] %vm902_vm4, %v861_v17  ;;  %v865_v34 = vpop.permute.xlu0 %864 }
 0x1a7   : > { %932 = vst.msk [vmem:[#allocation3 + $0xe8] sm:$0xff] %vm902_vm4, %v865_v34  ;;  %1198 = vrot.lane.b32.xlu2 %v8221_v21, %s5008_s22  ;;  %v8239_v34 = vld [vmem:[#allocation32_spill] sm:$0xff] }
 0x1a9   : > { %v1004_v26 = vpop.permute.xlu2 %1003 }
 0x1aa   : > { %1098 = vst.msk [vmem:[#allocation3 + $0x10] sm:$0xff] %vm1095_vm5, %v1004_v26  ;;  %v8240_v26 = vld [vmem:[#allocation31_spill] sm:$0xff] }
 0x1ab   : > { %1208 = vrot.lane.b32.xlu1 %v8222_v40, %s5008_s22  ;;  %v5904_v40 = vld [vmem:[#allocation2 + $0x18a] sm:$0xff] }
 0x1ac   : > { %1212 = vrot.lane.b32.xlu0 %v8223_v41, %s5008_s22 }
 0x1ad   : > { %v867_v24 = vpop.permute.xlu1 %866 }
 0x1ae   : > { %933 = vst.msk [vmem:[#allocation3 + $0xf0] sm:$0xff] %vm902_vm4, %v867_v24  ;;  %v1000_v32 = vpop.permute.xlu0 %999  ;;  %v8241_v24 = vld [vmem:[#allocation35_spill] sm:$0xff] }
 0x1af   : > { %1096 = vst.msk [vmem:[#allocation3] sm:$0xff] %vm1095_vm5, %v1000_v32  ;;  %1204 = vrot.lane.b32.xlu2 %v8224_v46, %s5008_s22  ;;  %v8242_v46 = vld [vmem:[#allocation34_spill] sm:$0xff] }
 0x1b1   : > { %v1010_v31 = vpop.permute.xlu2 %1009 }
 0x1b2   : > { %1101 = vst.msk [vmem:[#allocation3 + $0x28] sm:$0xff] %vm1095_vm5, %v1010_v31  ;;  %v1322_v31 = vld [vmem:[#allocation2 + $0x30] sm:$0xff] }
 0x1b3   : > { %1214 = vrot.lane.b32.xlu1 %v8225_v38, %s5008_s22 }
 0x1b4   : > { %1218 = vrot.lane.b32.xlu0 %v8226_v50, %s5008_s22  ;;  %v5919_v50 = vld [vmem:[#allocation2 + $0x182] sm:$0xff] }
 0x1b5   : > { %v1002_v37 = vpop.permute.xlu1 %1001 }
 0x1b6   : > { %1097 = vst.msk [vmem:[#allocation3 + $0x8] sm:$0xff] %vm1095_vm5, %v1002_v37  ;;  %v1006_v44 = vpop.permute.xlu0 %1005 }
 0x1b7   : > { %1099 = vst.msk [vmem:[#allocation3 + $0x18] sm:$0xff] %vm1095_vm5, %v1006_v44  ;;  %1210 = vrot.lane.b32.xlu2 %v8227_v54, %s5008_s22 }
 0x1b9   : > { %v1016_v43 = vpop.permute.xlu2 %1015 }
 0x1ba   : > { %1104 = vst.msk [vmem:[#allocation3 + $0x40] sm:$0xff] %vm1095_vm5, %v1016_v43 }
 0x1bb   : > { %1220 = vrot.lane.b32.xlu1 %v8228_v49, %s5008_s22 }
 0x1bc   : > { %1224 = vrot.lane.b32.xlu0 %v8229_v57, %s5008_s22 }
 0x1bd   : > { %v1008_v48 = vpop.permute.xlu1 %1007 }
 0x1be   : > { %1100 = vst.msk [vmem:[#allocation3 + $0x20] sm:$0xff] %vm1095_vm5, %v1008_v48  ;;  %v1012_v53 = vpop.permute.xlu0 %1011 }
 0x1bf   : > { %1102 = vst.msk [vmem:[#allocation3 + $0x30] sm:$0xff] %vm1095_vm5, %v1012_v53  ;;  %1216 = vrot.lane.b32.xlu2 %v8230_v52, %s5008_s22 }
 0x1c1   : > { %v1022_v56 = vpop.permute.xlu2 %1021 }
 0x1c2   : > { %1107 = vst.msk [vmem:[#allocation3 + $0x58] sm:$0xff] %vm1095_vm5, %v1022_v56 }
 0x1c3   : > { %1226 = vrot.lane.b32.xlu1 %v8231_v4, %s5008_s22 }
 0x1c4   : > { %1230 = vrot.lane.b32.xlu0 %v8232_v62, %s5008_s22 }
 0x1c5   : > { %v1014_v5 = vpop.permute.xlu1 %1013 }
 0x1c6   : > { %1103 = vst.msk [vmem:[#allocation3 + $0x38] sm:$0xff] %vm1095_vm5, %v1014_v5  ;;  %v1018_v59 = vpop.permute.xlu0 %1017 }
 0x1c7   : > { %1105 = vst.msk [vmem:[#allocation3 + $0x48] sm:$0xff] %vm1095_vm5, %v1018_v59  ;;  %1222 = vrot.lane.b32.xlu2 %v8233_v2, %s5008_s22 }
 0x1c9   : > { %v1028_v39 = vpop.permute.xlu2 %1027 }
 0x1ca   : > { %1110 = vst.msk [vmem:[#allocation3 + $0x70] sm:$0xff] %vm1095_vm5, %v1028_v39 }
 0x1cb   : > { %1232 = vrot.lane.b32.xlu1 %v8234_v6, %s5008_s22 }
 0x1cc   : > { %1236 = vrot.lane.b32.xlu0 %v8235_v63, %s5008_s22 }
 0x1cd   : > { %v1020_v11 = vpop.permute.xlu1 %1019 }
 0x1ce   : > { %1106 = vst.msk [vmem:[#allocation3 + $0x50] sm:$0xff] %vm1095_vm5, %v1020_v11  ;;  %v1024_v13 = vpop.permute.xlu0 %1023 }
 0x1cf   : > { %1108 = vst.msk [vmem:[#allocation3 + $0x60] sm:$0xff] %vm1095_vm5, %v1024_v13  ;;  %1228 = vrot.lane.b32.xlu2 %v8236_v3, %s5008_s22  ;;  %v1352_v13 = vld [vmem:[#allocation2 + $0x198] sm:$0xff] }
 0x1d1   : > { %v1034_v8 = vpop.permute.xlu2 %1033 }
 0x1d2   : > { %1113 = vst.msk [vmem:[#allocation3 + $0x88] sm:$0xff] %vm1095_vm5, %v1034_v8  ;;  %v1518_v8 = vld [vmem:[#allocation2 + $0x51] sm:$0xff] }
 0x1d3   : > { %1238 = vrot.lane.b32.xlu1 %v8237_v58, %s5008_s22 }
 0x1d4   : > { %1242 = vrot.lane.b32.xlu0 %v5601_v1, %s5008_s22 }
 0x1d5   : > { %v1026_v15 = vpop.permute.xlu1 %1025 }
 0x1d6   : > { %1109 = vst.msk [vmem:[#allocation3 + $0x68] sm:$0xff] %vm1095_vm5, %v1026_v15  ;;  %v1030_v28 = vpop.permute.xlu0 %1029  ;;  %v1353_v15 = vld [vmem:[#allocation2 + $0x1a0] sm:$0xff] }
 0x1d7   : > { %1111 = vst.msk [vmem:[#allocation3 + $0x78] sm:$0xff] %vm1095_vm5, %v1030_v28  ;;  %1234 = vrot.lane.b32.xlu2 %v8238_v22, %s5008_s22 }
 0x1d9   : > { %v1040_v17 = vpop.permute.xlu2 %1039 }
 0x1da   : > { %1116 = vst.msk [vmem:[#allocation3 + $0xa0] sm:$0xff] %vm1095_vm5, %v1040_v17  ;;  %v1519_v17 = vld [vmem:[#allocation2 + $0x61] sm:$0xff] }
 0x1db   : > { %1244 = vrot.lane.b32.xlu1 %v8239_v34, %s5008_s22 }
 0x1dc   : > { %1248 = vrot.lane.b32.xlu0 %v5616_v9, %s5008_s22 }
 0x1dd   : > { %v1032_v21 = vpop.permute.xlu1 %1031 }
 0x1de   : > { %1112 = vst.msk [vmem:[#allocation3 + $0x80] sm:$0xff] %vm1095_vm5, %v1032_v21  ;;  %v1036_v1 = vpop.permute.xlu0 %1035  ;;  %v1517_v21 = vld [vmem:[#allocation2 + $0x49] sm:$0xff] }
 0x1df   : > { %1114 = vst.msk [vmem:[#allocation3 + $0x90] sm:$0xff] %vm1095_vm5, %v1036_v1  ;;  %1240 = vrot.lane.b32.xlu2 %v8240_v26, %s5008_s22 }
 0x1e1   : > { %v1046_v41 = vpop.permute.xlu2 %1045 }
 0x1e2   : > { %1119 = vst.msk [vmem:[#allocation3 + $0xb8] sm:$0xff] %vm1095_vm5, %v1046_v41  ;;  %v1522_v41 = vld [vmem:[#allocation2 + $0x81] sm:$0xff] }
 0x1e3   : > { %1250 = vrot.lane.b32.xlu1 %v8241_v24, %s5008_s22  ;;  %v1524_v24 = vld [vmem:[#allocation2 + $0x99] sm:$0xff] }
 0x1e4   : > { %1254 = vrot.lane.b32.xlu0 %v5904_v40, %s5008_s22 }
 0x1e5   : > { %v1038_v9 = vpop.permute.xlu1 %1037 }
 0x1e6   : > { %1115 = vst.msk [vmem:[#allocation3 + $0x98] sm:$0xff] %vm1095_vm5, %v1038_v9  ;;  %v1042_v32 = vpop.permute.xlu0 %1041 }
 0x1e7   : > { %1117 = vst.msk [vmem:[#allocation3 + $0xa8] sm:$0xff] %vm1095_vm5, %v1042_v32  ;;  %1246 = vrot.lane.b32.xlu2 %v8242_v46, %s5008_s22  ;;  %v1520_v32 = vld [vmem:[#allocation2 + $0x69] sm:$0xff] }
 0x1e9   : > { %v1052_v38 = vpop.permute.xlu2 %1051 }
 0x1ea   : > { %1122 = vst.msk [vmem:[#allocation3 + $0xd0] sm:$0xff] %vm1095_vm5, %v1052_v38  ;;  %v1525_v38 = vld [vmem:[#allocation2 + $0xa9] sm:$0xff] }
 0x1eb   : > { %1386 = vrot.lane.b32.xlu1 %v1322_v31, %s5009_s23 }
 0x1ec   : > { %1390 = vrot.lane.b32.xlu0 %v5376_v12, %s5009_s23  ;;  %v1323_v12 = vld [vmem:[#allocation2 + $0x38] sm:$0xff] }
 0x1ed   : > { %v1044_v37 = vpop.permute.xlu1 %1043 }
 0x1ee   : > { %1118 = vst.msk [vmem:[#allocation3 + $0xb0] sm:$0xff] %vm1095_vm5, %v1044_v37  ;;  %v1048_v44 = vpop.permute.xlu0 %1047  ;;  %v1527_v37 = vld [vmem:[#allocation2 + $0xc1] sm:$0xff] }
 0x1ef   : > { %1120 = vst.msk [vmem:[#allocation3 + $0xc0] sm:$0xff] %vm1095_vm5, %v1048_v44  ;;  %1252 = vrot.lane.b32.xlu2 %v5919_v50, %s5008_s22 }
 0x1f1   : > { %v1058_v54 = vpop.permute.xlu2 %1057 }
 0x1f2   : > { %1125 = vst.msk [vmem:[#allocation3 + $0xe8] sm:$0xff] %vm1095_vm5, %v1058_v54  ;;  %v1523_v54 = vld [vmem:[#allocation2 + $0x91] sm:$0xff] }
 0x1f3   : > { %1392 = vrot.lane.b32.xlu1 %v5395_v19, %s5009_s23  ;;  %v1326_v19 = vld [vmem:[#allocation2 + $0x60] sm:$0xff] }
 0x1f4   : > { %1396 = vrot.lane.b32.xlu0 %v5399_v20, %s5009_s23 }
 0x1f5   : > { %v1050_v43 = vpop.permute.xlu1 %1049 }
 0x1f6   : > { %1121 = vst.msk [vmem:[#allocation3 + $0xc8] sm:$0xff] %vm1095_vm5, %v1050_v43  ;;  %v1054_v49 = vpop.permute.xlu0 %1053 }
 0x1f7   : > { %1123 = vst.msk [vmem:[#allocation3 + $0xd8] sm:$0xff] %vm1095_vm5, %v1054_v49  ;;  %1388 = vrot.lane.b32.xlu2 %v1323_v12, %s5009_s23  ;;  %v1528_v49 = vld [vmem:[#allocation2 + $0xc9] sm:$0xff] }
 0x1f9   : > { %v1193_v57 = vpop.permute.xlu2 %1192 }
 0x1fa   : > { %1289 = vst.msk [vmem:[#allocation3] sm:$0xff] %vm1288_vm6, %v1193_v57  ;;  %v1530_v57 = vld [vmem:[#allocation2 + $0xe1] sm:$0xff] }
 0x1fb   : > { %1398 = vrot.lane.b32.xlu1 %v5422_v35, %s5009_s23  ;;  %v1329_v35 = vld [vmem:[#allocation2 + $0x80] sm:$0xff] }
 0x1fc   : > { %1402 = vrot.lane.b32.xlu0 %v5426_v36, %s5009_s23 }
 0x1fd   : > { %v1056_v20 = vpop.permute.xlu1 %1055 }
 0x1fe   : > { %1124 = vst.msk [vmem:[#allocation3 + $0xe0] sm:$0xff] %vm1095_vm5, %v1056_v20  ;;  %v1060_v48 = vpop.permute.xlu0 %1059  ;;  %v1526_v20 = vld [vmem:[#allocation2 + $0xb1] sm:$0xff] }
 0x1ff   : > { %1126 = vst.msk [vmem:[#allocation3 + $0xf0] sm:$0xff] %vm1095_vm5, %v1060_v48  ;;  %1394 = vrot.lane.b32.xlu2 %v1326_v19, %s5009_s23 }
 0x201   : > { %v1199_v53 = vpop.permute.xlu2 %1198 }
 0x202   : > { %1292 = vst.msk [vmem:[#allocation3 + $0x18] sm:$0xff] %vm1288_vm6, %v1199_v53 }
 0x203   : > { %1404 = vrot.lane.b32.xlu1 %v5447_v51, %s5009_s23  ;;  %v1332_v51 = vld [vmem:[#allocation2 + $0xa8] sm:$0xff] }
 0x204   : > { %1408 = vrot.lane.b32.xlu0 %v5451_v61, %s5009_s23 }
 0x205   : > { %v1062_v36 = vpop.permute.xlu1 %1061 }
 0x206   : > { %1127 = vst.msk [vmem:[#allocation3 + $0xf8] sm:$0xff] %vm1095_vm5, %v1062_v36  ;;  %v1195_v52 = vpop.permute.xlu0 %1194  ;;  %v1533_v36 = vld [vmem:[#allocation2 + $0x109] sm:$0xff] }
 0x207   : > { %1290 = vst.msk [vmem:[#allocation3 + $0x8] sm:$0xff] %vm1288_vm6, %v1195_v52  ;;  %1400 = vrot.lane.b32.xlu2 %v1329_v35, %s5009_s23  ;;  %v1531_v35 = vld [vmem:[#allocation2 + $0xf1] sm:$0xff] }
 0x209   : > { %v1205_v56 = vpop.permute.xlu2 %1204 }
 0x20a   : > { %1295 = vst.msk [vmem:[#allocation3 + $0x30] sm:$0xff] %vm1288_vm6, %v1205_v56  ;;  %v1529_v56 = vld [vmem:[#allocation2 + $0xd9] sm:$0xff] }
 0x20b   : > { %1410 = vrot.lane.b32.xlu1 %v5472_v29, %s5009_s23  ;;  %v1335_v29 = vld [vmem:[#allocation2 + $0xc8] sm:$0xff] }
 0x20c   : > { %1414 = vrot.lane.b32.xlu0 %v5477_v0, %s5009_s23 }
 0x20d   : > { %v1197_v61 = vpop.permute.xlu1 %1196 }
 0x20e   : > { %1291 = vst.msk [vmem:[#allocation3 + $0x10] sm:$0xff] %vm1288_vm6, %v1197_v61  ;;  %v1201_v4 = vpop.permute.xlu0 %1200 }
 0x20f   : > { %1293 = vst.msk [vmem:[#allocation3 + $0x20] sm:$0xff] %vm1288_vm6, %v1201_v4  ;;  %1406 = vrot.lane.b32.xlu2 %v1332_v51, %s5009_s23  ;;  %v1534_v4 = vld [vmem:[#allocation2 + $0x111] sm:$0xff] }
 0x211   : > { %v1211_v62 = vpop.permute.xlu2 %1210 }
 0x212   : > { %1298 = vst.msk [vmem:[#allocation3 + $0x48] sm:$0xff] %vm1288_vm6, %v1211_v62  ;;  %v1536_v62 = vld [vmem:[#allocation2 + $0x129] sm:$0xff] }
 0x213   : > { %1416 = vrot.lane.b32.xlu1 %v5499_v45, %s5009_s23  ;;  %v1338_v45 = vld [vmem:[#allocation2 + $0xf0] sm:$0xff] }
 0x214   : > { %1420 = vrot.lane.b32.xlu0 %v5504_v27, %s5009_s23 }
 0x215   : > { %v1203_v0 = vpop.permute.xlu1 %1202 }
 0x216   : > { %1294 = vst.msk [vmem:[#allocation3 + $0x28] sm:$0xff] %vm1288_vm6, %v1203_v0  ;;  %v1207_v5 = vpop.permute.xlu0 %1206  ;;  %v1532_v0 = vld [vmem:[#allocation2 + $0xf9] sm:$0xff] }
 0x217   : > { %1296 = vst.msk [vmem:[#allocation3 + $0x38] sm:$0xff] %vm1288_vm6, %v1207_v5  ;;  %1412 = vrot.lane.b32.xlu2 %v1335_v29, %s5009_s23 }
 0x219   : > { %v1217_v59 = vpop.permute.xlu2 %1216 }
 0x21a   : > { %1301 = vst.msk [vmem:[#allocation3 + $0x60] sm:$0xff] %vm1288_vm6, %v1217_v59 }
 0x21b   : > { %1422 = vrot.lane.b32.xlu1 %v5526_v42, %s5009_s23  ;;  %v1341_v42 = vld [vmem:[#allocation2 + $0x110] sm:$0xff] }
 0x21c   : > { %1426 = vrot.lane.b32.xlu0 %v5531_v47, %s5009_s23 }
 0x21d   : > { %v1209_v27 = vpop.permute.xlu1 %1208 }
 0x21e   : > { %1297 = vst.msk [vmem:[#allocation3 + $0x40] sm:$0xff] %vm1288_vm6, %v1209_v27  ;;  %v1213_v2 = vpop.permute.xlu0 %1212  ;;  %v1539_v27 = vld [vmem:[#allocation2 + $0x151] sm:$0xff] }
 0x21f   : > { %1299 = vst.msk [vmem:[#allocation3 + $0x50] sm:$0xff] %vm1288_vm6, %v1213_v2  ;;  %1418 = vrot.lane.b32.xlu2 %v1338_v45, %s5009_s23  ;;  %v1537_v45 = vld [vmem:[#allocation2 + $0x139] sm:$0xff] }
 0x221   : > { %v1223_v39 = vpop.permute.xlu2 %1222 }
 0x222   : > { %1304 = vst.msk [vmem:[#allocation3 + $0x78] sm:$0xff] %vm1288_vm6, %v1223_v39  ;;  %v1535_v39 = vld [vmem:[#allocation2 + $0x121] sm:$0xff] }
 0x223   : > { %1428 = vrot.lane.b32.xlu1 %v5553_v30, %s5009_s23 }
 0x224   : > { %1432 = vrot.lane.b32.xlu0 %v5558_v33, %s5009_s23 }
 0x225   : > { %v1215_v47 = vpop.permute.xlu1 %1214 }
 0x226   : > { %1300 = vst.msk [vmem:[#allocation3 + $0x58] sm:$0xff] %vm1288_vm6, %v1215_v47  ;;  %v1219_v6 = vpop.permute.xlu0 %1218 }
 0x227   : > { %1302 = vst.msk [vmem:[#allocation3 + $0x68] sm:$0xff] %vm1288_vm6, %v1219_v6  ;;  %1424 = vrot.lane.b32.xlu2 %v1341_v42, %s5009_s23  ;;  %v1540_v6 = vld [vmem:[#allocation2 + $0x159] sm:$0xff] }
 0x229   : > { %v1229_v63 = vpop.permute.xlu2 %1228 }
 0x22a   : > { %1307 = vst.msk [vmem:[#allocation3 + $0x90] sm:$0xff] %vm1288_vm6, %v1229_v63  ;;  %v1542_v63 = vld [vmem:[#allocation2 + $0x171] sm:$0xff] }
 0x22b   : > { %1434 = vrot.lane.b32.xlu1 %v5580_v23, %s5009_s23 }
 0x22c   : > { %1438 = vrot.lane.b32.xlu0 %v5585_v18, %s5009_s23 }
 0x22d   : > { %v1221_v30 = vpop.permute.xlu1 %1220 }
 0x22e   : > { %1303 = vst.msk [vmem:[#allocation3 + $0x70] sm:$0xff] %vm1288_vm6, %v1221_v30  ;;  %v1225_v33 = vpop.permute.xlu0 %1224 }
 0x22f   : > { %1305 = vst.msk [vmem:[#allocation3 + $0x80] sm:$0xff] %vm1288_vm6, %v1225_v33  ;;  %1430 = vrot.lane.b32.xlu2 %v5536_v25, %s5009_s23  ;;  %v1515_v25 = vld [vmem:[#allocation2 + $0x31] sm:$0xff]  ;;  %v1538_v33 = vld [vmem:[#allocation2 + $0x141] sm:$0xff] }
 0x231   : > { %v1235_v11 = vpop.permute.xlu2 %1234 }
 0x232   : > { %1310 = vst.msk [vmem:[#allocation3 + $0xa8] sm:$0xff] %vm1288_vm6, %v1235_v11 }
 0x233   : > { %1440 = vrot.lane.b32.xlu1 %v5603_v14, %s5009_s23 }
 0x234   : > { %1444 = vrot.lane.b32.xlu0 %v5723_v10, %s5009_s23 }
 0x235   : > { %v1227_v23 = vpop.permute.xlu1 %1226 }
 0x236   : > { %1306 = vst.msk [vmem:[#allocation3 + $0x88] sm:$0xff] %vm1288_vm6, %v1227_v23  ;;  %v1231_v18 = vpop.permute.xlu0 %1230 }
 0x237   : > { %1308 = vst.msk [vmem:[#allocation3 + $0x98] sm:$0xff] %vm1288_vm6, %v1231_v18  ;;  %1436 = vrot.lane.b32.xlu2 %v5563_v16, %s5009_s23  ;;  %v1516_v16 = vld [vmem:[#allocation2 + $0x39] sm:$0xff] }
 0x238   : > { %v1545_v18 = vld [vmem:[#allocation2 + $0x199] sm:$0xff] }
 0x239   : > { %v1241_v3 = vpop.permute.xlu2 %1240 }
 0x23a   : > { %1313 = vst.msk [vmem:[#allocation3 + $0xc0] sm:$0xff] %vm1288_vm6, %v1241_v3 }
 0x23b   : > { %1446 = vrot.lane.b32.xlu1 %v1352_v13, %s5009_s23 }
 0x23c   : > { %1579 = vrot.lane.b32.xlu0 %v1515_v25, %s5010_s24  ;;  %v1541_v25 = vld [vmem:[#allocation2 + $0x169] sm:$0xff] }
 0x23d   : > { %v1233_v14 = vpop.permute.xlu1 %1232 }
 0x23e   : > { %1309 = vst.msk [vmem:[#allocation3 + $0xa0] sm:$0xff] %vm1288_vm6, %v1233_v14  ;;  %v1237_v10 = vpop.permute.xlu0 %1236 }
 0x23f   : > { %1311 = vst.msk [vmem:[#allocation3 + $0xb0] sm:$0xff] %vm1288_vm6, %v1237_v10  ;;  %1442 = vrot.lane.b32.xlu2 %v5707_v7, %s5009_s23  ;;  %v1521_v7 = vld [vmem:[#allocation2 + $0x79] sm:$0xff]  ;;  %v1546_v10 = vld [vmem:[#allocation2 + $0x1a1] sm:$0xff] }
 0x241   : > { %v1247_v58 = vpop.permute.xlu2 %1246 }
 0x242   : > { %1316 = vst.msk [vmem:[#allocation3 + $0xd8] sm:$0xff] %vm1288_vm6, %v1247_v58 }
 0x243   : > { %1581 = vrot.lane.b32.xlu1 %v1516_v16, %s5010_s24  ;;  %v1709_v16 = vld [vmem:[#allocation2 + $0x3a] sm:$0xff] }
 0x244   : > { %1585 = vrot.lane.b32.xlu0 %v1518_v8, %s5010_s24 }
 0x245   : > { %v1239_v28 = vpop.permute.xlu1 %1238 }
 0x246   : > { %1312 = vst.msk [vmem:[#allocation3 + $0xb8] sm:$0xff] %vm1288_vm6, %v1239_v28  ;;  %v1243_v22 = vpop.permute.xlu0 %1242 }
 0x247   : > { %1314 = vst.msk [vmem:[#allocation3 + $0xc8] sm:$0xff] %vm1288_vm6, %v1243_v22  ;;  %1448 = vrot.lane.b32.xlu2 %v1353_v15, %s5009_s23  ;;  %v1710_v15 = vld [vmem:[#allocation2 + $0x4a] sm:$0xff]  ;;  %v1712_v22 = vld [vmem:[#allocation2 + $0x62] sm:$0xff] }
 0x249   : > { %v1253_v34 = vpop.permute.xlu2 %1252 }
 0x24a   : > { %1319 = vst.msk [vmem:[#allocation3 + $0xf0] sm:$0xff] %vm1288_vm6, %v1253_v34 }
 0x24b   : > { %1587 = vrot.lane.b32.xlu1 %v1519_v17, %s5010_s24  ;;  %v1708_v17 = vld [vmem:[#allocation2 + $0x32] sm:$0xff] }
 0x24c   : > { %1591 = vrot.lane.b32.xlu0 %v1521_v7, %s5010_s24 }
 0x24d   : > { %v1245_v1 = vpop.permute.xlu1 %1244 }
 0x24e   : > { %1315 = vst.msk [vmem:[#allocation3 + $0xd0] sm:$0xff] %vm1288_vm6, %v1245_v1  ;;  %v1249_v26 = vpop.permute.xlu0 %1248  ;;  %v1715_v1 = vld [vmem:[#allocation2 + $0x82] sm:$0xff] }
 0x24f   : > { %1317 = vst.msk [vmem:[#allocation3 + $0xe0] sm:$0xff] %vm1288_vm6, %v1249_v26  ;;  %1583 = vrot.lane.b32.xlu2 %v1517_v21, %s5010_s24  ;;  %v1713_v21 = vld [vmem:[#allocation2 + $0x6a] sm:$0xff]  ;;  %v1711_v26 = vld [vmem:[#allocation2 + $0x52] sm:$0xff] }
 0x251   : > { %v1389_v9 = vpop.permute.xlu2 %1388 }
 0x252   : > { %1484 = vst.msk [vmem:[#allocation3 + $0x8] sm:$0xff] %vm1482_vm7, %v1389_v9  ;;  %v1716_v9 = vld [vmem:[#allocation2 + $0x92] sm:$0xff] }
 0x253   : > { %1593 = vrot.lane.b32.xlu1 %v1522_v41, %s5010_s24 }
 0x254   : > { %1597 = vrot.lane.b32.xlu0 %v1524_v24, %s5010_s24 }
 0x255   : > { %v1251_v46 = vpop.permute.xlu1 %1250 }
 0x256   : > { %1318 = vst.msk [vmem:[#allocation3 + $0xe8] sm:$0xff] %vm1288_vm6, %v1251_v46  ;;  %v1255_v31 = vpop.permute.xlu0 %1254  ;;  %v1718_v46 = vld [vmem:[#allocation2 + $0xaa] sm:$0xff] }
 0x257   : > { %1320 = vst.msk [vmem:[#allocation3 + $0xf8] sm:$0xff] %vm1288_vm6, %v1255_v31  ;;  %1589 = vrot.lane.b32.xlu2 %v1520_v32, %s5010_s24  ;;  %v1714_v31 = vld [vmem:[#allocation2 + $0x7a] sm:$0xff] }
 0x259   : > { %v1395_v44 = vpop.permute.xlu2 %1394 }
 0x25a   : > { %1487 = vst.msk [vmem:[#allocation3 + $0x20] sm:$0xff] %vm1482_vm7, %v1395_v44  ;;  %v1719_v44 = vld [vmem:[#allocation2 + $0xb2] sm:$0xff] }
 0x25b   : > { %1599 = vrot.lane.b32.xlu1 %v1525_v38, %s5010_s24 }
 0x25c   : > { %1603 = vrot.lane.b32.xlu0 %v1527_v37, %s5010_s24 }
 0x25d   : > { %v1387_v12 = vpop.permute.xlu1 %1386 }
 0x25e   : > { %1483 = vst.msk [vmem:[#allocation3] sm:$0xff] %vm1482_vm7, %v1387_v12  ;;  %v1391_v43 = vpop.permute.xlu0 %1390  ;;  %v1721_v12 = vld [vmem:[#allocation2 + $0xca] sm:$0xff] }
 0x25f   : > { %1485 = vst.msk [vmem:[#allocation3 + $0x10] sm:$0xff] %vm1482_vm7, %v1391_v43  ;;  %1595 = vrot.lane.b32.xlu2 %v1523_v54, %s5010_s24  ;;  %v1717_v43 = vld [vmem:[#allocation2 + $0x9a] sm:$0xff] }
 0x261   : > { %v1401_v19 = vpop.permute.xlu2 %1400 }
 0x262   : > { %1490 = vst.msk [vmem:[#allocation3 + $0x38] sm:$0xff] %vm1482_vm7, %v1401_v19  ;;  %v1722_v19 = vld [vmem:[#allocation2 + $0xda] sm:$0xff] }
 0x263   : > { %1605 = vrot.lane.b32.xlu1 %v1528_v49, %s5010_s24 }
 0x264   : > { %1609 = vrot.lane.b32.xlu0 %v1530_v57, %s5010_s24 }
 0x265   : > { %v1393_v48 = vpop.permute.xlu1 %1392 }
 0x266   : > { %1486 = vst.msk [vmem:[#allocation3 + $0x18] sm:$0xff] %vm1482_vm7, %v1393_v48  ;;  %v1397_v53 = vpop.permute.xlu0 %1396  ;;  %v1724_v48 = vld [vmem:[#allocation2 + $0xf2] sm:$0xff] }
 0x267   : > { %1488 = vst.msk [vmem:[#allocation3 + $0x28] sm:$0xff] %vm1482_vm7, %v1397_v53  ;;  %1601 = vrot.lane.b32.xlu2 %v1526_v20, %s5010_s24  ;;  %v1720_v53 = vld [vmem:[#allocation2 + $0xc2] sm:$0xff] }
 0x269   : > { %v1407_v52 = vpop.permute.xlu2 %1406 }
 0x26a   : > { %1493 = vst.msk [vmem:[#allocation3 + $0x50] sm:$0xff] %vm1482_vm7, %v1407_v52  ;;  %v1725_v52 = vld [vmem:[#allocation2 + $0xfa] sm:$0xff] }
 0x26b   : > { %1611 = vrot.lane.b32.xlu1 %v1531_v35, %s5010_s24 }
 0x26c   : > { %1615 = vrot.lane.b32.xlu0 %v1533_v36, %s5010_s24 }
 0x26d   : > { %v1399_v51 = vpop.permute.xlu1 %1398 }
 0x26e   : > { %1489 = vst.msk [vmem:[#allocation3 + $0x30] sm:$0xff] %vm1482_vm7, %v1399_v51  ;;  %v1403_v61 = vpop.permute.xlu0 %1402  ;;  %v1727_v51 = vld [vmem:[#allocation2 + $0x112] sm:$0xff] }
 0x26f   : > { %1491 = vst.msk [vmem:[#allocation3 + $0x40] sm:$0xff] %vm1482_vm7, %v1403_v61  ;;  %1607 = vrot.lane.b32.xlu2 %v1529_v56, %s5010_s24  ;;  %v1723_v61 = vld [vmem:[#allocation2 + $0xe2] sm:$0xff] }
 0x271   : > { %v1413_v29 = vpop.permute.xlu2 %1412 }
 0x272   : > { %1496 = vst.msk [vmem:[#allocation3 + $0x68] sm:$0xff] %vm1482_vm7, %v1413_v29  ;;  %v1728_v29 = vld [vmem:[#allocation2 + $0x122] sm:$0xff] }
 0x273   : > { %1617 = vrot.lane.b32.xlu1 %v1534_v4, %s5010_s24 }
 0x274   : > { %1621 = vrot.lane.b32.xlu0 %v1536_v62, %s5010_s24 }
 0x275   : > { %v1405_v5 = vpop.permute.xlu1 %1404 }
 0x276   : > { %1492 = vst.msk [vmem:[#allocation3 + $0x48] sm:$0xff] %vm1482_vm7, %v1405_v5  ;;  %v1409_v59 = vpop.permute.xlu0 %1408  ;;  %v1730_v5 = vld [vmem:[#allocation2 + $0x13a] sm:$0xff] }
 0x277   : > { %1494 = vst.msk [vmem:[#allocation3 + $0x58] sm:$0xff] %vm1482_vm7, %v1409_v59  ;;  %1613 = vrot.lane.b32.xlu2 %v1532_v0, %s5010_s24  ;;  %v1726_v59 = vld [vmem:[#allocation2 + $0x10a] sm:$0xff] }
 0x279   : > { %v1419_v2 = vpop.permute.xlu2 %1418 }
 0x27a   : > { %1499 = vst.msk [vmem:[#allocation3 + $0x80] sm:$0xff] %vm1482_vm7, %v1419_v2  ;;  %v1731_v2 = vld [vmem:[#allocation2 + $0x142] sm:$0xff] }
 0x27b   : > { %1623 = vrot.lane.b32.xlu1 %v1537_v45, %s5010_s24 }
 0x27c   : > { %1627 = vrot.lane.b32.xlu0 %v1539_v27, %s5010_s24 }
 0x27d   : > { %v1411_v42 = vpop.permute.xlu1 %1410 }
 0x27e   : > { %1495 = vst.msk [vmem:[#allocation3 + $0x60] sm:$0xff] %vm1482_vm7, %v1411_v42  ;;  %v1415_v47 = vpop.permute.xlu0 %1414 }
 0x27f   : > { %1497 = vst.msk [vmem:[#allocation3 + $0x70] sm:$0xff] %vm1482_vm7, %v1415_v47  ;;  %1619 = vrot.lane.b32.xlu2 %v1535_v39, %s5010_s24 }
 0x281   : > { %v1425_v30 = vpop.permute.xlu2 %1424 }
 0x282   : > { %1502 = vst.msk [vmem:[#allocation3 + $0x98] sm:$0xff] %vm1482_vm7, %v1425_v30 }
 0x283   : > { %1629 = vrot.lane.b32.xlu1 %v1540_v6, %s5010_s24  ;;  %v1729_v6 = vld [vmem:[#allocation2 + $0x12a] sm:$0xff] }
 0x284   : > { %1633 = vrot.lane.b32.xlu0 %v1542_v63, %s5010_s24 }
 0x285   : > { %v1417_v11 = vpop.permute.xlu1 %1416 }
 0x286   : > { %1498 = vst.msk [vmem:[#allocation3 + $0x78] sm:$0xff] %vm1482_vm7, %v1417_v11  ;;  %v1421_v23 = vpop.permute.xlu0 %1420  ;;  %v1937_v11 = vld [vmem:[%s8127_s1 + $0x20] sm:$0xf] }
 0x287   : > { %1500 = vst.msk [vmem:[#allocation3 + $0x88] sm:$0xff] %vm1482_vm7, %v1421_v23  ;;  %1625 = vrot.lane.b32.xlu2 %v1538_v33, %s5010_s24  ;;  %4887 = vmatpush.msk.msra.mxu0 %vm2035_vm9, %v1937_v11  ;;  %v1936_v23 = vld [vmem:[%s8127_s1 + $0x18] sm:$0xff] }
 0x288   : > { %4956 = vmatpush.msk.msra.mxu3 %vm2035_vm9, %v1937_v11 }
 0x289   : > { %v1431_v13 = vpop.permute.xlu2 %1430  ;;  %2051 = vmatpush.msra.mxu0 %v1936_v23 }
 0x28a   : > { %1505 = vst.msk [vmem:[#allocation3 + $0xb0] sm:$0xff] %vm1482_vm7, %v1431_v13  ;;  %v1935_v13 = vld [vmem:[%s8127_s1 + $0x10] sm:$0xff]  ;;  %4957 = vmatpush.msra.mxu3 %v1936_v23 }
 0x28b   : > { %1635 = vrot.lane.b32.xlu1 %v5801_v60, %s5010_s24  ;;  %2052 = vmatpush.msra.mxu0 %v1935_v13 }
 0x28c   : > { %1639 = vrot.lane.b32.xlu0 %v1545_v18, %s5010_s24  ;;  %v1733_v18 = vld [vmem:[#allocation2 + $0x15a] sm:$0xff]  ;;  %4958 = vmatpush.msra.mxu3 %v1935_v13  ;;  %v8243_v13 = vmov 0.0  }
 0x28d   : > { %v1423_v3 = vpop.permute.xlu1 %1422  ;;  %2502 = vst.msk [vmem:[#allocation4 + $0x18] sm:$0xff] %vm2152_vm12, %v8243_v13 }
 0x28e   : > { %1501 = vst.msk [vmem:[#allocation3 + $0x90] sm:$0xff] %vm1482_vm7, %v1423_v3  ;;  %v1427_v14 = vpop.permute.xlu0 %1426  ;;  %v1934_v3 = vld [vmem:[%s8127_s1 + $0x8] sm:$0xff] }
 0x28f   : > { %1503 = vst.msk [vmem:[#allocation3 + $0xa0] sm:$0xff] %vm1482_vm7, %v1427_v14  ;;  %1631 = vrot.lane.b32.xlu2 %v1541_v25, %s5010_s24  ;;  %2053 = vmatpush.msra.mxu0 %v1934_v3 }
 0x290   : > { %4959 = vmatpush.msra.mxu3 %v1934_v3  ;;  %2503 = vst.msk [vmem:[#allocation4 + $0x20] sm:$0xff] %vm2152_vm12, %v8243_v13 }
 0x291   : > { %v1437_v8 = vpop.permute.xlu2 %1436  ;;  %2498 = vst.msk [vmem:[#allocation4] sm:$0xff] %vm2152_vm12, %v8243_v13 }
 0x292   : > { %1508 = vst.msk [vmem:[#allocation3 + $0xc8] sm:$0xff] %vm1482_vm7, %v1437_v8  ;;  %v1734_v8 = vld [vmem:[#allocation2 + $0x16a] sm:$0xff] }
 0x293   : > { %1641 = vrot.lane.b32.xlu1 %v1546_v10, %s5010_s24  ;;  %2499 = vst.msk [vmem:[#allocation4 + $0x8] sm:$0xff] %vm2152_vm12, %v8243_v13 }
 0x294   : > { %1774 = vrot.lane.b32.xlu0 %v1709_v16, %s5011_s25  ;;  %v1933_v16 = vld [vmem:[%s8127_s1] sm:$0xff]  ;;  %2505 = vst.msk [vmem:[#allocation4 + $0x30] sm:$0xff] %vm2152_vm12, %v8243_v13 }
 0x295   : > { %v1429_v60 = vpop.permute.xlu1 %1428  ;;  %2054 = vmatpush.msra.mxu0 %v1933_v16  ;;  %4960 = vmatpush.msra.mxu3 %v1933_v16  ;;  %2506 = vst.msk [vmem:[#allocation4 + $0x38] sm:$0xff] %vm2152_vm12, %v8243_v13 }
 0x296   : > { %1504 = vst.msk [vmem:[#allocation3 + $0xa8] sm:$0xff] %vm1482_vm7, %v1429_v60  ;;  %v1433_v58 = vpop.permute.xlu0 %1432 }
 0x297   : > { %1506 = vst.msk [vmem:[#allocation3 + $0xb8] sm:$0xff] %vm1482_vm7, %v1433_v58  ;;  %1637 = vrot.lane.b32.xlu2 %v5812_v55, %s5010_s24 }
 0x298   : > { %2508 = vst.msk [vmem:[#allocation4 + $0x48] sm:$0xff] %vm2152_vm12, %v8243_v13 }
 0x299   : > { %v1443_v28 = vpop.permute.xlu2 %1442  ;;  %2509 = vst.msk [vmem:[#allocation4 + $0x50] sm:$0xff] %vm2152_vm12, %v8243_v13 }
 0x29a   : > { %1511 = vst.msk [vmem:[#allocation3 + $0xe0] sm:$0xff] %vm1482_vm7, %v1443_v28  ;;  %v1732_v28 = vld [vmem:[#allocation2 + $0x152] sm:$0xff] }
 0x29b   : > { %1776 = vrot.lane.b32.xlu1 %v1710_v15, %s5011_s25  ;;  %2511 = vst.msk [vmem:[#allocation4 + $0x60] sm:$0xff] %vm2152_vm12, %v8243_v13 }
 0x29c   : > { %1780 = vrot.lane.b32.xlu0 %v1712_v22, %s5011_s25  ;;  %2512 = vst.msk [vmem:[#allocation4 + $0x68] sm:$0xff] %vm2152_vm12, %v8243_v13 }
 0x29d   : > { %v1435_v7 = vpop.permute.xlu1 %1434  ;;  %2514 = vst.msk [vmem:[#allocation4 + $0x78] sm:$0xff] %vm2152_vm12, %v8243_v13 }
 0x29e   : > { %1507 = vst.msk [vmem:[#allocation3 + $0xc0] sm:$0xff] %vm1482_vm7, %v1435_v7  ;;  %v1439_v34 = vpop.permute.xlu0 %1438 }
 0x29f   : > { %1509 = vst.msk [vmem:[#allocation3 + $0xd0] sm:$0xff] %vm1482_vm7, %v1439_v34  ;;  %1772 = vrot.lane.b32.xlu2 %v1708_v17, %s5011_s25 }
 0x2a0   : > { %2515 = vst.msk [vmem:[#allocation4 + $0x80] sm:$0xff] %vm2152_vm12, %v8243_v13 }
 0x2a1   : > { %v1449_v55 = vpop.permute.xlu2 %1448  ;;  %2517 = vst.msk [vmem:[#allocation4 + $0x90] sm:$0xff] %vm2152_vm12, %v8243_v13 }
 0x2a2   : > { %1514 = vst.msk [vmem:[#allocation3 + $0xf8] sm:$0xff] %vm1482_vm7, %v1449_v55 }
 0x2a3   : > { %1782 = vrot.lane.b32.xlu1 %v1713_v21, %s5011_s25  ;;  %2518 = vst.msk [vmem:[#allocation4 + $0x98] sm:$0xff] %vm2152_vm12, %v8243_v13 }
 0x2a4   : > { %1786 = vrot.lane.b32.xlu0 %v1715_v1, %s5011_s25  ;;  %2520 = vst.msk [vmem:[#allocation4 + $0xa8] sm:$0xff] %vm2152_vm12, %v8243_v13 }
 0x2a5   : > { %v1441_v41 = vpop.permute.xlu1 %1440  ;;  %2521 = vst.msk [vmem:[#allocation4 + $0xb0] sm:$0xff] %vm2152_vm12, %v8243_v13 }
 0x2a6   : > { %1510 = vst.msk [vmem:[#allocation3 + $0xd8] sm:$0xff] %vm1482_vm7, %v1441_v41  ;;  %v1445_v24 = vpop.permute.xlu0 %1444  ;;  %v1735_v41 = vld [vmem:[#allocation2 + $0x172] sm:$0xff] }
 0x2a7   : > { %1512 = vst.msk [vmem:[#allocation3 + $0xe8] sm:$0xff] %vm1482_vm7, %v1445_v24  ;;  %1778 = vrot.lane.b32.xlu2 %v1711_v26, %s5011_s25 }
 0x2a8   : > { %2523 = vst.msk [vmem:[#allocation4 + $0xc0] sm:$0xff] %vm2152_vm12, %v8243_v13 }
 0x2a9   : > { %v1584_v32 = vpop.permute.xlu2 %1583  ;;  %2524 = vst.msk [vmem:[#allocation4 + $0xc8] sm:$0xff] %vm2152_vm12, %v8243_v13 }
 0x2aa   : > { %1678 = vst.msk [vmem:[#allocation3 + $0x10] sm:$0xff] %vm1675_vm8, %v1584_v32 }
 0x2ab   : > { %1788 = vrot.lane.b32.xlu1 %v1716_v9, %s5011_s25  ;;  %2526 = vst.msk [vmem:[#allocation4 + $0xd8] sm:$0xff] %vm2152_vm12, %v8243_v13 }
 0x2ac   : > { %1792 = vrot.lane.b32.xlu0 %v1718_v46, %s5011_s25  ;;  %2527 = vst.msk [vmem:[#allocation4 + $0xe0] sm:$0xff] %vm2152_vm12, %v8243_v13 }
 0x2ad   : > { %v1447_v38 = vpop.permute.xlu1 %1446  ;;  %2529 = vst.msk [vmem:[#allocation4 + $0xf0] sm:$0xff] %vm2152_vm12, %v8243_v13 }
 0x2ae   : > { %1513 = vst.msk [vmem:[#allocation3 + $0xf0] sm:$0xff] %vm1482_vm7, %v1447_v38  ;;  %v1580_v37 = vpop.permute.xlu0 %1579 }
 0x2af   : > { %1676 = vst.msk [vmem:[#allocation3] sm:$0xff] %vm1675_vm8, %v1580_v37  ;;  %1784 = vrot.lane.b32.xlu2 %v1714_v31, %s5011_s25  ;;  %v1739_v31 = vld [vmem:[#allocation2 + $0x1a2] sm:$0xff] }
 0x2b0   : > { %2530 = vst.msk [vmem:[#allocation4 + $0xf8] sm:$0xff] %vm2152_vm12, %v8243_v13 }
 0x2b1   : > { %v1590_v54 = vpop.permute.xlu2 %1589  ;;  %2532 = vst.msk [vmem:[#allocation4 + $0x108] sm:$0xff] %vm2152_vm12, %v8243_v13 }
 0x2b2   : > { %1681 = vst.msk [vmem:[#allocation3 + $0x28] sm:$0xff] %vm1675_vm8, %v1590_v54 }
 0x2b3   : > { %1794 = vrot.lane.b32.xlu1 %v1719_v44, %s5011_s25  ;;  %2533 = vst.msk [vmem:[#allocation4 + $0x110] sm:$0xff] %vm2152_vm12, %v8243_v13 }
 0x2b4   : > { %1798 = vrot.lane.b32.xlu0 %v1721_v12, %s5011_s25  ;;  %2535 = vst.msk [vmem:[#allocation4 + $0x120] sm:$0xff] %vm2152_vm12, %v8243_v13 }
 0x2b5   : > { %v1582_v49 = vpop.permute.xlu1 %1581  ;;  %2536 = vst.msk [vmem:[#allocation4 + $0x128] sm:$0xff] %vm2152_vm12, %v8243_v13 }
 0x2b6   : > { %1677 = vst.msk [vmem:[#allocation3 + $0x8] sm:$0xff] %vm1675_vm8, %v1582_v49  ;;  %v1586_v57 = vpop.permute.xlu0 %1585 }
 0x2b7   : > { %1679 = vst.msk [vmem:[#allocation3 + $0x18] sm:$0xff] %vm1675_vm8, %v1586_v57  ;;  %1790 = vrot.lane.b32.xlu2 %v1717_v43, %s5011_s25 }
 0x2b8   : > { %2538 = vst.msk [vmem:[#allocation4 + $0x138] sm:$0xff] %vm2152_vm12, %v8243_v13 }
 0x2b9   : > { %v1596_v20 = vpop.permute.xlu2 %1595  ;;  %2539 = vst.msk [vmem:[#allocation4 + $0x140] sm:$0xff] %vm2152_vm12, %v8243_v13 }
 0x2ba   : > { %1684 = vst.msk [vmem:[#allocation3 + $0x40] sm:$0xff] %vm1675_vm8, %v1596_v20 }
 0x2bb   : > { %1800 = vrot.lane.b32.xlu1 %v1722_v19, %s5011_s25  ;;  %v1738_v19 = vld [vmem:[#allocation2 + $0x19a] sm:$0xff]  ;;  %2541 = vst.msk [vmem:[#allocation4 + $0x150] sm:$0xff] %vm2152_vm12, %v8243_v13 }
 0x2bc   : > { %1804 = vrot.lane.b32.xlu0 %v1724_v48, %s5011_s25  ;;  %2542 = vst.msk [vmem:[#allocation4 + $0x158] sm:$0xff] %vm2152_vm12, %v8243_v13 }
 0x2bd   : > { %v1588_v35 = vpop.permute.xlu1 %1587  ;;  %2544 = vst.msk [vmem:[#allocation4 + $0x168] sm:$0xff] %vm2152_vm12, %v8243_v13 }
 0x2be   : > { %1680 = vst.msk [vmem:[#allocation3 + $0x20] sm:$0xff] %vm1675_vm8, %v1588_v35  ;;  %v1592_v36 = vpop.permute.xlu0 %1591 }
 0x2bf   : > { %1682 = vst.msk [vmem:[#allocation3 + $0x30] sm:$0xff] %vm1675_vm8, %v1592_v36  ;;  %1796 = vrot.lane.b32.xlu2 %v1720_v53, %s5011_s25 }
 0x2c0   : > { %2545 = vst.msk [vmem:[#allocation4 + $0x170] sm:$0xff] %vm2152_vm12, %v8243_v13 }
 0x2c1   : > { %v1602_v56 = vpop.permute.xlu2 %1601  ;;  %2547 = vst.msk [vmem:[#allocation4 + $0x180] sm:$0xff] %vm2152_vm12, %v8243_v13 }
 0x2c2   : > { %1687 = vst.msk [vmem:[#allocation3 + $0x58] sm:$0xff] %vm1675_vm8, %v1602_v56 }
 0x2c3   : > { %1806 = vrot.lane.b32.xlu1 %v1725_v52, %s5011_s25  ;;  %2548 = vst.msk [vmem:[#allocation4 + $0x188] sm:$0xff] %vm2152_vm12, %v8243_v13 }
 0x2c4   : > { %1810 = vrot.lane.b32.xlu0 %v1727_v51, %s5011_s25  ;;  %2550 = vst.msk [vmem:[#allocation4 + $0x198] sm:$0xff] %vm2152_vm12, %v8243_v13 }
 0x2c5   : > { %v1594_v4 = vpop.permute.xlu1 %1593  ;;  %2551 = vst.msk [vmem:[#allocation4 + $0x1a0] sm:$0xff] %vm2152_vm12, %v8243_v13 }
 0x2c6   : > { %1683 = vst.msk [vmem:[#allocation3 + $0x38] sm:$0xff] %vm1675_vm8, %v1594_v4  ;;  %v1598_v62 = vpop.permute.xlu0 %1597 }
 0x2c7   : > { %1685 = vst.msk [vmem:[#allocation3 + $0x48] sm:$0xff] %vm1675_vm8, %v1598_v62  ;;  %1802 = vrot.lane.b32.xlu2 %v1723_v61, %s5011_s25 }
 0x2c8   : > { %2504 = vst.msk [vmem:[#allocation4 + $0x28] sm:$0x3] %vm2500_vm13, %v8243_v13 }
 0x2c9   : > { %v1608_v0 = vpop.permute.xlu2 %1607  ;;  %2501 = vst.msk [vmem:[#allocation4 + $0x10] sm:$0x3] %vm2500_vm13, %v8243_v13 }
 0x2ca   : > { %1690 = vst.msk [vmem:[#allocation3 + $0x70] sm:$0xff] %vm1675_vm8, %v1608_v0 }
 0x2cb   : > { %1812 = vrot.lane.b32.xlu1 %v1728_v29, %s5011_s25  ;;  %2507 = vst.msk [vmem:[#allocation4 + $0x40] sm:$0x3] %vm2500_vm13, %v8243_v13 }
 0x2cc   : > { %1816 = vrot.lane.b32.xlu0 %v1730_v5, %s5011_s25  ;;  %2510 = vst.msk [vmem:[#allocation4 + $0x58] sm:$0x3] %vm2500_vm13, %v8243_v13 }
 0x2cd   : > { %v1600_v45 = vpop.permute.xlu1 %1599  ;;  %2513 = vst.msk [vmem:[#allocation4 + $0x70] sm:$0x3] %vm2500_vm13, %v8243_v13 }
 0x2ce   : > { %1686 = vst.msk [vmem:[#allocation3 + $0x50] sm:$0xff] %vm1675_vm8, %v1600_v45  ;;  %v1604_v27 = vpop.permute.xlu0 %1603 }
 0x2cf   : > { %1688 = vst.msk [vmem:[#allocation3 + $0x60] sm:$0xff] %vm1675_vm8, %v1604_v27  ;;  %1808 = vrot.lane.b32.xlu2 %v1726_v59, %s5011_s25 }
 0x2d0   : > { %2516 = vst.msk [vmem:[#allocation4 + $0x88] sm:$0x3] %vm2500_vm13, %v8243_v13 }
 0x2d1   : > { %v1614_v39 = vpop.permute.xlu2 %1613  ;;  %2519 = vst.msk [vmem:[#allocation4 + $0xa0] sm:$0x3] %vm2500_vm13, %v8243_v13 }
 0x2d2   : > { %1693 = vst.msk [vmem:[#allocation3 + $0x88] sm:$0xff] %vm1675_vm8, %v1614_v39 }
 0x2d3   : > { %1818 = vrot.lane.b32.xlu1 %v1731_v2, %s5011_s25  ;;  %2522 = vst.msk [vmem:[#allocation4 + $0xb8] sm:$0x3] %vm2500_vm13, %v8243_v13 }
 0x2d4   : > { %1822 = vrot.lane.b32.xlu0 %v1733_v18, %s5011_s25  ;;  %2525 = vst.msk [vmem:[#allocation4 + $0xd0] sm:$0x3] %vm2500_vm13, %v8243_v13 }
 0x2d5   : > { %v1606_v42 = vpop.permute.xlu1 %1605  ;;  %2528 = vst.msk [vmem:[#allocation4 + $0xe8] sm:$0x3] %vm2500_vm13, %v8243_v13 }
 0x2d6   : > { %1689 = vst.msk [vmem:[#allocation3 + $0x68] sm:$0xff] %vm1675_vm8, %v1606_v42  ;;  %v1610_v47 = vpop.permute.xlu0 %1609 }
 0x2d7   : > { %1691 = vst.msk [vmem:[#allocation3 + $0x78] sm:$0xff] %vm1675_vm8, %v1610_v47  ;;  %1814 = vrot.lane.b32.xlu2 %v1729_v6, %s5011_s25 }
 0x2d8   : > { %2531 = vst.msk [vmem:[#allocation4 + $0x100] sm:$0x3] %vm2500_vm13, %v8243_v13 }
 0x2d9   : > { %v1620_v63 = vpop.permute.xlu2 %1619  ;;  %2534 = vst.msk [vmem:[#allocation4 + $0x118] sm:$0x3] %vm2500_vm13, %v8243_v13 }
 0x2da   : > { %1696 = vst.msk [vmem:[#allocation3 + $0xa0] sm:$0xff] %vm1675_vm8, %v1620_v63 }
 0x2db   : > { %1824 = vrot.lane.b32.xlu1 %v1734_v8, %s5011_s25  ;;  %2537 = vst.msk [vmem:[#allocation4 + $0x130] sm:$0x3] %vm2500_vm13, %v8243_v13 }
 0x2dc   : > { %1828 = vrot.lane.b32.xlu0 %v5919_v50, %s5011_s25  ;;  %2540 = vst.msk [vmem:[#allocation4 + $0x148] sm:$0x3] %vm2500_vm13, %v8243_v13 }
 0x2dd   : > { %v1612_v30 = vpop.permute.xlu1 %1611  ;;  %2543 = vst.msk [vmem:[#allocation4 + $0x160] sm:$0x3] %vm2500_vm13, %v8243_v13 }
 0x2de   : > { %1692 = vst.msk [vmem:[#allocation3 + $0x80] sm:$0xff] %vm1675_vm8, %v1612_v30  ;;  %v1616_v33 = vpop.permute.xlu0 %1615 }
 0x2df   : > { %1694 = vst.msk [vmem:[#allocation3 + $0x90] sm:$0xff] %vm1675_vm8, %v1616_v33  ;;  %1820 = vrot.lane.b32.xlu2 %v1732_v28, %s5011_s25 }
 0x2e0   : > { %2546 = vst.msk [vmem:[#allocation4 + $0x178] sm:$0x3] %vm2500_vm13, %v8243_v13 }
 0x2e1   : > { %v1626_v25 = vpop.permute.xlu2 %1625  ;;  %2549 = vst.msk [vmem:[#allocation4 + $0x190] sm:$0x3] %vm2500_vm13, %v8243_v13 }
 0x2e2   : > { %1699 = vst.msk [vmem:[#allocation3 + $0xb8] sm:$0xff] %vm1675_vm8, %v1626_v25 }
 0x2e3   : > { %1830 = vrot.lane.b32.xlu1 %v5904_v40, %s5011_s25  ;;  %2552 = vst.msk [vmem:[#allocation4 + $0x1a8] sm:$0x3] %vm2500_vm13, %v8243_v13 }
 0x2e4   : > { %1834 = vrot.lane.b32.xlu0 %v1739_v31, %s5011_s25 }
 0x2e5   : > { %v1618_v14 = vpop.permute.xlu1 %1617 }
 0x2e6   : > { %1695 = vst.msk [vmem:[#allocation3 + $0x98] sm:$0xff] %vm1675_vm8, %v1618_v14  ;;  %v1622_v10 = vpop.permute.xlu0 %1621 }
 0x2e7   : > { %1697 = vst.msk [vmem:[#allocation3 + $0xa8] sm:$0xff] %vm1675_vm8, %v1622_v10  ;;  %1826 = vrot.lane.b32.xlu2 %v1735_v41, %s5011_s25 }
 0x2e9   : > { %v1632_v60 = vpop.permute.xlu2 %1631 }
 0x2ea   : > { %1702 = vst.msk [vmem:[#allocation3 + $0xd0] sm:$0xff] %vm1675_vm8, %v1632_v60 }
 0x2ed   : > { %v1624_v58 = vpop.permute.xlu1 %1623 }
 0x2ee   : > { %1698 = vst.msk [vmem:[#allocation3 + $0xb0] sm:$0xff] %vm1675_vm8, %v1624_v58  ;;  %v1628_v15 = vpop.permute.xlu0 %1627 }
 0x2ef   : > { %1700 = vst.msk [vmem:[#allocation3 + $0xc0] sm:$0xff] %vm1675_vm8, %v1628_v15  ;;  %1832 = vrot.lane.b32.xlu2 %v1738_v19, %s5011_s25 }
 0x2f1   : > { %v1638_v22 = vpop.permute.xlu2 %1637 }
 0x2f2   : > { %1705 = vst.msk [vmem:[#allocation3 + $0xe8] sm:$0xff] %vm1675_vm8, %v1638_v22 }
 0x2f5   : > { %v1630_v17 = vpop.permute.xlu1 %1629 }
 0x2f6   : > { %1701 = vst.msk [vmem:[#allocation3 + $0xc8] sm:$0xff] %vm1675_vm8, %v1630_v17  ;;  %v1634_v50 = vpop.permute.xlu0 %1633 }
 0x2f7   : > { %1703 = vst.msk [vmem:[#allocation3 + $0xd8] sm:$0xff] %vm1675_vm8, %v1634_v50 }
 0x2f9   : > { %v1773_v7 = vpop.permute.xlu2 %1772 }
 0x2fa   : > { %1869 = vst.msk [vmem:[#allocation3] sm:$0xff] %vm1868_vm10, %v1773_v7 }
 0x2fd   : > { %v1636_v34 = vpop.permute.xlu1 %1635 }
 0x2fe   : > { %1704 = vst.msk [vmem:[#allocation3 + $0xe0] sm:$0xff] %vm1675_vm8, %v1636_v34  ;;  %v1640_v21 = vpop.permute.xlu0 %1639 }
 0x2ff   : > { %1706 = vst.msk [vmem:[#allocation3 + $0xf0] sm:$0xff] %vm1675_vm8, %v1640_v21 }
 0x301   : > { %v1901_v40 = vld [vmem:[#allocation3] sm:$0xff]  ;;  %v1779_v55 = vpop.permute.xlu2 %1778 }
 0x302   : > { %4888 = vmatmul.msk.f32.vlgmr.msra.gmra.mxu0 %vm1938_vm11, %v1901_v40  ;;  %1872 = vst.msk [vmem:[#allocation3 + $0x18] sm:$0xff] %vm1868_vm10, %v1779_v55 }
 0x305   : > { %v1642_v1 = vpop.permute.xlu1 %1641 }
 0x306   : > { %1707 = vst.msk [vmem:[#allocation3 + $0xf8] sm:$0xff] %vm1675_vm8, %v1642_v1  ;;  %v1775_v26 = vpop.permute.xlu0 %1774 }
 0x307   : > { %1870 = vst.msk [vmem:[#allocation3 + $0x8] sm:$0xff] %vm1868_vm10, %v1775_v26 }
 0x309   : > { %v1785_v24 = vpop.permute.xlu2 %1784  ;;  %v1904_v49 = vld [vmem:[#allocation3 + $0x18] sm:$0xff] }
 0x30a   : > { %1875 = vst.msk [vmem:[#allocation3 + $0x30] sm:$0xff] %vm1868_vm10, %v1785_v24 }
 0x30d   : > { %v1777_v9 = vpop.permute.xlu1 %1776 }
 0x30e   : > { %1871 = vst.msk [vmem:[#allocation3 + $0x10] sm:$0xff] %vm1868_vm10, %v1777_v9  ;;  %v1902_v32 = vld [vmem:[#allocation3 + $0x8] sm:$0xff]  ;;  %v1781_v46 = vpop.permute.xlu0 %1780 }
 0x30f   : > { %4889 = vmatmul.msk.f32.gmra.mxu0 %vm1938_vm11, %v1902_v32  ;;  %1873 = vst.msk [vmem:[#allocation3 + $0x20] sm:$0xff] %vm1868_vm10, %v1781_v46 }
 0x311   : > { %v1791_v38 = vpop.permute.xlu2 %1790  ;;  %v1907_v62 = vld [vmem:[#allocation3 + $0x30] sm:$0xff] }
 0x312   : > { %1878 = vst.msk [vmem:[#allocation3 + $0x48] sm:$0xff] %vm1868_vm10, %v1791_v38 }
 0x315   : > { %v1783_v37 = vpop.permute.xlu1 %1782  ;;  %v1903_v44 = vld [vmem:[#allocation3 + $0x10] sm:$0xff] }
 0x316   : > { %1874 = vst.msk [vmem:[#allocation3 + $0x28] sm:$0xff] %vm1868_vm10, %v1783_v37  ;;  %v1787_v54 = vpop.permute.xlu0 %1786  ;;  %v1905_v53 = vld [vmem:[#allocation3 + $0x20] sm:$0xff] }
 0x317   : > { %4890 = vmatmul.msk.f32.gmra.mxu0 %vm1938_vm11, %v1903_v44  ;;  %1876 = vst.msk [vmem:[#allocation3 + $0x38] sm:$0xff] %vm1868_vm10, %v1787_v54 }
 0x319   : > { %v1797_v12 = vpop.permute.xlu2 %1796  ;;  %v1910_v6 = vld [vmem:[#allocation3 + $0x48] sm:$0xff] }
 0x31a   : > { %1881 = vst.msk [vmem:[#allocation3 + $0x60] sm:$0xff] %vm1868_vm10, %v1797_v12 }
 0x31d   : > { %v1789_v43 = vpop.permute.xlu1 %1788  ;;  %v1906_v56 = vld [vmem:[#allocation3 + $0x28] sm:$0xff] }
 0x31e   : > { %1877 = vst.msk [vmem:[#allocation3 + $0x40] sm:$0xff] %vm1868_vm10, %v1789_v43  ;;  %v1793_v57 = vpop.permute.xlu0 %1792  ;;  %v1908_v59 = vld [vmem:[#allocation3 + $0x38] sm:$0xff] }
 0x31f   : > { %4891 = vmatmul.msk.f32.gmra.mxu0 %vm1938_vm11, %v1904_v49  ;;  %1879 = vst.msk [vmem:[#allocation3 + $0x50] sm:$0xff] %vm1868_vm10, %v1793_v57 }
 0x321   : > { %v1803_v20 = vpop.permute.xlu2 %1802  ;;  %v1913_v14 = vld [vmem:[#allocation3 + $0x60] sm:$0xff] }
 0x322   : > { %1884 = vst.msk [vmem:[#allocation3 + $0x78] sm:$0xff] %vm1868_vm10, %v1803_v20 }
 0x325   : > { %v1795_v48 = vpop.permute.xlu1 %1794  ;;  %v1909_v39 = vld [vmem:[#allocation3 + $0x40] sm:$0xff] }
 0x326   : > { %1880 = vst.msk [vmem:[#allocation3 + $0x58] sm:$0xff] %vm1868_vm10, %v1795_v48  ;;  %v1799_v35 = vpop.permute.xlu0 %1798  ;;  %v1911_v33 = vld [vmem:[#allocation3 + $0x50] sm:$0xff] }
 0x327   : > { %4892 = vmatmul.msk.f32.gmra.mxu0 %vm1938_vm11, %v1905_v53  ;;  %1882 = vst.msk [vmem:[#allocation3 + $0x68] sm:$0xff] %vm1868_vm10, %v1799_v35 }
 0x329   : > { %v1809_v36 = vpop.permute.xlu2 %1808  ;;  %v1916_v15 = vld [vmem:[#allocation3 + $0x78] sm:$0xff] }
 0x32a   : > { %1887 = vst.msk [vmem:[#allocation3 + $0x90] sm:$0xff] %vm1868_vm10, %v1809_v36 }
 0x32d   : > { %v1801_v52 = vpop.permute.xlu1 %1800  ;;  %v1912_v18 = vld [vmem:[#allocation3 + $0x58] sm:$0xff] }
 0x32e   : > { %1883 = vst.msk [vmem:[#allocation3 + $0x70] sm:$0xff] %vm1868_vm10, %v1801_v52  ;;  %v1805_v51 = vpop.permute.xlu0 %1804  ;;  %v1914_v16 = vld [vmem:[#allocation3 + $0x68] sm:$0xff] }
 0x32f   : > { %4893 = vmatmul.msk.f32.gmra.mxu0 %vm1938_vm11, %v1906_v56  ;;  %1885 = vst.msk [vmem:[#allocation3 + $0x80] sm:$0xff] %vm1868_vm10, %v1805_v51 }
 0x331   : > { %v1815_v61 = vpop.permute.xlu2 %1814  ;;  %v1919_v27 = vld [vmem:[#allocation3 + $0x90] sm:$0xff] }
 0x332   : > { %1890 = vst.msk [vmem:[#allocation3 + $0xa8] sm:$0xff] %vm1868_vm10, %v1815_v61 }
 0x335   : > { %v1807_v4 = vpop.permute.xlu1 %1806  ;;  %v1915_v60 = vld [vmem:[#allocation3 + $0x70] sm:$0xff] }
 0x336   : > { %1886 = vst.msk [vmem:[#allocation3 + $0x88] sm:$0xff] %vm1868_vm10, %v1807_v4  ;;  %v1811_v29 = vpop.permute.xlu0 %1810  ;;  %v1917_v50 = vld [vmem:[#allocation3 + $0x80] sm:$0xff] }
 0x337   : > { %4894 = vmatmul.msk.f32.gmra.mxu0 %vm1938_vm11, %v1907_v62  ;;  %1888 = vst.msk [vmem:[#allocation3 + $0x98] sm:$0xff] %vm1868_vm10, %v1811_v29 }
 0x339   : > { %v1821_v42 = vpop.permute.xlu2 %1820  ;;  %v1922_v23 = vld [vmem:[#allocation3 + $0xa8] sm:$0xff] }
 0x33a   : > { %1893 = vst.msk [vmem:[#allocation3 + $0xc0] sm:$0xff] %vm1868_vm10, %v1821_v42 }
 0x33d   : > { %v1918_v0 = vld [vmem:[#allocation3 + $0x88] sm:$0xff]  ;;  %v1813_v5 = vpop.permute.xlu1 %1812 }
 0x33e   : > { %4905 = vmatmul.msk.f32.vlgmr.msra.gmra.mxu3 %vm1938_vm11, %v1918_v0  ;;  %1889 = vst.msk [vmem:[#allocation3 + $0xa0] sm:$0xff] %vm1868_vm10, %v1813_v5  ;;  %v1817_v45 = vpop.permute.xlu0 %1816  ;;  %v1920_v47 = vld [vmem:[#allocation3 + $0x98] sm:$0xff] }
 0x33f   : > { %4895 = vmatmul.msk.f32.gmra.mxu0 %vm1938_vm11, %v1908_v59  ;;  %1891 = vst.msk [vmem:[#allocation3 + $0xb0] sm:$0xff] %vm1868_vm10, %v1817_v45 }
 0x341   : > { %v1827_v25 = vpop.permute.xlu2 %1826  ;;  %v1925_v8 = vld [vmem:[#allocation3 + $0xc0] sm:$0xff] }
 0x342   : > { %1896 = vst.msk [vmem:[#allocation3 + $0xd8] sm:$0xff] %vm1868_vm10, %v1827_v25 }
 0x345   : > { %v1819_v2 = vpop.permute.xlu1 %1818  ;;  %v1921_v30 = vld [vmem:[#allocation3 + $0xa0] sm:$0xff] }
 0x346   : > { %4906 = vmatmul.msk.f32.gmra.mxu3 %vm1938_vm11, %v1919_v27  ;;  %1892 = vst.msk [vmem:[#allocation3 + $0xb8] sm:$0xff] %vm1868_vm10, %v1819_v2  ;;  %v1823_v63 = vpop.permute.xlu0 %1822  ;;  %v1923_v3 = vld [vmem:[#allocation3 + $0xb0] sm:$0xff] }
 0x347   : > { %4896 = vmatmul.msk.f32.gmra.mxu0 %vm1938_vm11, %v1909_v39  ;;  %1894 = vst.msk [vmem:[#allocation3 + $0xc8] sm:$0xff] %vm1868_vm10, %v1823_v63 }
 0x349   : > { %v1928_v7 = vld [vmem:[#allocation3 + $0xd8] sm:$0xff]  ;;  %v1833_v1 = vpop.permute.xlu2 %1832 }
 0x34a   : > { %1899 = vst.msk [vmem:[#allocation3 + $0xf0] sm:$0xff] %vm1868_vm10, %v1833_v1 }
 0x34d   : > { %v1825_v11 = vpop.permute.xlu1 %1824  ;;  %v1924_v10 = vld [vmem:[#allocation3 + $0xb8] sm:$0xff] }
 0x34e   : > { %4907 = vmatmul.msk.f32.gmra.mxu3 %vm1938_vm11, %v1920_v47  ;;  %1895 = vst.msk [vmem:[#allocation3 + $0xd0] sm:$0xff] %vm1868_vm10, %v1825_v11  ;;  %v1926_v58 = vld [vmem:[#allocation3 + $0xc8] sm:$0xff]  ;;  %v1829_v22 = vpop.permute.xlu0 %1828 }
 0x34f   : > { %4897 = vmatmul.msk.f32.gmra.mxu0 %vm1938_vm11, %v1910_v6  ;;  %1897 = vst.msk [vmem:[#allocation3 + $0xe0] sm:$0xff] %vm1868_vm10, %v1829_v22 }
 0x351   : > { %v1931_v32 = vld [vmem:[#allocation3 + $0xf0] sm:$0xff] }
 0x355   : > { %v1927_v17 = vld [vmem:[#allocation3 + $0xd0] sm:$0xff]  ;;  %v1831_v55 = vpop.permute.xlu1 %1830 }
 0x356   : > { %4908 = vmatmul.msk.f32.gmra.mxu3 %vm1938_vm11, %v1921_v30  ;;  %v1929_v21 = vld [vmem:[#allocation3 + $0xe0] sm:$0xff]  ;;  %v1835_v26 = vpop.permute.xlu0 %1834  ;;  %1898 = vst.msk [vmem:[#allocation3 + $0xe8] sm:$0xff] %vm1868_vm10, %v1831_v55 }
 0x357   : > { %4898 = vmatmul.msk.f32.gmra.mxu0 %vm1938_vm11, %v1911_v33  ;;  %1900 = vst.msk [vmem:[#allocation3 + $0xf8] sm:$0xff] %vm1868_vm10, %v1835_v26 }
 0x35d   : > { %v1930_v24 = vld [vmem:[#allocation3 + $0xe8] sm:$0xff] }
 0x35e   : > { %4909 = vmatmul.msk.f32.gmra.mxu3 %vm1938_vm11, %v1922_v23  ;;  %v1932_v31 = vld [vmem:[#allocation3 + $0xf8] sm:$0xff] }
 0x35f   : > { %4899 = vmatmul.msk.f32.gmra.mxu0 %vm1938_vm11, %v1912_v18 }
 0x366   : > { %4910 = vmatmul.msk.f32.gmra.mxu3 %vm1938_vm11, %v1923_v3 }
 0x367   : > { %4900 = vmatmul.msk.f32.gmra.mxu0 %vm1938_vm11, %v1913_v14 }
 0x36e   : > { %4911 = vmatmul.msk.f32.gmra.mxu3 %vm1938_vm11, %v1924_v10 }
 0x36f   : > { %4901 = vmatmul.msk.f32.gmra.mxu0 %vm1938_vm11, %v1914_v16 }
 0x376   : > { %4912 = vmatmul.msk.f32.gmra.mxu3 %vm1938_vm11, %v1925_v8 }
 0x377   : > { %4902 = vmatmul.msk.f32.gmra.mxu0 %vm1938_vm11, %v1915_v60 }
 0x37e   : > { %4913 = vmatmul.msk.f32.gmra.mxu3 %vm1938_vm11, %v1926_v58 }
 0x37f   : > { %4903 = vmatmul.msk.f32.gmra.mxu0 %vm1938_vm11, %v1916_v15  ;;  %v6280_v28 = vpop.f32.mrf.mxu0 }
 0x380   : > { %v2223_v48 = vmul.f32 %v6280_v28, %v6280_v28  ;;  %v2153_v36 = vsel %vm2152_vm12, %v6280_v28, 0.0 }
 0x382   : > { %v2255_v51 = vsel %vm2152_vm12, %v2223_v48, 0.0 }
 0x386   : > { %4914 = vmatmul.msk.f32.gmra.mxu3 %vm1938_vm11, %v1927_v17 }
 0x387   : > { %4904 = vmatmul.msk.f32.gmra.mxu0 %vm1938_vm11, %v1917_v50 }
 0x38c   : > { %v6303_v34 = vpop.f32.mrf.mxu0 }
 0x38d   : > { %v2224_v53 = vmul.f32 %v6303_v34, %v6303_v34  ;;  %v2154_v52 = vsel %vm2152_vm12, %v6303_v34, 0.0 }
 0x38e   : > { %4915 = vmatmul.msk.f32.gmra.mxu3 %vm1938_vm11, %v1928_v7  ;;  %v2155_v62 = vadd.f32 %v2154_v52, %v2153_v36 }
 0x38f   : > { %v2256_v61 = vsel %vm2152_vm12, %v2224_v53, 0.0 }
 0x390   : > { %v2257_v5 = vadd.f32 %v2256_v61, %v2255_v51 }
 0x394   : > { %v6324_v40 = vpop.f32.mrf.mxu0 }
 0x395   : > { %v2225_v4 = vmul.f32 %v6324_v40, %v6324_v40  ;;  %v2156_v29 = vsel %vm2152_vm12, %v6324_v40, 0.0 }
 0x396   : > { %4916 = vmatmul.msk.f32.gmra.mxu3 %vm1938_vm11, %v1929_v21  ;;  %v2157_v39 = vadd.f32 %v2156_v29, %v2155_v62 }
 0x397   : > { %v2258_v59 = vsel %vm2152_vm12, %v2225_v4, 0.0 }
 0x398   : > { %v2259_v63 = vadd.f32 %v2258_v59, %v2257_v5 }
 0x39c   : > { %v6336_v41 = vpop.f32.mrf.mxu0 }
 0x39d   : > { %v2226_v0 = vmul.f32 %v6336_v41, %v6336_v41  ;;  %v2158_v45 = vsel %vm2152_vm12, %v6336_v41, 0.0 }
 0x39e   : > { %4917 = vmatmul.msk.f32.gmra.mxu3 %vm1938_vm11, %v1930_v24  ;;  %v2159_v30 = vadd.f32 %v2158_v45, %v2157_v39 }
 0x39f   : > { %v2260_v42 = vsel %vm2152_vm12, %v2226_v0, 0.0 }
 0x3a0   : > { %v2261_v13 = vadd.f32 %v2260_v42, %v2259_v63 }
 0x3a4   : > { %v6339_v9 = vpop.f32.mrf.mxu0 }
 0x3a5   : > { %v2227_v27 = vmul.f32 %v6339_v9, %v6339_v9  ;;  %v2160_v47 = vsel %vm2152_vm12, %v6339_v9, 0.0 }
 0x3a6   : > { %4918 = vmatmul.msk.f32.gmra.mxu3 %vm1938_vm11, %v1931_v32  ;;  %v2161_v25 = vadd.f32 %v2160_v47, %v2159_v30 }
 0x3a7   : > { %v2262_v11 = vsel %vm2152_vm12, %v2227_v27, 0.0 }
 0x3a8   : > { %v2263_v16 = vadd.f32 %v2262_v11, %v2261_v13 }
 0x3ac   : > { %v6342_v46 = vpop.f32.mrf.mxu0 }
 0x3ad   : > { %v2228_v6 = vmul.f32 %v6342_v46, %v6342_v46  ;;  %v2162_v23 = vsel %vm2152_vm12, %v6342_v46, 0.0 }
 0x3ae   : > { %4919 = vmatmul.msk.f32.gmra.mxu3 %vm1938_vm11, %v1932_v31  ;;  %v2163_v8 = vadd.f32 %v2162_v23, %v2161_v25 }
 0x3af   : > { %v2264_v3 = vsel %vm2152_vm12, %v2228_v6, 0.0 }
 0x3b0   : > { %v2265_v17 = vadd.f32 %v2264_v3, %v2263_v16 }
 0x3b4   : > { %v6345_v38 = vpop.f32.mrf.mxu0 }
 0x3b5   : > { %v2229_v18 = vmul.f32 %v6345_v38, %v6345_v38  ;;  %v2164_v14 = vsel %vm2152_vm12, %v6345_v38, 0.0 }
 0x3b6   : > { %v2165_v50 = vadd.f32 %v2164_v14, %v2163_v8 }
 0x3b7   : > { %v2266_v60 = vsel %vm2152_vm12, %v2229_v18, 0.0 }
 0x3b8   : > { %v2267_v1 = vadd.f32 %v2266_v60, %v2265_v17 }
 0x3bc   : > { %v6347_v37 = vpop.f32.mrf.mxu0 }
 0x3bd   : > { %v2230_v10 = vmul.f32 %v6347_v37, %v6347_v37  ;;  %v2166_v58 = vsel %vm2152_vm12, %v6347_v37, 0.0 }
 0x3be   : > { %v2167_v26 = vadd.f32 %v2166_v58, %v2165_v50 }
 0x3bf   : > { %v2268_v7 = vsel %vm2152_vm12, %v2230_v10, 0.0 }
 0x3c0   : > { %v2269_v53 = vadd.f32 %v2268_v7, %v2267_v1 }
 0x3c1   : > { %v6349_v44 = vpop.f32.mrf.mxu3 }
 0x3c4   : > { %v6351_v54 = vpop.f32.mrf.mxu0 }
 0x3c5   : > { %v2231_v15 = vmul.f32 %v6351_v54, %v6351_v54  ;;  %v2168_v21 = vsel %vm2152_vm12, %v6351_v54, 0.0 }
 0x3c6   : > { %v2169_v36 = vadd.f32 %v2168_v21, %v2167_v26  ;;  %v2240_v26 = vmul.f32 %v6349_v44, %v6349_v44 }
 0x3c7   : > { %v2270_v32 = vsel %vm2152_vm12, %v2231_v15, 0.0 }
 0x3c8   : > { %v2271_v4 = vadd.f32 %v2270_v32, %v2269_v53 }
 0x3c9   : > { %v6353_v12 = vpop.f32.mrf.mxu3 }
 0x3cc   : > { %v6355_v43 = vpop.f32.mrf.mxu0 }
 0x3cd   : > { %v2232_v55 = vmul.f32 %v6355_v43, %v6355_v43  ;;  %v2170_v31 = vsel %vm2152_vm12, %v6355_v43, 0.0 }
 0x3ce   : > { %v2171_v62 = vadd.f32 %v2170_v31, %v2169_v36  ;;  %v2186_v36 = vsel %vm2152_vm12, %v6349_v44, 0.0 }
 0x3cf   : > { %v2272_v52 = vsel %vm2152_vm12, %v2232_v55, 0.0 }
 0x3d0   : > { %v2273_v45 = vadd.f32 %v2272_v52, %v2271_v4  ;;  %v2241_v52 = vmul.f32 %v6353_v12, %v6353_v12 }
 0x3d1   : > { %v6357_v49 = vpop.f32.mrf.mxu3 }
 0x3d4   : > { %v6359_v57 = vpop.f32.mrf.mxu0 }
 0x3d5   : > { %v2233_v48 = vmul.f32 %v6359_v57, %v6359_v57  ;;  %v2172_v51 = vsel %vm2152_vm12, %v6359_v57, 0.0 }
 0x3d6   : > { %v2173_v27 = vadd.f32 %v2172_v51, %v2171_v62  ;;  %v2288_v62 = vsel %vm2152_vm12, %v2240_v26, 0.0 }
 0x3d7   : > { %v2274_v29 = vsel %vm2152_vm12, %v2233_v48, 0.0 }
 0x3d8   : > { %v2275_v6 = vadd.f32 %v2274_v29, %v2273_v45  ;;  %v2188_v29 = vsel %vm2152_vm12, %v6353_v12, 0.0 }
 0x3d9   : > { %v6361_v19 = vpop.f32.mrf.mxu3 }
 0x3dc   : > { %v6363_v20 = vpop.f32.mrf.mxu0 }
 0x3dd   : > { %v2234_v61 = vmul.f32 %v6363_v20, %v6363_v20  ;;  %v2174_v0 = vsel %vm2152_vm12, %v6363_v20, 0.0 }
 0x3de   : > { %v2175_v63 = vadd.f32 %v2174_v0, %v2173_v27  ;;  %v2242_v0 = vmul.f32 %v6357_v49, %v6357_v49 }
 0x3df   : > { %v2276_v39 = vsel %vm2152_vm12, %v2234_v61, 0.0 }
 0x3e0   : > { %v2277_v13 = vadd.f32 %v2276_v39, %v2275_v6  ;;  %v2290_v39 = vsel %vm2152_vm12, %v2241_v52, 0.0 }
 0x3e1   : > { %v6369_v35 = vpop.f32.mrf.mxu3 }
 0x3e4   : > { %v6375_v56 = vpop.f32.mrf.mxu0 }
 0x3e5   : > { %v2235_v5 = vmul.f32 %v6375_v56, %v6375_v56  ;;  %v2176_v42 = vsel %vm2152_vm12, %v6375_v56, 0.0 }
 0x3e6   : > { %v2177_v25 = vadd.f32 %v2176_v42, %v2175_v63  ;;  %v2190_v42 = vsel %vm2152_vm12, %v6357_v49, 0.0 }
 0x3e7   : > { %v2278_v11 = vsel %vm2152_vm12, %v2235_v5, 0.0 }
 0x3e8   : > { %v2279_v16 = vadd.f32 %v2278_v11, %v2277_v13  ;;  %v2292_v11 = vsel %vm2152_vm12, %v2242_v0, 0.0 }
 0x3e9   : > { %v6390_v2 = vpop.f32.mrf.mxu3 }
 0x3ec   : > { %v6397_v33 = vpop.f32.mrf.mxu0 }
 0x3ed   : > { %v2236_v47 = vmul.f32 %v6397_v33, %v6397_v33  ;;  %v2178_v23 = vsel %vm2152_vm12, %v6397_v33, 0.0 }
 0x3ee   : > { %v2179_v8 = vadd.f32 %v2178_v23, %v2177_v25  ;;  %v2192_v23 = vsel %vm2152_vm12, %v6361_v19, 0.0 }
 0x3ef   : > { %v2280_v3 = vsel %vm2152_vm12, %v2236_v47, 0.0  ;;  %v2243_v47 = vmul.f32 %v6361_v19, %v6361_v19 }
 0x3f0   : > { %v2281_v17 = vadd.f32 %v2280_v3, %v2279_v16  ;;  %v2244_v3 = vmul.f32 %v6369_v35, %v6369_v35  ;;  %v2194_v16 = vsel %vm2152_vm12, %v6369_v35, 0.0 }
 0x3f1   : > { %v6414_v22 = vpop.f32.mrf.mxu3  ;;  %v2294_v25 = vsel %vm2152_vm12, %v2243_v47, 0.0 }
 0x3f4   : > { %v6421_v24 = vpop.f32.mrf.mxu0 }
 0x3f5   : > { %v2237_v18 = vmul.f32 %v6421_v24, %v6421_v24  ;;  %v2180_v14 = vsel %vm2152_vm12, %v6421_v24, 0.0 }
 0x3f6   : > { %v2181_v50 = vadd.f32 %v2180_v14, %v2179_v8 }
 0x3f7   : > { %v2282_v60 = vsel %vm2152_vm12, %v2237_v18, 0.0 }
 0x3f8   : > { %v2283_v21 = vadd.f32 %v2282_v60, %v2281_v17  ;;  %v2296_v60 = vsel %vm2152_vm12, %v2244_v3, 0.0 }
 0x3f9   : > { %v6438_v59 = vpop.f32.mrf.mxu3 }
 0x3fc   : > { %v6445_v30 = vpop.f32.mrf.mxu0 }
 0x3fd   : > { %v2238_v10 = vmul.f32 %v6445_v30, %v6445_v30  ;;  %v2182_v58 = vsel %vm2152_vm12, %v6445_v30, 0.0 }
 0x3fe   : > { %v2183_v55 = vadd.f32 %v2182_v58, %v2181_v50  ;;  %v2245_v58 = vmul.f32 %v6390_v2, %v6390_v2  ;;  %v2196_v50 = vsel %vm2152_vm12, %v6390_v2, 0.0 }
 0x3ff   : > { %v2284_v7 = vsel %vm2152_vm12, %v2238_v10, 0.0 }
 0x400   : > { %v2285_v48 = vadd.f32 %v2284_v7, %v2283_v21  ;;  %v2298_v21 = vsel %vm2152_vm12, %v2245_v58, 0.0 }
 0x401   : > { %v6460_v15 = vpop.f32.mrf.mxu3 }
 0x402   : > { %v2202_v0 = vsel %vm2152_vm12, %v6460_v15, 0.0 }
 0x404   : > { %v6463_v1 = vpop.f32.mrf.mxu0 }
 0x405   : > { %v2184_v32 = vsel %vm2152_vm12, %v6463_v1, 0.0  ;;  %v2239_v31 = vmul.f32 %v6463_v1, %v6463_v1 }
 0x406   : > { %v2185_v53 = vadd.f32 %v2184_v32, %v2183_v55  ;;  %v2246_v55 = vmul.f32 %v6414_v22, %v6414_v22 }
 0x407   : > { %v2286_v51 = vsel %vm2152_vm12, %v2239_v31, 0.0  ;;  %v2198_v31 = vsel %vm2152_vm12, %v6414_v22, 0.0 }
 0x408   : > { %v2187_v61 = vadd.f32 %v2186_v36, %v2185_v53  ;;  %v2287_v4 = vadd.f32 %v2286_v51, %v2285_v48  ;;  %v2300_v53 = vsel %vm2152_vm12, %v2246_v55, 0.0  ;;  %v2247_v36 = vmul.f32 %v6438_v59, %v6438_v59 }
 0x409   : > { %v6481_v5 = vpop.f32.mrf.mxu3  ;;  %v2200_v51 = vsel %vm2152_vm12, %v6438_v59, 0.0 }
 0x40a   : > { %v2189_v45 = vadd.f32 %v2188_v29, %v2187_v61  ;;  %v2289_v27 = vadd.f32 %v2288_v62, %v2287_v4  ;;  %v2302_v4 = vsel %vm2152_vm12, %v2247_v36, 0.0  ;;  %v2248_v62 = vmul.f32 %v6460_v15, %v6460_v15 }
 0x40c   : > { %v2191_v6 = vadd.f32 %v2190_v42, %v2189_v45  ;;  %v2291_v63 = vadd.f32 %v2290_v39, %v2289_v27  ;;  %v2304_v39 = vsel %vm2152_vm12, %v2248_v62, 0.0  ;;  %v2249_v42 = vmul.f32 %v6481_v5, %v6481_v5 }
 0x40e   : > { %v2293_v18 = vadd.f32 %v2292_v11, %v2291_v63  ;;  %v2193_v13 = vadd.f32 %v2192_v23, %v2191_v6  ;;  %v2204_v6 = vsel %vm2152_vm12, %v6481_v5, 0.0  ;;  %v2306_v11 = vsel %vm2152_vm12, %v2249_v42, 0.0 }
 0x410   : > { %v2295_v14 = vadd.f32 %v2294_v25, %v2293_v18  ;;  %v2195_v8 = vadd.f32 %v2194_v16, %v2193_v13 }
 0x411   : > { %v6494_v10 = vpop.f32.mrf.mxu3 }
 0x412   : > { %v2297_v17 = vadd.f32 %v2296_v60, %v2295_v14  ;;  %v2197_v7 = vadd.f32 %v2196_v50, %v2195_v8  ;;  %v2250_v23 = vmul.f32 %v6494_v10, %v6494_v10  ;;  %v2206_v13 = vsel %vm2152_vm12, %v6494_v10, 0.0 }
 0x414   : > { %v2299_v26 = vadd.f32 %v2298_v21, %v2297_v17  ;;  %v2199_v48 = vadd.f32 %v2198_v31, %v2197_v7  ;;  %v2308_v14 = vsel %vm2152_vm12, %v2250_v23, 0.0 }
 0x416   : > { %v2301_v52 = vadd.f32 %v2300_v53, %v2299_v26  ;;  %v2201_v61 = vadd.f32 %v2200_v51, %v2199_v48 }
 0x418   : > { %v2303_v29 = vadd.f32 %v2302_v4, %v2301_v52  ;;  %v2203_v45 = vadd.f32 %v2202_v0, %v2201_v61 }
 0x419   : > { %v6506_v32 = vpop.f32.mrf.mxu3 }
 0x41a   : > { %v2305_v47 = vadd.f32 %v2304_v39, %v2303_v29  ;;  %v2205_v63 = vadd.f32 %v2204_v6, %v2203_v45  ;;  %v2251_v16 = vmul.f32 %v6506_v32, %v6506_v32  ;;  %v2208_v58 = vsel %vm2152_vm12, %v6506_v32, 0.0 }
 0x41c   : > { %v2307_v18 = vadd.f32 %v2306_v11, %v2305_v47  ;;  %v2207_v25 = vadd.f32 %v2206_v13, %v2205_v63  ;;  %v2310_v21 = vsel %vm2152_vm12, %v2251_v16, 0.0  ;;  %v2651_v16 = vld [vmem:[#allocation4 + $0x9] sm:$0xff] }
 0x41d   : > { %2716 = vrot.lane.b32.xlu2 %v2651_v16, %s5005_s19 }
 0x41e   : > { %v2309_v60 = vadd.f32 %v2308_v14, %v2307_v18  ;;  %v2209_v7 = vadd.f32 %v2208_v58, %v2207_v25 }
 0x420   : > { %v2311_v31 = vadd.f32 %v2310_v21, %v2309_v60 }
 0x421   : > { %v6520_v27 = vpop.f32.mrf.mxu3 }
 0x422   : > { %v2252_v8 = vmul.f32 %v6520_v27, %v6520_v27  ;;  %v2210_v17 = vsel %vm2152_vm12, %v6520_v27, 0.0 }
 0x423   : > { %v2211_v48 = vadd.f32 %v2210_v17, %v2209_v7 }
 0x424   : > { %v2312_v55 = vsel %vm2152_vm12, %v2252_v8, 0.0 }
 0x425   : > { %v2313_v36 = vadd.f32 %v2312_v55, %v2311_v31 }
 0x429   : > { %v6532_v3 = vpop.f32.mrf.mxu3 }
 0x42a   : > { %v2253_v50 = vmul.f32 %v6532_v3, %v6532_v3  ;;  %v2212_v26 = vsel %vm2152_vm12, %v6532_v3, 0.0 }
 0x42b   : > { %v2213_v52 = vadd.f32 %v2212_v26, %v2211_v48 }
 0x42c   : > { %v2314_v53 = vsel %vm2152_vm12, %v2253_v50, 0.0  ;;  %v2650_v50 = vld [vmem:[#allocation4 + $0x1] sm:$0xff] }
 0x42d   : > { %v2315_v62 = vadd.f32 %v2314_v53, %v2313_v36  ;;  %2714 = vrot.lane.b32.xlu1 %v2650_v50, %s5005_s19 }
 0x431   : > { %v2149_v51 = vpop.f32.mrf.mxu3 }
 0x432   : > { %v2214_v61 = vsel %vm2152_vm12, %v2149_v51, 0.0  ;;  %v2254_v4 = vmul.f32 %v2149_v51, %v2149_v51 }
 0x433   : > { %v2215_v29 = vadd.f32 %v2214_v61, %v2213_v52 }
 0x434   : > { %v2316_v0 = vsel %vm2152_vm12, %v2254_v4, 0.0 }
 0x435   : > { %v2216_v45 = vrot.slane %v2215_v29, 4  ;;  %v2317_v39 = vadd.f32 %v2316_v0, %v2315_v62 }
 0x437   : > { %v2217_v42 = vadd.f32 %v2216_v45, %v2215_v29  ;;  %v2318_v47 = vrot.slane %v2317_v39, 4 }
 0x439   : > { %v2218_v6 = vrot.slane %v2217_v42, 2  ;;  %v2319_v63 = vadd.f32 %v2318_v47, %v2317_v39 }
 0x43b   : > { %v2219_v11 = vadd.f32 %v2218_v6, %v2217_v42  ;;  %v2320_v23 = vrot.slane %v2319_v63, 2 }
 0x43d   : > { %v2220_v18 = vrot.slane %v2219_v11, 1  ;;  %v2321_v13 = vadd.f32 %v2320_v23, %v2319_v63 }
 0x43f   : > { %v2221_v25 = vadd.f32 %v2220_v18, %v2219_v11  ;;  %v2322_v14 = vrot.slane %v2321_v13, 1 }
 0x441   : > { %v6552_v8 = vmul.f32 0.00390625, %v2221_v25  ;;  %v2323_v60 = vadd.f32 %v2322_v14, %v2321_v13 }
 0x443   : > { %v2324_v58 = vmul.f32 0.00390625, %v2323_v60  ;;  %v2325_v17 = vmul.f32 %v6552_v8, %v6552_v8  ;;  %v2354_v55 = vsub.f32 %v6494_v10, %v6552_v8  ;;  %v2355_v26 = vsub.f32 %v6506_v32, %v6552_v8 }
 0x444   : > { %v2356_v31 = vsub.f32 %v6520_v27, %v6552_v8  ;;  %v2357_v48 = vsub.f32 %v6532_v3, %v6552_v8  ;;  %v2358_v29 = vsub.f32 %v2149_v51, %v6552_v8  ;;  %v2327_v47 = vsub.f32 %v6280_v28, %v6552_v8 }
 0x445   : > { %v2326_v7 = vsub.f32 %v2324_v58, %v2325_v17  ;;  %v2328_v6 = vsub.f32 %v6303_v34, %v6552_v8  ;;  %v2329_v63 = vsub.f32 %v6324_v40, %v6552_v8  ;;  %v2330_v51 = vsub.f32 %v6336_v41, %v6552_v8 }
 0x446   : > { %v2331_v11 = vsub.f32 %v6339_v9, %v6552_v8  ;;  %v2332_v23 = vsub.f32 %v6342_v46, %v6552_v8  ;;  %v2333_v18 = vsub.f32 %v6345_v38, %v6552_v8  ;;  %v2334_v28 = vsub.f32 %v6347_v37, %v6552_v8 }
 0x447   : > { %v2359_v21 = vadd.f32 1e-05, %v2326_v7  ;;  %v2335_v34 = vsub.f32 %v6351_v54, %v6552_v8  ;;  %v2336_v40 = vsub.f32 %v6355_v43, %v6552_v8  ;;  %v2337_v41 = vsub.f32 %v6359_v57, %v6552_v8 }
 0x448   : > { %v2338_v9 = vsub.f32 %v6363_v20, %v6552_v8  ;;  %v2339_v46 = vsub.f32 %v6375_v56, %v6552_v8  ;;  %v2340_v37 = vsub.f32 %v6397_v33, %v6552_v8  ;;  %v2341_v54 = vsub.f32 %v6421_v24, %v6552_v8 }
 0x449   : > { %4991 = vrsqrt.f32 %v2359_v21  ;;  %vm2366_vm15 = vweird.f32 %v2359_v21  ;;  %v2342_v43 = vsub.f32 %v6445_v30, %v6552_v8  ;;  %v2343_v57 = vsub.f32 %v6463_v1, %v6552_v8 }
 0x44a   : > { %v2344_v20 = vsub.f32 %v6349_v44, %v6552_v8  ;;  %v2345_v56 = vsub.f32 %v6353_v12, %v6552_v8  ;;  %v2346_v33 = vsub.f32 %v6357_v49, %v6552_v8  ;;  %v2347_v24 = vsub.f32 %v6361_v19, %v6552_v8 }
 0x44b   : > { %v2348_v30 = vsub.f32 %v6369_v35, %v6552_v8  ;;  %v2349_v1 = vsub.f32 %v6390_v2, %v6552_v8  ;;  %v2350_v16 = vsub.f32 %v6414_v22, %v6552_v8  ;;  %v2351_v17 = vsub.f32 %v6438_v59, %v6552_v8 }
 0x44f   : > { %v4992_v53 = vpop.eup %4991 }
 0x450   : > { %v2361_v36 = vmul.f32 %v4992_v53, %v2359_v21  ;;  %vm2367_vm14 = vweird.f32 %v4992_v53  ;;  %v2352_v21 = vsub.f32 %v6460_v15, %v6552_v8 }
 0x451   : > { %vm2368_vm0 = vmor %vm2366_vm15, %vm2367_vm14 }
 0x452   : > { %v2362_v52 = vmul.f32 %v4992_v53, %v2361_v36 }
 0x454   : > { %v2363_v61 = vmul.f32 0.5, %v2362_v52  ;;  %v2353_v52 = vsub.f32 %v6481_v5, %v6552_v8 }
 0x456   : > { %v2364_v4 = vsub.f32 1.5, %v2363_v61 }
 0x458   : > { %v2365_v62 = vmul.f32 %v4992_v53, %v2364_v4 }
 0x45a   : > { %v6567_v0 = vsel %vm2368_vm0, %v4992_v53, %v2365_v62 }
 0x45b   : > { %v2401_v45 = vmul.f32 %v6567_v0, %v2358_v29  ;;  %v2372_v38 = vmul.f32 %v6567_v0, %v2329_v63  ;;  %v2371_v13 = vmul.f32 %v6567_v0, %v2328_v6  ;;  %v2370_v25 = vmul.f32 %v6567_v0, %v2327_v47 }
 0x45c   : > { %v2373_v14 = vmul.f32 %v6567_v0, %v2330_v51  ;;  %v2374_v60 = vmul.f32 %v6567_v0, %v2331_v11  ;;  %v2375_v50 = vmul.f32 %v6567_v0, %v2332_v23  ;;  %v2376_v53 = vmul.f32 %v6567_v0, %v2333_v18 }
 0x45d   : > { %vm2433_vm1 = vcmp.ge.f32.partialorder %v2401_v45, 0.0  ;;  %v2465_v39 = vmul.f32 0.01, %v2401_v45  ;;  %v2436_v58 = vmul.f32 0.01, %v2372_v38  ;;  %vm2404_vm2 = vcmp.ge.f32.partialorder %v2372_v38, 0.0 }
 0x45e   : > { %v2435_v7 = vmul.f32 0.01, %v2371_v13  ;;  %vm2403_vm3 = vcmp.ge.f32.partialorder %v2371_v13, 0.0  ;;  %v2434_v36 = vmul.f32 0.01, %v2370_v25  ;;  %v2377_v61 = vmul.f32 %v6567_v0, %v2334_v28 }
 0x45f   : > { %v2497_v42 = vsel %vm2433_vm1, %v2401_v45, %v2465_v39  ;;  %vm2402_vm4 = vcmp.ge.f32.partialorder %v2370_v25, 0.0  ;;  %v2437_v4 = vmul.f32 0.01, %v2373_v14  ;;  %v2378_v62 = vmul.f32 %v6567_v0, %v2335_v34 }
 0x460   : > { %2585 = vst.msk [vmem:[#allocation4 + $0x189] sm:$0xff] %vm2152_vm12, %v2497_v42  ;;  %vm2405_vm5 = vcmp.ge.f32.partialorder %v2373_v14, 0.0  ;;  %v2438_v29 = vmul.f32 0.01, %v2374_v60  ;;  %v2468_v45 = vsel %vm2404_vm2, %v2372_v38, %v2436_v58  ;;  %v2379_v39 = vmul.f32 %v6567_v0, %v2336_v40 }
 0x461   : > { %vm2406_vm6 = vcmp.ge.f32.partialorder %v2374_v60, 0.0  ;;  %v2439_v42 = vmul.f32 0.01, %v2375_v50  ;;  %v2467_v47 = vsel %vm2403_vm3, %v2371_v13, %v2435_v7  ;;  %v2380_v6 = vmul.f32 %v6567_v0, %v2337_v41  ;;  %2556 = vst.msk [vmem:[#allocation4 + $0x31] sm:$0xff] %vm2152_vm12, %v2468_v45 }
 0x462   : > { %vm2407_vm7 = vcmp.ge.f32.partialorder %v2375_v50, 0.0  ;;  %v2440_v63 = vmul.f32 0.01, %v2376_v53  ;;  %v2466_v51 = vsel %vm2402_vm4, %v2370_v25, %v2434_v36  ;;  %v2381_v11 = vmul.f32 %v6567_v0, %v2338_v9  ;;  %2555 = vst.msk [vmem:[#allocation4 + $0x21] sm:$0xff] %vm2152_vm12, %v2467_v47 }
 0x463   : > { %vm2408_vm8 = vcmp.ge.f32.partialorder %v2376_v53, 0.0  ;;  %v2441_v23 = vmul.f32 0.01, %v2377_v61  ;;  %v2469_v18 = vsel %vm2405_vm5, %v2373_v14, %v2437_v4  ;;  %v2382_v28 = vmul.f32 %v6567_v0, %v2339_v46  ;;  %2554 = vst.msk [vmem:[#allocation4 + $0x19] sm:$0xff] %vm2152_vm12, %v2466_v51 }
 0x464   : > { %vm2409_vm9 = vcmp.ge.f32.partialorder %v2377_v61, 0.0  ;;  %v2442_v34 = vmul.f32 0.01, %v2378_v62  ;;  %v2470_v40 = vsel %vm2406_vm6, %v2374_v60, %v2438_v29  ;;  %v2383_v38 = vmul.f32 %v6567_v0, %v2340_v37  ;;  %2557 = vst.msk [vmem:[#allocation4 + $0x39] sm:$0xff] %vm2152_vm12, %v2469_v18 }
 0x465   : > { %vm2410_vm10 = vcmp.ge.f32.partialorder %v2378_v62, 0.0  ;;  %v2443_v41 = vmul.f32 0.01, %v2379_v39  ;;  %v2471_v13 = vsel %vm2407_vm7, %v2375_v50, %v2439_v42  ;;  %v2384_v9 = vmul.f32 %v6567_v0, %v2341_v54  ;;  %2558 = vst.msk [vmem:[#allocation4 + $0x49] sm:$0xff] %vm2152_vm12, %v2470_v40 }
 0x466   : > { %vm2411_vm11 = vcmp.ge.f32.partialorder %v2379_v39, 0.0  ;;  %v2444_v25 = vmul.f32 0.01, %v2380_v6  ;;  %v2472_v14 = vsel %vm2408_vm8, %v2376_v53, %v2440_v63  ;;  %v2385_v46 = vmul.f32 %v6567_v0, %v2342_v43  ;;  %2559 = vst.msk [vmem:[#allocation4 + $0x51] sm:$0xff] %vm2152_vm12, %v2471_v13 }
 0x467   : > { %vm2412_vm13 = vcmp.ge.f32.partialorder %v2380_v6, 0.0  ;;  %v2445_v60 = vmul.f32 0.01, %v2381_v11  ;;  %v2473_v37 = vsel %vm2409_vm9, %v2377_v61, %v2441_v23  ;;  %v2386_v58 = vmul.f32 %v6567_v0, %v2343_v57  ;;  %2560 = vst.msk [vmem:[#allocation4 + $0x61] sm:$0xff] %vm2152_vm12, %v2472_v14 }
 0x468   : > { %vm2413_vm14 = vcmp.ge.f32.partialorder %v2381_v11, 0.0  ;;  %v2446_v50 = vmul.f32 0.01, %v2382_v28  ;;  %v2474_v54 = vsel %vm2410_vm10, %v2378_v62, %v2442_v34  ;;  %v2387_v7 = vmul.f32 %v6567_v0, %v2344_v20  ;;  %v6662_v61 = vld [vmem:[#allocation4 + $0x31] sm:$0xff]  ;;  %2561 = vst.msk [vmem:[#allocation4 + $0x69] sm:$0xff] %vm2152_vm12, %v2473_v37 }
 0x469   : > { %vm2414_vm15 = vcmp.ge.f32.partialorder %v2382_v28, 0.0  ;;  %v2447_v43 = vmul.f32 0.01, %v2383_v38  ;;  %v2475_v53 = vsel %vm2411_vm11, %v2379_v39, %v2443_v41  ;;  %v2388_v57 = vmul.f32 %v6567_v0, %v2345_v56  ;;  %2722 = vrot.lane.b32.xlu2 %v6662_v61, %s5005_s19  ;;  %v6673_v56 = vld [vmem:[#allocation4 + $0x21] sm:$0xff]  ;;  %2562 = vst.msk [vmem:[#allocation4 + $0x79] sm:$0xff] %vm2152_vm12, %v2474_v54  ;;  %v6783_v54 = vld [vmem:[#allocation4 + $0x30] sm:$0xff] }
 0x46a   : > { %vm2415_vm0 = vcmp.ge.f32.partialorder %v2383_v38, 0.0  ;;  %v2448_v36 = vmul.f32 0.01, %v2384_v9  ;;  %v2476_v4 = vsel %vm2412_vm13, %v2380_v6, %v2444_v25  ;;  %v2389_v44 = vmul.f32 %v6567_v0, %v2346_v33  ;;  %2720 = vrot.lane.b32.xlu1 %v6673_v56, %s5005_s19  ;;  %2563 = vst.msk [vmem:[#allocation4 + $0x81] sm:$0xff] %vm2152_vm12, %v2475_v53  ;;  %v6684_v29 = vld [vmem:[#allocation4 + $0x19] sm:$0xff] }
 0x46b   : > { %vm2416_vm1 = vcmp.ge.f32.partialorder %v2384_v9, 0.0  ;;  %v2449_v20 = vmul.f32 0.01, %v2385_v46  ;;  %v2477_v12 = vsel %vm2413_vm14, %v2381_v11, %v2445_v60  ;;  %v2390_v62 = vmul.f32 %v6567_v0, %v2347_v24  ;;  %2564 = vst.msk [vmem:[#allocation4 + $0x91] sm:$0xff] %vm2152_vm12, %v2476_v4  ;;  %2718 = vrot.lane.b32.xlu0 %v6684_v29, %s5005_s19  ;;  %v6803_v4 = vld [vmem:[#allocation4 + $0x20] sm:$0xff] }
 0x46c   : > { %vm2417_vm2 = vcmp.ge.f32.partialorder %v2385_v46, 0.0  ;;  %v2450_v49 = vmul.f32 0.01, %v2386_v58  ;;  %v2478_v33 = vsel %vm2414_vm15, %v2382_v28, %v2446_v50  ;;  %v2391_v45 = vmul.f32 %v6567_v0, %v2348_v30  ;;  %2565 = vst.msk [vmem:[#allocation4 + $0x99] sm:$0xff] %vm2152_vm12, %v2477_v12  ;;  %v6734_v5 = vld [vmem:[#allocation4 + $0x49] sm:$0xff]  ;;  %v6744_v28 = vld [vmem:[#allocation4 + $0x39] sm:$0xff] }
 0x46d   : > { %vm2418_vm3 = vcmp.ge.f32.partialorder %v2386_v58, 0.0  ;;  %v2451_v19 = vmul.f32 0.01, %v2387_v7  ;;  %v2479_v24 = vsel %vm2415_vm0, %v2383_v38, %v2447_v43  ;;  %v2392_v39 = vmul.f32 %v6567_v0, %v2349_v1  ;;  %2566 = vst.msk [vmem:[#allocation4 + $0xa9] sm:$0xff] %vm2152_vm12, %v2478_v33  ;;  %v6724_v15 = vld [vmem:[#allocation4 + $0x51] sm:$0xff] }
 0x46e   : > { %vm2419_vm4 = vcmp.ge.f32.partialorder %v2387_v7, 0.0  ;;  %v2452_v42 = vmul.f32 0.01, %v2388_v57  ;;  %v2480_v35 = vsel %vm2416_vm1, %v2384_v9, %v2448_v36  ;;  %v2393_v30 = vmul.f32 %v6567_v0, %v2350_v16  ;;  %2567 = vst.msk [vmem:[#allocation4 + $0xb1] sm:$0xff] %vm2152_vm12, %v2479_v24  ;;  %v6776_v37 = vld [vmem:[#allocation4 + $0x61] sm:$0xff] }
 0x46f   : > { %vm2420_vm5 = vcmp.ge.f32.partialorder %v2388_v57, 0.0  ;;  %v2453_v47 = vmul.f32 0.01, %v2389_v44  ;;  %v2481_v6 = vsel %vm2417_vm2, %v2385_v46, %v2449_v20  ;;  %v2394_v2 = vmul.f32 %v6567_v0, %v2351_v17  ;;  %2568 = vst.msk [vmem:[#allocation4 + $0xc1] sm:$0xff] %vm2152_vm12, %v2480_v35  ;;  %v6771_v46 = vld [vmem:[#allocation4 + $0x69] sm:$0xff]  ;;  %v6811_v20 = vld [vmem:[#allocation4 + $0x18] sm:$0xff] }
 0x470   : > { %vm2421_vm6 = vcmp.ge.f32.partialorder %v2389_v44, 0.0  ;;  %v2454_v1 = vmul.f32 0.01, %v2390_v62  ;;  %v2482_v63 = vsel %vm2418_vm3, %v2386_v58, %v2450_v49  ;;  %v2395_v22 = vmul.f32 %v6567_v0, %v2352_v21  ;;  %2569 = vst.msk [vmem:[#allocation4 + $0xc9] sm:$0xff] %vm2152_vm12, %v2481_v6  ;;  %v6766_v25 = vld [vmem:[#allocation4 + $0x79] sm:$0xff] }
 0x471   : > { %vm2422_vm7 = vcmp.ge.f32.partialorder %v2390_v62, 0.0  ;;  %v2455_v16 = vmul.f32 0.01, %v2391_v45  ;;  %v2483_v51 = vsel %vm2419_vm4, %v2387_v7, %v2451_v19  ;;  %v2396_v59 = vmul.f32 %v6567_v0, %v2353_v52  ;;  %2570 = vst.msk [vmem:[#allocation4 + $0xd9] sm:$0xff] %vm2152_vm12, %v2482_v63  ;;  %2728 = vrot.lane.b32.xlu2 %v6724_v15, %s5005_s19  ;;  %v6786_v7 = vld [vmem:[#allocation4 + $0x50] sm:$0xff]  ;;  %v6789_v43 = vld [vmem:[#allocation4 + $0x78] sm:$0xff] }
 0x472   : > { %vm2423_vm8 = vcmp.ge.f32.partialorder %v2391_v45, 0.0  ;;  %v2456_v17 = vmul.f32 0.01, %v2392_v39  ;;  %v2484_v11 = vsel %vm2420_vm5, %v2388_v57, %v2452_v42  ;;  %v2397_v21 = vmul.f32 %v6567_v0, %v2354_v55  ;;  %2571 = vst.msk [vmem:[#allocation4 + $0xe1] sm:$0xff] %vm2152_vm12, %v2483_v51  ;;  %2726 = vrot.lane.b32.xlu1 %v6734_v5, %s5005_s19  ;;  %v6799_v36 = vld [vmem:[#allocation4 + $0x91] sm:$0xff]  ;;  %v6839_v24 = vld [vmem:[#allocation4 + $0x60] sm:$0xff] }
 0x473   : > { %vm2424_vm9 = vcmp.ge.f32.partialorder %v2392_v39, 0.0  ;;  %v2457_v23 = vmul.f32 0.01, %v2393_v30  ;;  %v2485_v18 = vsel %vm2421_vm6, %v2389_v44, %v2453_v47  ;;  %v2398_v52 = vmul.f32 %v6567_v0, %v2355_v26  ;;  %2572 = vst.msk [vmem:[#allocation4 + $0xf1] sm:$0xff] %vm2152_vm12, %v2484_v11  ;;  %2724 = vrot.lane.b32.xlu0 %v6744_v28, %s5005_s19  ;;  %v6791_v53 = vld [vmem:[#allocation4 + $0x99] sm:$0xff]  ;;  %v6807_v44 = vld [vmem:[#allocation4 + $0x81] sm:$0xff] }
 0x474   : > { %vm2425_vm10 = vcmp.ge.f32.partialorder %v2393_v30, 0.0  ;;  %v2458_v10 = vmul.f32 0.01, %v2394_v2  ;;  %v2486_v55 = vsel %vm2422_vm7, %v2390_v62, %v2454_v1  ;;  %v2399_v34 = vmul.f32 %v6567_v0, %v2356_v31  ;;  %2573 = vst.msk [vmem:[#allocation4 + $0xf9] sm:$0xff] %vm2152_vm12, %v2485_v18  ;;  %v6795_v57 = vld [vmem:[#allocation4 + $0x98] sm:$0xff]  ;;  %v6821_v62 = vld [vmem:[#allocation4 + $0x48] sm:$0xff] }
 0x475   : > { %vm2426_vm11 = vcmp.ge.f32.partialorder %v2394_v2, 0.0  ;;  %v2459_v32 = vmul.f32 0.01, %v2395_v22  ;;  %v2487_v26 = vsel %vm2423_vm8, %v2391_v45, %v2455_v16  ;;  %v2400_v40 = vmul.f32 %v6567_v0, %v2357_v48  ;;  %2574 = vst.msk [vmem:[#allocation4 + $0x109] sm:$0xff] %vm2152_vm12, %v2486_v55  ;;  %v6825_v49 = vld [vmem:[#allocation4 + $0x38] sm:$0xff]  ;;  %v6833_v45 = vld [vmem:[#allocation4 + $0x68] sm:$0xff] }
 0x476   : > { %vm2427_vm13 = vcmp.ge.f32.partialorder %v2395_v22, 0.0  ;;  %v2460_v38 = vmul.f32 0.01, %v2396_v59  ;;  %v2488_v27 = vsel %vm2424_vm9, %v2392_v39, %v2456_v17  ;;  %vm2428_vm14 = vcmp.ge.f32.partialorder %v2396_v59, 0.0  ;;  %2575 = vst.msk [vmem:[#allocation4 + $0x111] sm:$0xff] %vm2152_vm12, %v2487_v26  ;;  %v6817_v12 = vld [vmem:[#allocation4 + $0xc0] sm:$0xff] }
 0x477   : > { %v2461_v31 = vmul.f32 0.01, %v2397_v21  ;;  %v2489_v41 = vsel %vm2425_vm10, %v2393_v30, %v2457_v23  ;;  %vm2429_vm15 = vcmp.ge.f32.partialorder %v2397_v21, 0.0  ;;  %v2462_v13 = vmul.f32 0.01, %v2398_v52  ;;  %2576 = vst.msk [vmem:[#allocation4 + $0x121] sm:$0xff] %vm2152_vm12, %v2488_v27  ;;  %v2717_v27 = vpop.permute.xlu2 %2716 }
 0x478   : > { %v2490_v9 = vsel %vm2426_vm11, %v2394_v2, %v2458_v10  ;;  %vm2430_vm0 = vcmp.ge.f32.partialorder %v2398_v52, 0.0  ;;  %v2463_v3 = vmul.f32 0.01, %v2399_v34  ;;  %v2491_v8 = vsel %vm2427_vm13, %v2395_v22, %v2459_v32  ;;  %2577 = vst.msk [vmem:[#allocation4 + $0x129] sm:$0xff] %vm2152_vm12, %v2489_v41  ;;  %v6835_v19 = vld [vmem:[#allocation4 + $0xc1] sm:$0xff]  ;;  %v6843_v39 = vld [vmem:[#allocation4 + $0xb1] sm:$0xff] }
 0x479   : > { %vm2431_vm1 = vcmp.ge.f32.partialorder %v2399_v34, 0.0  ;;  %v2464_v48 = vmul.f32 0.01, %v2400_v40  ;;  %v2492_v0 = vsel %vm2428_vm14, %v2396_v59, %v2460_v38  ;;  %vm2432_vm2 = vcmp.ge.f32.partialorder %v2400_v40, 0.0  ;;  %2578 = vst.msk [vmem:[#allocation4 + $0x139] sm:$0xff] %vm2152_vm12, %v2490_v9  ;;  %2734 = vrot.lane.b32.xlu2 %v6766_v25, %s5005_s19  ;;  %v6829_v33 = vld [vmem:[#allocation4 + $0xe0] sm:$0xff] }
 0x47a   : > { %v2493_v14 = vsel %vm2429_vm15, %v2397_v21, %v2461_v31  ;;  %v2494_v60 = vsel %vm2430_vm0, %v2398_v52, %v2462_v13  ;;  %2579 = vst.msk [vmem:[#allocation4 + $0x141] sm:$0xff] %vm2152_vm12, %v2491_v8  ;;  %2732 = vrot.lane.b32.xlu1 %v6771_v46, %s5005_s19  ;;  %v2495_v58 = vsel %vm2431_vm1, %v2399_v34, %v2463_v3  ;;  %v6851_v35 = vld [vmem:[#allocation4 + $0xa9] sm:$0xff]  ;;  %v6861_v47 = vld [vmem:[#allocation4 + $0x80] sm:$0xff]  ;;  %v6883_v16 = vld [vmem:[#allocation4 + $0xd8] sm:$0xff]  ;;  %vm2810_vm3 = vcmask 130112  }
 0x47b   : > { %2580 = vst.msk [vmem:[#allocation4 + $0x151] sm:$0xff] %vm2152_vm12, %v2492_v0  ;;  %2730 = vrot.lane.b32.xlu0 %v6776_v37, %s5005_s19  ;;  %v2496_v50 = vsel %vm2432_vm2, %v2400_v40, %v2464_v48  ;;  %v6855_v30 = vld [vmem:[#allocation4 + $0x90] sm:$0xff]  ;;  %v6873_v1 = vld [vmem:[#allocation4 + $0xa8] sm:$0xff]  ;;  %v6887_v51 = vld [vmem:[#allocation4 + $0xd9] sm:$0xff]  ;;  %vm3003_vm4 = vcmask 195712   ;;  %vm3196_vm5 = vcmask 261312  }
 0x47c   : > { %2581 = vst.msk [vmem:[#allocation4 + $0x159] sm:$0xff] %vm2152_vm12, %v2493_v14  ;;  %v6847_v42 = vld [vmem:[#allocation4 + $0x108] sm:$0xff]  ;;  %v6869_v2 = vld [vmem:[#allocation4 + $0xb0] sm:$0xff]  ;;  %v6905_v21 = vld [vmem:[#allocation4 + $0xf8] sm:$0xff]  ;;  %vm3389_vm6 = vcmask 326912   ;;  %vm3582_vm7 = vcmask 392512  }
 0x47d   : > { %2582 = vst.msk [vmem:[#allocation4 + $0x169] sm:$0xff] %vm2152_vm12, %v2494_v60  ;;  %v6879_v22 = vld [vmem:[#allocation4 + $0xe1] sm:$0xff]  ;;  %v6895_v17 = vld [vmem:[#allocation4 + $0xc9] sm:$0xff]  ;;  %v6931_v32 = vld [vmem:[#allocation4 + $0xf9] sm:$0xff]  ;;  %vm3776_vm8 = vcmask 458112   ;;  %vm3969_vm9 = vcmask 523712  }
 0x47e   : > { %2583 = vst.msk [vmem:[#allocation4 + $0x171] sm:$0xff] %vm2152_vm12, %v2495_v58  ;;  %v6891_v59 = vld [vmem:[#allocation4 + $0xc8] sm:$0xff]  ;;  %v6909_v23 = vld [vmem:[#allocation4 + $0xf0] sm:$0xff]  ;;  %v6913_v18 = vld [vmem:[#allocation4 + $0x120] sm:$0xff]  ;;  %vm4162_vm10 = vcmask 589312   ;;  %vm4236_vm11 = vcmask 588800  }
 0x47f   : > { %2584 = vst.msk [vmem:[#allocation4 + $0x181] sm:$0xff] %vm2152_vm12, %v2496_v50  ;;  %v6865_v6 = vld [vmem:[#allocation4 + $0x128] sm:$0xff]  ;;  %v6917_v52 = vld [vmem:[#allocation4 + $0x110] sm:$0xff]  ;;  %v2586_v58 = vld [vmem:[#allocation4] sm:$0xff] }
 0x480   : > { %2622 = vst.msk [vmem:[#allocation5 + $0x20] sm:$0xff] %vm2152_vm12, %v6783_v54  ;;  %v6923_v55 = vld [vmem:[#allocation4 + $0x109] sm:$0xff]  ;;  %v6927_v34 = vld [vmem:[#allocation4 + $0x138] sm:$0xff]  ;;  %v6959_v13 = vld [vmem:[#allocation4 + $0x121] sm:$0xff] }
 0x481   : > { %2740 = vrot.lane.b32.xlu2 %v6791_v53, %s5005_s19  ;;  %2625 = vst.msk [vmem:[#allocation5 + $0x38] sm:$0xff] %vm2152_vm12, %v6786_v7  ;;  %v6921_v10 = vld [vmem:[#allocation4 + $0x140] sm:$0xff]  ;;  %v6937_v26 = vld [vmem:[#allocation4 + $0xf1] sm:$0xff]  ;;  %v2587_v40 = vld [vmem:[#allocation4 + $0x8] sm:$0xff] }
 0x482   : > { %2738 = vrot.lane.b32.xlu1 %v6799_v36, %s5005_s19  ;;  %2628 = vst.msk [vmem:[#allocation5 + $0x50] sm:$0xff] %vm2152_vm12, %v6789_v43  ;;  %v6877_v63 = vld [vmem:[#allocation4 + $0x150] sm:$0xff]  ;;  %v6971_v8 = vld [vmem:[#allocation4 + $0x141] sm:$0xff]  ;;  %v6975_v48 = vld [vmem:[#allocation4 + $0x139] sm:$0xff] }
 0x483   : > { %2736 = vrot.lane.b32.xlu0 %v6807_v44, %s5005_s19  ;;  %2631 = vst.msk [vmem:[#allocation5 + $0x68] sm:$0xff] %vm2152_vm12, %v6795_v57  ;;  %v6948_v31 = vld [vmem:[#allocation4 + $0x158] sm:$0xff]  ;;  %v6955_v41 = vld [vmem:[#allocation4 + $0x129] sm:$0xff] }
 0x484   : > { %2621 = vst.msk [vmem:[#allocation5 + $0x18] sm:$0xff] %vm2152_vm12, %v6803_v4  ;;  %v6945_v38 = vld [vmem:[#allocation4 + $0x168] sm:$0xff]  ;;  %v6963_v9 = vld [vmem:[#allocation4 + $0x111] sm:$0xff]  ;;  %v6987_v60 = vld [vmem:[#allocation4 + $0x159] sm:$0xff] }
 0x485   : > { %2620 = vst.msk [vmem:[#allocation5 + $0x10] sm:$0xff] %vm2152_vm12, %v6811_v20  ;;  %v6899_v11 = vld [vmem:[#allocation4 + $0x170] sm:$0xff] }
 0x486   : > { %2634 = vst.msk [vmem:[#allocation5 + $0x80] sm:$0xff] %vm2152_vm12, %v6817_v12  ;;  %v6967_v3 = vld [vmem:[#allocation4 + $0x151] sm:$0xff]  ;;  %v6983_v14 = vld [vmem:[#allocation4 + $0x169] sm:$0xff] }
 0x487   : > { %2624 = vst.msk [vmem:[#allocation5 + $0x30] sm:$0xff] %vm2152_vm12, %v6821_v62  ;;  %v6979_v0 = vld [vmem:[#allocation4 + $0x171] sm:$0xff] }
 0x488   : > { %2623 = vst.msk [vmem:[#allocation5 + $0x28] sm:$0xff] %vm2152_vm12, %v6825_v49 }
 0x489   : > { %2746 = vrot.lane.b32.xlu2 %v6835_v19, %s5005_s19  ;;  %2637 = vst.msk [vmem:[#allocation5 + $0x98] sm:$0xff] %vm2152_vm12, %v6829_v33 }
 0x48a   : > { %2744 = vrot.lane.b32.xlu1 %v6843_v39, %s5005_s19  ;;  %2627 = vst.msk [vmem:[#allocation5 + $0x48] sm:$0xff] %vm2152_vm12, %v6833_v45 }
 0x48b   : > { %2742 = vrot.lane.b32.xlu0 %v6851_v35, %s5005_s19  ;;  %2626 = vst.msk [vmem:[#allocation5 + $0x40] sm:$0xff] %vm2152_vm12, %v6839_v24 }
 0x48c   : > { %2640 = vst.msk [vmem:[#allocation5 + $0xb0] sm:$0xff] %vm2152_vm12, %v6847_v42 }
 0x48d   : > { %2630 = vst.msk [vmem:[#allocation5 + $0x60] sm:$0xff] %vm2152_vm12, %v6855_v30 }
 0x48e   : > { %2629 = vst.msk [vmem:[#allocation5 + $0x58] sm:$0xff] %vm2152_vm12, %v6861_v47 }
 0x48f   : > { %2643 = vst.msk [vmem:[#allocation5 + $0xc8] sm:$0xff] %vm2152_vm12, %v6865_v6 }
 0x490   : > { %2633 = vst.msk [vmem:[#allocation5 + $0x78] sm:$0xff] %vm2152_vm12, %v6869_v2 }
 0x491   : > { %2752 = vrot.lane.b32.xlu2 %v6879_v22, %s5005_s19  ;;  %2632 = vst.msk [vmem:[#allocation5 + $0x70] sm:$0xff] %vm2152_vm12, %v6873_v1 }
 0x492   : > { %2750 = vrot.lane.b32.xlu1 %v6887_v51, %s5005_s19  ;;  %2646 = vst.msk [vmem:[#allocation5 + $0xe0] sm:$0xff] %vm2152_vm12, %v6877_v63 }
 0x493   : > { %2748 = vrot.lane.b32.xlu0 %v6895_v17, %s5005_s19  ;;  %2636 = vst.msk [vmem:[#allocation5 + $0x90] sm:$0xff] %vm2152_vm12, %v6883_v16 }
 0x494   : > { %2635 = vst.msk [vmem:[#allocation5 + $0x88] sm:$0xff] %vm2152_vm12, %v6891_v59 }
 0x495   : > { %2649 = vst.msk [vmem:[#allocation5 + $0xf8] sm:$0xff] %vm2152_vm12, %v6899_v11 }
 0x496   : > { %2639 = vst.msk [vmem:[#allocation5 + $0xa8] sm:$0xff] %vm2152_vm12, %v6905_v21 }
 0x497   : > { %2638 = vst.msk [vmem:[#allocation5 + $0xa0] sm:$0xff] %vm2152_vm12, %v6909_v23 }
 0x498   : > { %2642 = vst.msk [vmem:[#allocation5 + $0xc0] sm:$0xff] %vm2152_vm12, %v6913_v18 }
 0x499   : > { %2758 = vrot.lane.b32.xlu2 %v6923_v55, %s5005_s19  ;;  %2641 = vst.msk [vmem:[#allocation5 + $0xb8] sm:$0xff] %vm2152_vm12, %v6917_v52 }
 0x49a   : > { %2756 = vrot.lane.b32.xlu1 %v6931_v32, %s5005_s19  ;;  %2645 = vst.msk [vmem:[#allocation5 + $0xd8] sm:$0xff] %vm2152_vm12, %v6921_v10 }
 0x49b   : > { %2754 = vrot.lane.b32.xlu0 %v6937_v26, %s5005_s19  ;;  %2644 = vst.msk [vmem:[#allocation5 + $0xd0] sm:$0xff] %vm2152_vm12, %v6927_v34 }
 0x49c   : > { %2619 = vst.msk [vmem:[#allocation5 + $0x8] sm:$0xff] %vm2152_vm12, %v2587_v40  ;;  %v2844_v40 = vld [vmem:[#allocation4 + $0xa] sm:$0xff] }
 0x49d   : > { %2812 = vst.msk [vmem:[#allocation5 + $0x8] sm:$0xff] %vm2810_vm3, %v2717_v27  ;;  %v6993_v27 = vld [vmem:[#allocation4 + $0x1a] sm:$0xff] }
 0x49e   : > { %2648 = vst.msk [vmem:[#allocation5 + $0xf0] sm:$0xff] %vm2152_vm12, %v6945_v38 }
 0x49f   : > { %2647 = vst.msk [vmem:[#allocation5 + $0xe8] sm:$0xff] %vm2152_vm12, %v6948_v31  ;;  %v2715_v50 = vpop.permute.xlu1 %2714 }
 0x4a0   : > { %8244 = vst [vmem:[#allocation6_spill] sm:$0xff] %v6967_v3 }
 0x4a1   : > { %2764 = vrot.lane.b32.xlu2 %v6955_v41, %s5005_s19  ;;  %8245 = vst [vmem:[#allocation12_spill] sm:$0xff] %v6979_v0 }
 0x4a2   : > { %2762 = vrot.lane.b32.xlu1 %v6959_v13, %s5005_s19  ;;  %8246 = vst [vmem:[#allocation7_spill] sm:$0xff] %v6983_v14 }
 0x4a3   : > { %2760 = vrot.lane.b32.xlu0 %v6963_v9, %s5005_s19  ;;  %8247 = vst [vmem:[#allocation9_spill] sm:$0xff] %v6987_v60 }
 0x4a4   : > { %2618 = vst.msk [vmem:[#allocation5] sm:$0xff] %vm2152_vm12, %v2586_v58  ;;  %v7007_v58 = vld [vmem:[#allocation4 + $0x22] sm:$0xff] }
 0x4a5   : > { %2811 = vst.msk [vmem:[#allocation5] sm:$0xff] %vm2810_vm3, %v2715_v50 }
 0x4a6   : > { %8248 = vst [vmem:[#allocation15_spill] sm:$0xff] %v6993_v27 }
 0x4a7   : > { %8251 = vst [vmem:[#allocation18_spill] sm:$0xff] %v7007_v58 }
 0x4a9   : > { %2770 = vrot.lane.b32.xlu2 %v6967_v3, %s5005_s19  ;;  %v6999_v3 = vld [vmem:[#allocation4 + $0x3a] sm:$0xff] }
 0x4aa   : > { %2768 = vrot.lane.b32.xlu1 %v6971_v8, %s5005_s19  ;;  %8249 = vst [vmem:[#allocation8_spill] sm:$0xff] %v6999_v3 }
 0x4ab   : > { %2766 = vrot.lane.b32.xlu0 %v6975_v48, %s5005_s19 }
 0x4b1   : > { %2776 = vrot.lane.b32.xlu2 %v6979_v0, %s5005_s19  ;;  %v2843_v0 = vld [vmem:[#allocation4 + $0x2] sm:$0xff] }
 0x4b2   : > { %2774 = vrot.lane.b32.xlu1 %v6983_v14, %s5005_s19  ;;  %v2856_v14 = vld [vmem:[#allocation4 + $0x9a] sm:$0xff] }
 0x4b3   : > { %2772 = vrot.lane.b32.xlu0 %v6987_v60, %s5005_s19  ;;  %v7001_v60 = vld [vmem:[#allocation4 + $0x32] sm:$0xff] }
 0x4b4   : > { %8250 = vst [vmem:[#allocation11_spill] sm:$0xff] %v7001_v60 }
 0x4b9   : > { %2911 = vrot.lane.b32.xlu2 %v6993_v27, %s5007_s21 }
 0x4ba   : > { %2909 = vrot.lane.b32.xlu1 %v2844_v40, %s5007_s21  ;;  %v2851_v40 = vld [vmem:[#allocation4 + $0x62] sm:$0xff] }
 0x4bb   : > { %2907 = vrot.lane.b32.xlu0 %v2843_v0, %s5007_s21  ;;  %v7012_v0 = vld [vmem:[#allocation4 + $0x52] sm:$0xff] }
 0x4bc   : > { %8252 = vst [vmem:[#allocation10_spill] sm:$0xff] %v7012_v0 }
 0x4c1   : > { %2917 = vrot.lane.b32.xlu2 %v6999_v3, %s5007_s21  ;;  %v7017_v3 = vld [vmem:[#allocation4 + $0x4a] sm:$0xff] }
 0x4c2   : > { %2915 = vrot.lane.b32.xlu1 %v7001_v60, %s5007_s21  ;;  %8253 = vst [vmem:[#allocation14_spill] sm:$0xff] %v7017_v3  ;;  %v2853_v60 = vld [vmem:[#allocation4 + $0x7a] sm:$0xff] }
 0x4c3   : > { %2913 = vrot.lane.b32.xlu0 %v7007_v58, %s5007_s21  ;;  %v2723_v50 = vpop.permute.xlu2 %2722  ;;  %v2854_v58 = vld [vmem:[#allocation4 + $0x82] sm:$0xff] }
 0x4c4   : > { %2815 = vst.msk [vmem:[#allocation5 + $0x20] sm:$0xff] %vm2810_vm3, %v2723_v50  ;;  %v2852_v50 = vld [vmem:[#allocation4 + $0x6a] sm:$0xff] }
 0x4c9   : > { %2923 = vrot.lane.b32.xlu2 %v2851_v40, %s5007_s21 }
 0x4ca   : > { %2921 = vrot.lane.b32.xlu1 %v7012_v0, %s5007_s21  ;;  %v2857_v0 = vld [vmem:[#allocation4 + $0xaa] sm:$0xff] }
 0x4cb   : > { %2919 = vrot.lane.b32.xlu0 %v7017_v3, %s5007_s21  ;;  %v2729_v27 = vpop.permute.xlu2 %2728  ;;  %v2855_v3 = vld [vmem:[#allocation4 + $0x92] sm:$0xff] }
 0x4cc   : > { %2818 = vst.msk [vmem:[#allocation5 + $0x38] sm:$0xff] %vm2810_vm3, %v2729_v27 }
 0x4d1   : > { %2929 = vrot.lane.b32.xlu2 %v2854_v58, %s5007_s21 }
 0x4d2   : > { %2927 = vrot.lane.b32.xlu1 %v2853_v60, %s5007_s21 }
 0x4d3   : > { %2925 = vrot.lane.b32.xlu0 %v2852_v50, %s5007_s21  ;;  %v2735_v40 = vpop.permute.xlu2 %2734  ;;  %v2860_v50 = vld [vmem:[#allocation4 + $0xca] sm:$0xff] }
 0x4d4   : > { %2821 = vst.msk [vmem:[#allocation5 + $0x50] sm:$0xff] %vm2810_vm3, %v2735_v40  ;;  %v2859_v40 = vld [vmem:[#allocation4 + $0xc2] sm:$0xff] }
 0x4d9   : > { %2935 = vrot.lane.b32.xlu2 %v2857_v0, %s5007_s21  ;;  %v2858_v0 = vld [vmem:[#allocation4 + $0xb2] sm:$0xff] }
 0x4da   : > { %2933 = vrot.lane.b32.xlu1 %v2856_v14, %s5007_s21 }
 0x4db   : > { %2931 = vrot.lane.b32.xlu0 %v2855_v3, %s5007_s21  ;;  %v2741_v27 = vpop.permute.xlu2 %2740 }
 0x4dc   : > { %2824 = vst.msk [vmem:[#allocation5 + $0x68] sm:$0xff] %vm2810_vm3, %v2741_v27  ;;  %v2721_v58 = vpop.permute.xlu1 %2720 }
 0x4dd   : > { %2814 = vst.msk [vmem:[#allocation5 + $0x18] sm:$0xff] %vm2810_vm3, %v2721_v58  ;;  %v2719_v60 = vpop.permute.xlu0 %2718  ;;  %v7038_v58 = vld [vmem:[#allocation4 + $0xf2] sm:$0xff] }
 0x4de   : > { %2813 = vst.msk [vmem:[#allocation5 + $0x10] sm:$0xff] %vm2810_vm3, %v2719_v60  ;;  %v7040_v60 = vld [vmem:[#allocation4 + $0xe2] sm:$0xff] }
 0x4df   : > { %8254 = vst [vmem:[#allocation21_spill] sm:$0xff] %v7038_v58 }
 0x4e0   : > { %8255 = vst [vmem:[#allocation13_spill] sm:$0xff] %v7040_v60 }
 0x4e1   : > { %2941 = vrot.lane.b32.xlu2 %v2860_v50, %s5007_s21  ;;  %v7046_v50 = vld [vmem:[#allocation4 + $0xda] sm:$0xff] }
 0x4e2   : > { %2939 = vrot.lane.b32.xlu1 %v2859_v40, %s5007_s21  ;;  %8256 = vst [vmem:[#allocation17_spill] sm:$0xff] %v7046_v50 }
 0x4e3   : > { %2937 = vrot.lane.b32.xlu0 %v2858_v0, %s5007_s21  ;;  %v2747_v14 = vpop.permute.xlu2 %2746 }
 0x4e4   : > { %2827 = vst.msk [vmem:[#allocation5 + $0x80] sm:$0xff] %vm2810_vm3, %v2747_v14  ;;  %v2727_v3 = vpop.permute.xlu1 %2726 }
 0x4e5   : > { %2817 = vst.msk [vmem:[#allocation5 + $0x30] sm:$0xff] %vm2810_vm3, %v2727_v3  ;;  %v2725_v27 = vpop.permute.xlu0 %2724  ;;  %v7053_v3 = vld [vmem:[#allocation4 + $0x112] sm:$0xff] }
 0x4e6   : > { %2816 = vst.msk [vmem:[#allocation5 + $0x28] sm:$0xff] %vm2810_vm3, %v2725_v27  ;;  %v7055_v27 = vld [vmem:[#allocation4 + $0x10a] sm:$0xff] }
 0x4e7   : > { %8257 = vst [vmem:[#allocation24_spill] sm:$0xff] %v7053_v3 }
 0x4e8   : > { %8258 = vst [vmem:[#allocation16_spill] sm:$0xff] %v7055_v27 }
 0x4e9   : > { %2947 = vrot.lane.b32.xlu2 %v7038_v58, %s5007_s21  ;;  %v2869_v58 = vld [vmem:[#allocation4 + $0x13a] sm:$0xff] }
 0x4ea   : > { %2945 = vrot.lane.b32.xlu1 %v7040_v60, %s5007_s21  ;;  %v7061_v60 = vld [vmem:[#allocation4 + $0xfa] sm:$0xff] }
 0x4eb   : > { %2943 = vrot.lane.b32.xlu0 %v7046_v50, %s5007_s21  ;;  %v2753_v40 = vpop.permute.xlu2 %2752  ;;  %8259 = vst [vmem:[#allocation20_spill] sm:$0xff] %v7061_v60  ;;  %v2868_v50 = vld [vmem:[#allocation4 + $0x12a] sm:$0xff] }
 0x4ec   : > { %2830 = vst.msk [vmem:[#allocation5 + $0x98] sm:$0xff] %vm2810_vm3, %v2753_v40  ;;  %v2733_v0 = vpop.permute.xlu1 %2732 }
 0x4ed   : > { %2820 = vst.msk [vmem:[#allocation5 + $0x48] sm:$0xff] %vm2810_vm3, %v2733_v0  ;;  %v2731_v14 = vpop.permute.xlu0 %2730 }
 0x4ee   : > { %2819 = vst.msk [vmem:[#allocation5 + $0x40] sm:$0xff] %vm2810_vm3, %v2731_v14 }
 0x4f1   : > { %2953 = vrot.lane.b32.xlu2 %v7053_v3, %s5007_s21  ;;  %v2867_v3 = vld [vmem:[#allocation4 + $0x122] sm:$0xff] }
 0x4f2   : > { %2951 = vrot.lane.b32.xlu1 %v7055_v27, %s5007_s21 }
 0x4f3   : > { %2949 = vrot.lane.b32.xlu0 %v7061_v60, %s5007_s21  ;;  %v2759_v40 = vpop.permute.xlu2 %2758 }
 0x4f4   : > { %2833 = vst.msk [vmem:[#allocation5 + $0xb0] sm:$0xff] %vm2810_vm3, %v2759_v40  ;;  %v2739_v0 = vpop.permute.xlu1 %2738 }
 0x4f5   : > { %2823 = vst.msk [vmem:[#allocation5 + $0x60] sm:$0xff] %vm2810_vm3, %v2739_v0  ;;  %v2737_v14 = vpop.permute.xlu0 %2736  ;;  %v2872_v0 = vld [vmem:[#allocation4 + $0x15a] sm:$0xff] }
 0x4f6   : > { %2822 = vst.msk [vmem:[#allocation5 + $0x58] sm:$0xff] %vm2810_vm3, %v2737_v14  ;;  %v2871_v14 = vld [vmem:[#allocation4 + $0x152] sm:$0xff] }
 0x4f9   : > { %2959 = vrot.lane.b32.xlu2 %v2869_v58, %s5007_s21  ;;  %v2870_v58 = vld [vmem:[#allocation4 + $0x142] sm:$0xff] }
 0x4fa   : > { %2957 = vrot.lane.b32.xlu1 %v2868_v50, %s5007_s21 }
 0x4fb   : > { %2955 = vrot.lane.b32.xlu0 %v2867_v3, %s5007_s21  ;;  %v2765_v27 = vpop.permute.xlu2 %2764 }
 0x4fc   : > { %2836 = vst.msk [vmem:[#allocation5 + $0xc8] sm:$0xff] %vm2810_vm3, %v2765_v27  ;;  %v2745_v60 = vpop.permute.xlu1 %2744 }
 0x4fd   : > { %2826 = vst.msk [vmem:[#allocation5 + $0x78] sm:$0xff] %vm2810_vm3, %v2745_v60  ;;  %v2743_v40 = vpop.permute.xlu0 %2742  ;;  %v2874_v60 = vld [vmem:[#allocation4 + $0x172] sm:$0xff] }
 0x4fe   : > { %2825 = vst.msk [vmem:[#allocation5 + $0x70] sm:$0xff] %vm2810_vm3, %v2743_v40  ;;  %v2873_v40 = vld [vmem:[#allocation4 + $0x16a] sm:$0xff] }
 0x501   : > { %2965 = vrot.lane.b32.xlu2 %v2872_v0, %s5007_s21 }
 0x502   : > { %2963 = vrot.lane.b32.xlu1 %v2871_v14, %s5007_s21 }
 0x503   : > { %2961 = vrot.lane.b32.xlu0 %v2870_v58, %s5007_s21  ;;  %v2771_v50 = vpop.permute.xlu2 %2770 }
 0x504   : > { %2839 = vst.msk [vmem:[#allocation5 + $0xe0] sm:$0xff] %vm2810_vm3, %v2771_v50  ;;  %v2751_v3 = vpop.permute.xlu1 %2750 }
 0x505   : > { %2829 = vst.msk [vmem:[#allocation5 + $0x90] sm:$0xff] %vm2810_vm3, %v2751_v3  ;;  %v2749_v27 = vpop.permute.xlu0 %2748 }
 0x506   : > { %2828 = vst.msk [vmem:[#allocation5 + $0x88] sm:$0xff] %vm2810_vm3, %v2749_v27 }
 0x509   : > { %3100 = vrot.lane.b32.xlu2 %v6811_v20, %s5009_s23 }
 0x50a   : > { %2969 = vrot.lane.b32.xlu1 %v2874_v60, %s5007_s21 }
 0x50b   : > { %2967 = vrot.lane.b32.xlu0 %v2873_v40, %s5007_s21  ;;  %v2777_v0 = vpop.permute.xlu2 %2776 }
 0x50c   : > { %2842 = vst.msk [vmem:[#allocation5 + $0xf8] sm:$0xff] %vm2810_vm3, %v2777_v0  ;;  %v2757_v14 = vpop.permute.xlu1 %2756 }
 0x50d   : > { %2832 = vst.msk [vmem:[#allocation5 + $0xa8] sm:$0xff] %vm2810_vm3, %v2757_v14  ;;  %v2755_v58 = vpop.permute.xlu0 %2754 }
 0x50e   : > { %2831 = vst.msk [vmem:[#allocation5 + $0xa0] sm:$0xff] %vm2810_vm3, %v2755_v58 }
 0x511   : > { %3106 = vrot.lane.b32.xlu2 %v6825_v49, %s5009_s23 }
 0x512   : > { %3104 = vrot.lane.b32.xlu1 %v6783_v54, %s5009_s23 }
 0x513   : > { %3102 = vrot.lane.b32.xlu0 %v6803_v4, %s5009_s23  ;;  %v2912_v20 = vpop.permute.xlu2 %2911 }
 0x514   : > { %v2763_v50 = vpop.permute.xlu1 %2762  ;;  %3006 = vst.msk [vmem:[#allocation5 + $0x10] sm:$0xff] %vm3003_vm4, %v2912_v20 }
 0x515   : > { %2835 = vst.msk [vmem:[#allocation5 + $0xc0] sm:$0xff] %vm2810_vm3, %v2763_v50  ;;  %v2761_v3 = vpop.permute.xlu0 %2760 }
 0x516   : > { %2834 = vst.msk [vmem:[#allocation5 + $0xb8] sm:$0xff] %vm2810_vm3, %v2761_v3 }
 0x519   : > { %3112 = vrot.lane.b32.xlu2 %v6839_v24, %s5009_s23 }
 0x51a   : > { %3110 = vrot.lane.b32.xlu1 %v6786_v7, %s5009_s23 }
 0x51b   : > { %3108 = vrot.lane.b32.xlu0 %v6821_v62, %s5009_s23  ;;  %v2918_v27 = vpop.permute.xlu2 %2917 }
 0x51c   : > { %v2769_v4 = vpop.permute.xlu1 %2768  ;;  %3009 = vst.msk [vmem:[#allocation5 + $0x28] sm:$0xff] %vm3003_vm4, %v2918_v27 }
 0x51d   : > { %2838 = vst.msk [vmem:[#allocation5 + $0xd8] sm:$0xff] %vm2810_vm3, %v2769_v4  ;;  %v2767_v60 = vpop.permute.xlu0 %2766 }
 0x51e   : > { %2837 = vst.msk [vmem:[#allocation5 + $0xd0] sm:$0xff] %vm2810_vm3, %v2767_v60 }
 0x521   : > { %3118 = vrot.lane.b32.xlu2 %v6861_v47, %s5009_s23 }
 0x522   : > { %3116 = vrot.lane.b32.xlu1 %v6789_v43, %s5009_s23 }
 0x523   : > { %3114 = vrot.lane.b32.xlu0 %v6833_v45, %s5009_s23  ;;  %v2924_v40 = vpop.permute.xlu2 %2923 }
 0x524   : > { %v2775_v0 = vpop.permute.xlu1 %2774  ;;  %3012 = vst.msk [vmem:[#allocation5 + $0x40] sm:$0xff] %vm3003_vm4, %v2924_v40  ;;  %v3066_v40 = vld [vmem:[#allocation4 + $0x180] sm:$0xff] }
 0x525   : > { %2841 = vst.msk [vmem:[#allocation5 + $0xf0] sm:$0xff] %vm2810_vm3, %v2775_v0  ;;  %v2773_v14 = vpop.permute.xlu0 %2772 }
 0x526   : > { %2840 = vst.msk [vmem:[#allocation5 + $0xe8] sm:$0xff] %vm2810_vm3, %v2773_v14 }
 0x529   : > { %3124 = vrot.lane.b32.xlu2 %v6873_v1, %s5009_s23 }
 0x52a   : > { %3122 = vrot.lane.b32.xlu1 %v6795_v57, %s5009_s23 }
 0x52b   : > { %3120 = vrot.lane.b32.xlu0 %v6855_v30, %s5009_s23  ;;  %v2930_v43 = vpop.permute.xlu2 %2929 }
 0x52c   : > { %v2910_v58 = vpop.permute.xlu1 %2909  ;;  %3015 = vst.msk [vmem:[#allocation5 + $0x58] sm:$0xff] %vm3003_vm4, %v2930_v43 }
 0x52d   : > { %3005 = vst.msk [vmem:[#allocation5 + $0x8] sm:$0xff] %vm3003_vm4, %v2910_v58  ;;  %v2908_v20 = vpop.permute.xlu0 %2907  ;;  %v8260_v58 = vld [vmem:[#allocation7_spill] sm:$0xff] }
 0x52e   : > { %3004 = vst.msk [vmem:[#allocation5] sm:$0xff] %vm3003_vm4, %v2908_v20 }
 0x531   : > { %3130 = vrot.lane.b32.xlu2 %v6891_v59, %s5009_s23 }
 0x532   : > { %3128 = vrot.lane.b32.xlu1 %v6817_v12, %s5009_s23 }
 0x533   : > { %3126 = vrot.lane.b32.xlu0 %v6869_v2, %s5009_s23  ;;  %v2936_v57 = vpop.permute.xlu2 %2935 }
 0x534   : > { %v2916_v30 = vpop.permute.xlu1 %2915  ;;  %3018 = vst.msk [vmem:[#allocation5 + $0x70] sm:$0xff] %vm3003_vm4, %v2936_v57 }
 0x535   : > { %3008 = vst.msk [vmem:[#allocation5 + $0x20] sm:$0xff] %vm3003_vm4, %v2916_v30  ;;  %v2914_v1 = vpop.permute.xlu0 %2913  ;;  %v3260_v30 = vld [vmem:[#allocation4 + $0x189] sm:$0xff] }
 0x536   : > { %3007 = vst.msk [vmem:[#allocation5 + $0x18] sm:$0xff] %vm3003_vm4, %v2914_v1  ;;  %v3259_v1 = vld [vmem:[#allocation4 + $0x181] sm:$0xff] }
 0x539   : > { %3136 = vrot.lane.b32.xlu2 %v6909_v23, %s5009_s23 }
 0x53a   : > { %3134 = vrot.lane.b32.xlu1 %v6829_v33, %s5009_s23 }
 0x53b   : > { %3132 = vrot.lane.b32.xlu0 %v6883_v16, %s5009_s23  ;;  %v2942_v12 = vpop.permute.xlu2 %2941 }
 0x53c   : > { %v2922_v2 = vpop.permute.xlu1 %2921  ;;  %3021 = vst.msk [vmem:[#allocation5 + $0x88] sm:$0xff] %vm3003_vm4, %v2942_v12  ;;  %v8263_v12 = vld [vmem:[#allocation12_spill] sm:$0xff] }
 0x53d   : > { %3011 = vst.msk [vmem:[#allocation5 + $0x38] sm:$0xff] %vm3003_vm4, %v2922_v2  ;;  %v2920_v59 = vpop.permute.xlu0 %2919 }
 0x53e   : > { %3010 = vst.msk [vmem:[#allocation5 + $0x30] sm:$0xff] %vm3003_vm4, %v2920_v59 }
 0x541   : > { %3142 = vrot.lane.b32.xlu2 %v6917_v52, %s5009_s23 }
 0x542   : > { %3140 = vrot.lane.b32.xlu1 %v6847_v42, %s5009_s23 }
 0x543   : > { %3138 = vrot.lane.b32.xlu0 %v6905_v21, %s5009_s23  ;;  %v2948_v33 = vpop.permute.xlu2 %2947 }
 0x544   : > { %v2928_v16 = vpop.permute.xlu1 %2927  ;;  %3024 = vst.msk [vmem:[#allocation5 + $0xa0] sm:$0xff] %vm3003_vm4, %v2948_v33 }
 0x545   : > { %3014 = vst.msk [vmem:[#allocation5 + $0x50] sm:$0xff] %vm3003_vm4, %v2928_v16  ;;  %v2926_v50 = vpop.permute.xlu0 %2925  ;;  %v8264_v16 = vld [vmem:[#allocation11_spill] sm:$0xff] }
 0x546   : > { %3013 = vst.msk [vmem:[#allocation5 + $0x48] sm:$0xff] %vm3003_vm4, %v2926_v50  ;;  %v8265_v50 = vld [vmem:[#allocation18_spill] sm:$0xff] }
 0x549   : > { %3148 = vrot.lane.b32.xlu2 %v6927_v34, %s5009_s23 }
 0x54a   : > { %3146 = vrot.lane.b32.xlu1 %v6865_v6, %s5009_s23 }
 0x54b   : > { %3144 = vrot.lane.b32.xlu0 %v6913_v18, %s5009_s23  ;;  %v2954_v3 = vpop.permute.xlu2 %2953 }
 0x54c   : > { %v2934_v27 = vpop.permute.xlu1 %2933  ;;  %3027 = vst.msk [vmem:[#allocation5 + $0xb8] sm:$0xff] %vm3003_vm4, %v2954_v3  ;;  %v8266_v3 = vld [vmem:[#allocation15_spill] sm:$0xff] }
 0x54d   : > { %3017 = vst.msk [vmem:[#allocation5 + $0x68] sm:$0xff] %vm3003_vm4, %v2934_v27  ;;  %v2932_v4 = vpop.permute.xlu0 %2931 }
 0x54e   : > { %3016 = vst.msk [vmem:[#allocation5 + $0x60] sm:$0xff] %vm3003_vm4, %v2932_v4 }
 0x551   : > { %3154 = vrot.lane.b32.xlu2 %v6948_v31, %s5009_s23 }
 0x552   : > { %3152 = vrot.lane.b32.xlu1 %v6877_v63, %s5009_s23 }
 0x553   : > { %3150 = vrot.lane.b32.xlu0 %v6921_v10, %s5009_s23  ;;  %v2960_v6 = vpop.permute.xlu2 %2959 }
 0x554   : > { %v2940_v34 = vpop.permute.xlu1 %2939  ;;  %3030 = vst.msk [vmem:[#allocation5 + $0xd0] sm:$0xff] %vm3003_vm4, %v2960_v6 }
 0x555   : > { %3020 = vst.msk [vmem:[#allocation5 + $0x80] sm:$0xff] %vm3003_vm4, %v2940_v34  ;;  %v2938_v60 = vpop.permute.xlu0 %2937  ;;  %v3809_v34 = vld [vmem:[#allocation4 + $0x31] sm:$0xff] }
 0x556   : > { %3019 = vst.msk [vmem:[#allocation5 + $0x78] sm:$0xff] %vm3003_vm4, %v2938_v60  ;;  %v8267_v60 = vld [vmem:[#allocation8_spill] sm:$0xff] }
 0x559   : > { %3160 = vrot.lane.b32.xlu2 %v3066_v40, %s5009_s23 }
 0x55a   : > { %3158 = vrot.lane.b32.xlu1 %v6899_v11, %s5009_s23  ;;  %v3067_v11 = vld [vmem:[#allocation4 + $0x188] sm:$0xff] }
 0x55b   : > { %3156 = vrot.lane.b32.xlu0 %v6945_v38, %s5009_s23  ;;  %v2966_v63 = vpop.permute.xlu2 %2965 }
 0x55c   : > { %v2946_v10 = vpop.permute.xlu1 %2945  ;;  %3033 = vst.msk [vmem:[#allocation5 + $0xe8] sm:$0xff] %vm3003_vm4, %v2966_v63 }
 0x55d   : > { %3023 = vst.msk [vmem:[#allocation5 + $0x98] sm:$0xff] %vm3003_vm4, %v2946_v10  ;;  %v2944_v31 = vpop.permute.xlu0 %2943 }
 0x55e   : > { %3022 = vst.msk [vmem:[#allocation5 + $0x90] sm:$0xff] %vm3003_vm4, %v2944_v31  ;;  %v3810_v31 = vld [vmem:[#allocation4 + $0x39] sm:$0xff] }
 0x561   : > { %3295 = vrot.lane.b32.xlu2 %v6673_v56, %s5011_s25 }
 0x562   : > { %3293 = vrot.lane.b32.xlu1 %v6684_v29, %s5011_s25 }
 0x563   : > { %3162 = vrot.lane.b32.xlu0 %v3067_v11, %s5009_s23  ;;  %v3101_v38 = vpop.permute.xlu2 %3100 }
 0x564   : > { %v2952_v0 = vpop.permute.xlu1 %2951  ;;  %3197 = vst.msk [vmem:[#allocation5] sm:$0xff] %vm3196_vm5, %v3101_v38 }
 0x565   : > { %3026 = vst.msk [vmem:[#allocation5 + $0xb0] sm:$0xff] %vm3003_vm4, %v2952_v0  ;;  %v2950_v14 = vpop.permute.xlu0 %2949  ;;  %v3811_v0 = vld [vmem:[#allocation4 + $0x49] sm:$0xff] }
 0x566   : > { %3025 = vst.msk [vmem:[#allocation5 + $0xa8] sm:$0xff] %vm3003_vm4, %v2950_v14 }
 0x569   : > { %3301 = vrot.lane.b32.xlu2 %v6734_v5, %s5011_s25 }
 0x56a   : > { %3299 = vrot.lane.b32.xlu1 %v6744_v28, %s5011_s25 }
 0x56b   : > { %3297 = vrot.lane.b32.xlu0 %v6662_v61, %s5011_s25  ;;  %v3107_v56 = vpop.permute.xlu2 %3106 }
 0x56c   : > { %v2958_v29 = vpop.permute.xlu1 %2957  ;;  %3200 = vst.msk [vmem:[#allocation5 + $0x18] sm:$0xff] %vm3196_vm5, %v3107_v56 }
 0x56d   : > { %3029 = vst.msk [vmem:[#allocation5 + $0xc8] sm:$0xff] %vm3003_vm4, %v2958_v29  ;;  %v2956_v43 = vpop.permute.xlu0 %2955  ;;  %v8268_v29 = vld [vmem:[#allocation17_spill] sm:$0xff] }
 0x56e   : > { %3028 = vst.msk [vmem:[#allocation5 + $0xc0] sm:$0xff] %vm3003_vm4, %v2956_v43 }
 0x571   : > { %3307 = vrot.lane.b32.xlu2 %v6771_v46, %s5011_s25 }
 0x572   : > { %3305 = vrot.lane.b32.xlu1 %v6776_v37, %s5011_s25 }
 0x573   : > { %3303 = vrot.lane.b32.xlu0 %v6724_v15, %s5011_s25  ;;  %v3113_v5 = vpop.permute.xlu2 %3112 }
 0x574   : > { %v2964_v61 = vpop.permute.xlu1 %2963  ;;  %3203 = vst.msk [vmem:[#allocation5 + $0x30] sm:$0xff] %vm3196_vm5, %v3113_v5 }
 0x575   : > { %3032 = vst.msk [vmem:[#allocation5 + $0xe0] sm:$0xff] %vm3003_vm4, %v2964_v61  ;;  %v2962_v28 = vpop.permute.xlu0 %2961 }
 0x576   : > { %3031 = vst.msk [vmem:[#allocation5 + $0xd8] sm:$0xff] %vm3003_vm4, %v2962_v28  ;;  %v8270_v28 = vld [vmem:[#allocation10_spill] sm:$0xff] }
 0x579   : > { %3313 = vrot.lane.b32.xlu2 %v6799_v36, %s5011_s25 }
 0x57a   : > { %3311 = vrot.lane.b32.xlu1 %v6807_v44, %s5011_s25 }
 0x57b   : > { %3309 = vrot.lane.b32.xlu0 %v6766_v25, %s5011_s25  ;;  %v3119_v46 = vpop.permute.xlu2 %3118 }
 0x57c   : > { %v2970_v15 = vpop.permute.xlu1 %2969  ;;  %3206 = vst.msk [vmem:[#allocation5 + $0x48] sm:$0xff] %vm3196_vm5, %v3119_v46  ;;  %v3812_v46 = vld [vmem:[#allocation4 + $0x51] sm:$0xff] }
 0x57d   : > { %3035 = vst.msk [vmem:[#allocation5 + $0xf8] sm:$0xff] %vm3003_vm4, %v2970_v15  ;;  %v2968_v37 = vpop.permute.xlu0 %2967 }
 0x57e   : > { %3034 = vst.msk [vmem:[#allocation5 + $0xf0] sm:$0xff] %vm3003_vm4, %v2968_v37 }
 0x581   : > { %3319 = vrot.lane.b32.xlu2 %v6843_v39, %s5011_s25 }
 0x582   : > { %3317 = vrot.lane.b32.xlu1 %v6851_v35, %s5011_s25 }
 0x583   : > { %3315 = vrot.lane.b32.xlu0 %v6791_v53, %s5011_s25  ;;  %v3125_v36 = vpop.permute.xlu2 %3124 }
 0x584   : > { %v3105_v25 = vpop.permute.xlu1 %3104  ;;  %3209 = vst.msk [vmem:[#allocation5 + $0x60] sm:$0xff] %vm3196_vm5, %v3125_v36  ;;  %v8271_v36 = vld [vmem:[#allocation21_spill] sm:$0xff] }
 0x585   : > { %3199 = vst.msk [vmem:[#allocation5 + $0x10] sm:$0xff] %vm3196_vm5, %v3105_v25  ;;  %v3103_v44 = vpop.permute.xlu0 %3102  ;;  %v3825_v25 = vld [vmem:[#allocation4 + $0xf1] sm:$0xff] }
 0x586   : > { %3198 = vst.msk [vmem:[#allocation5 + $0x8] sm:$0xff] %vm3196_vm5, %v3103_v44 }
 0x589   : > { %3325 = vrot.lane.b32.xlu2 %v6887_v51, %s5011_s25 }
 0x58a   : > { %3323 = vrot.lane.b32.xlu1 %v6895_v17, %s5011_s25 }
 0x58b   : > { %3321 = vrot.lane.b32.xlu0 %v6835_v19, %s5011_s25  ;;  %v3131_v39 = vpop.permute.xlu2 %3130 }
 0x58c   : > { %v3111_v53 = vpop.permute.xlu1 %3110  ;;  %3212 = vst.msk [vmem:[#allocation5 + $0x78] sm:$0xff] %vm3196_vm5, %v3131_v39 }
 0x58d   : > { %3202 = vst.msk [vmem:[#allocation5 + $0x28] sm:$0xff] %vm3196_vm5, %v3111_v53  ;;  %v3109_v35 = vpop.permute.xlu0 %3108  ;;  %v3813_v53 = vld [vmem:[#allocation4 + $0x61] sm:$0xff] }
 0x58e   : > { %3201 = vst.msk [vmem:[#allocation5 + $0x20] sm:$0xff] %vm3196_vm5, %v3109_v35  ;;  %v8272_v35 = vld [vmem:[#allocation13_spill] sm:$0xff] }
 0x591   : > { %3331 = vrot.lane.b32.xlu2 %v6931_v32, %s5011_s25 }
 0x592   : > { %3329 = vrot.lane.b32.xlu1 %v6937_v26, %s5011_s25 }
 0x593   : > { %3327 = vrot.lane.b32.xlu0 %v6879_v22, %s5011_s25  ;;  %v3137_v51 = vpop.permute.xlu2 %3136 }
 0x594   : > { %v3117_v19 = vpop.permute.xlu1 %3116  ;;  %3215 = vst.msk [vmem:[#allocation5 + $0x90] sm:$0xff] %vm3196_vm5, %v3137_v51 }
 0x595   : > { %3205 = vst.msk [vmem:[#allocation5 + $0x40] sm:$0xff] %vm3196_vm5, %v3117_v19  ;;  %v3115_v17 = vpop.permute.xlu0 %3114 }
 0x596   : > { %3204 = vst.msk [vmem:[#allocation5 + $0x38] sm:$0xff] %vm3196_vm5, %v3115_v17 }
 0x599   : > { %3337 = vrot.lane.b32.xlu2 %v6959_v13, %s5011_s25 }
 0x59a   : > { %3335 = vrot.lane.b32.xlu1 %v6963_v9, %s5011_s25 }
 0x59b   : > { %3333 = vrot.lane.b32.xlu0 %v6923_v55, %s5011_s25  ;;  %v3143_v32 = vpop.permute.xlu2 %3142 }
 0x59c   : > { %v3123_v22 = vpop.permute.xlu1 %3122  ;;  %3218 = vst.msk [vmem:[#allocation5 + $0xa8] sm:$0xff] %vm3196_vm5, %v3143_v32  ;;  %v3826_v32 = vld [vmem:[#allocation4 + $0xf9] sm:$0xff] }
 0x59d   : > { %3208 = vst.msk [vmem:[#allocation5 + $0x58] sm:$0xff] %vm3196_vm5, %v3123_v22  ;;  %v3121_v26 = vpop.permute.xlu0 %3120  ;;  %v4006_v22 = vld [vmem:[#allocation4 + $0x62] sm:$0xff] }
 0x59e   : > { %3207 = vst.msk [vmem:[#allocation5 + $0x50] sm:$0xff] %vm3196_vm5, %v3121_v26 }
 0x5a1   : > { %3343 = vrot.lane.b32.xlu2 %v6971_v8, %s5011_s25  ;;  %v8261_v8 = vld [vmem:[#allocation9_spill] sm:$0xff] }
 0x5a2   : > { %3341 = vrot.lane.b32.xlu1 %v6975_v48, %s5011_s25  ;;  %v8262_v48 = vld [vmem:[#allocation6_spill] sm:$0xff] }
 0x5a3   : > { %3339 = vrot.lane.b32.xlu0 %v6955_v41, %s5011_s25  ;;  %v3149_v13 = vpop.permute.xlu2 %3148 }
 0x5a4   : > { %v3129_v55 = vpop.permute.xlu1 %3128  ;;  %3221 = vst.msk [vmem:[#allocation5 + $0xc0] sm:$0xff] %vm3196_vm5, %v3149_v13 }
 0x5a5   : > { %3211 = vst.msk [vmem:[#allocation5 + $0x70] sm:$0xff] %vm3196_vm5, %v3129_v55  ;;  %v3127_v9 = vpop.permute.xlu0 %3126  ;;  %v3427_v55 = vld [vmem:[#allocation4 + $0x52] sm:$0xff] }
 0x5a6   : > { %3210 = vst.msk [vmem:[#allocation5 + $0x68] sm:$0xff] %vm3196_vm5, %v3127_v9  ;;  %v8273_v9 = vld [vmem:[#allocation20_spill] sm:$0xff] }
 0x5a9   : > { %3349 = vrot.lane.b32.xlu2 %v8260_v58, %s5011_s25 }
 0x5aa   : > { %3347 = vrot.lane.b32.xlu1 %v8261_v8, %s5011_s25 }
 0x5ab   : > { %3345 = vrot.lane.b32.xlu0 %v8262_v48, %s5011_s25  ;;  %v3155_v20 = vpop.permute.xlu2 %3154  ;;  %v3814_v48 = vld [vmem:[#allocation4 + $0x69] sm:$0xff] }
 0x5ac   : > { %v3135_v41 = vpop.permute.xlu1 %3134  ;;  %3224 = vst.msk [vmem:[#allocation5 + $0xd8] sm:$0xff] %vm3196_vm5, %v3155_v20 }
 0x5ad   : > { %3214 = vst.msk [vmem:[#allocation5 + $0x88] sm:$0xff] %vm3196_vm5, %v3135_v41  ;;  %v3133_v57 = vpop.permute.xlu0 %3132 }
 0x5ae   : > { %3213 = vst.msk [vmem:[#allocation5 + $0x80] sm:$0xff] %vm3196_vm5, %v3133_v57  ;;  %v3827_v57 = vld [vmem:[#allocation4 + $0x109] sm:$0xff] }
 0x5b1   : > { %3355 = vrot.lane.b32.xlu2 %v3260_v30, %s5011_s25  ;;  %v8274_v30 = vld [vmem:[#allocation16_spill] sm:$0xff] }
 0x5b2   : > { %3353 = vrot.lane.b32.xlu1 %v3259_v1, %s5011_s25 }
 0x5b3   : > { %3351 = vrot.lane.b32.xlu0 %v8263_v12, %s5011_s25  ;;  %v3161_v2 = vpop.permute.xlu2 %3160  ;;  %v4235_v12 = vld [vmem:[%s8128_s2 + $0x40] sm:$0xff] }
 0x5b4   : > { %v3141_v59 = vpop.permute.xlu1 %3140  ;;  %3227 = vst.msk [vmem:[#allocation5 + $0xf0] sm:$0xff] %vm3196_vm5, %v3161_v2  ;;  %4340 = vmatpush.msra.mxu1 %v4235_v12  ;;  %4961 = vmatpush.msra.mxu2 %v4235_v12 }
 0x5b5   : > { %3217 = vst.msk [vmem:[#allocation5 + $0xa0] sm:$0xff] %vm3196_vm5, %v3141_v59  ;;  %v3139_v33 = vpop.permute.xlu0 %3138 }
 0x5b6   : > { %3216 = vst.msk [vmem:[#allocation5 + $0x98] sm:$0xff] %vm3196_vm5, %v3139_v33  ;;  %v4234_v33 = vld [vmem:[%s8128_s2 + $0x38] sm:$0xff] }
 0x5b7   : > { %4341 = vmatpush.msra.mxu1 %v4234_v33  ;;  %4962 = vmatpush.msra.mxu2 %v4234_v33  ;;  %v4024_v33 = vld [vmem:[#allocation4 + $0x13a] sm:$0xff] }
 0x5b9   : > { %3490 = vrot.lane.b32.xlu2 %v8264_v16, %s5012_s9 }
 0x5ba   : > { %3488 = vrot.lane.b32.xlu1 %v8265_v50, %s5012_s9  ;;  %v4232_v50 = vld [vmem:[%s8128_s2 + $0x28] sm:$0xff] }
 0x5bb   : > { %3486 = vrot.lane.b32.xlu0 %v8266_v3, %s5012_s9  ;;  %v3296_v27 = vpop.permute.xlu2 %3295  ;;  %v3622_v3 = vld [vmem:[#allocation4 + $0x78] sm:$0xff] }
 0x5bc   : > { %v3147_v4 = vpop.permute.xlu1 %3146  ;;  %3391 = vst.msk [vmem:[#allocation5 + $0x8] sm:$0xff] %vm3389_vm6, %v3296_v27 }
 0x5bd   : > { %3220 = vst.msk [vmem:[#allocation5 + $0xb8] sm:$0xff] %vm3196_vm5, %v3147_v4  ;;  %v3145_v6 = vpop.permute.xlu0 %3144  ;;  %v4231_v4 = vld [vmem:[%s8128_s2 + $0x20] sm:$0xff] }
 0x5be   : > { %3219 = vst.msk [vmem:[#allocation5 + $0xb0] sm:$0xff] %vm3196_vm5, %v3145_v6 }
 0x5c1   : > { %3873 = vrot.lane.b32.xlu2 %v3809_v34, %s5013_s10 }
 0x5c2   : > { %3680 = vrot.lane.b32.xlu1 %v6783_v54, %s5014_s11 }
 0x5c3   : > { %3492 = vrot.lane.b32.xlu0 %v8267_v60, %s5012_s9  ;;  %v3302_v40 = vpop.permute.xlu2 %3301 }
 0x5c4   : > { %v3153_v63 = vpop.permute.xlu1 %3152  ;;  %3394 = vst.msk [vmem:[#allocation5 + $0x20] sm:$0xff] %vm3389_vm6, %v3302_v40  ;;  %v4229_v40 = vld [vmem:[%s8128_s2 + $0x10] sm:$0xff] }
 0x5c5   : > { %3223 = vst.msk [vmem:[#allocation5 + $0xd0] sm:$0xff] %vm3196_vm5, %v3153_v63  ;;  %v3151_v10 = vpop.permute.xlu0 %3150  ;;  %v4008_v63 = vld [vmem:[#allocation4 + $0x7a] sm:$0xff] }
 0x5c6   : > { %3222 = vst.msk [vmem:[#allocation5 + $0xc8] sm:$0xff] %vm3196_vm5, %v3151_v10  ;;  %v4228_v10 = vld [vmem:[%s8128_s2 + $0x8] sm:$0xff] }
 0x5c9   : > { %3875 = vrot.lane.b32.xlu2 %v3810_v31, %s5013_s10  ;;  %v3815_v31 = vld [vmem:[#allocation4 + $0x79] sm:$0xff] }
 0x5ca   : > { %3682 = vrot.lane.b32.xlu1 %v6825_v49, %s5014_s11 }
 0x5cb   : > { %4066 = vrot.lane.b32.xlu0 %v8264_v16, %s5015_s14  ;;  %v3308_v54 = vpop.permute.xlu2 %3307  ;;  %v4233_v16 = vld [vmem:[%s8128_s2 + $0x30] sm:$0xff] }
 0x5cc   : > { %v3159_v11 = vpop.permute.xlu1 %3158  ;;  %3397 = vst.msk [vmem:[#allocation5 + $0x38] sm:$0xff] %vm3389_vm6, %v3308_v54  ;;  %4342 = vmatpush.msra.mxu1 %v4233_v16  ;;  %4963 = vmatpush.msra.mxu2 %v4233_v16  ;;  %v3831_v16 = vld [vmem:[#allocation4 + $0x139] sm:$0xff] }
 0x5cd   : > { %3226 = vst.msk [vmem:[#allocation5 + $0xe8] sm:$0xff] %vm3196_vm5, %v3159_v11  ;;  %v3157_v38 = vpop.permute.xlu0 %3156  ;;  %v4227_v11 = vld [vmem:[%s8128_s2] sm:$0xff] }
 0x5ce   : > { %3225 = vst.msk [vmem:[#allocation5 + $0xe0] sm:$0xff] %vm3196_vm5, %v3157_v38  ;;  %4343 = vmatpush.msra.mxu1 %v4232_v50  ;;  %4964 = vmatpush.msra.mxu2 %v4232_v50 }
 0x5d0   : > { %4344 = vmatpush.msra.mxu1 %v4231_v4  ;;  %4965 = vmatpush.msra.mxu2 %v4231_v4  ;;  %v3819_v4 = vld [vmem:[#allocation4 + $0xa9] sm:$0xff] }
 0x5d1   : > { %3877 = vrot.lane.b32.xlu2 %v3811_v0, %s5013_s10 }
 0x5d2   : > { %3684 = vrot.lane.b32.xlu1 %v6821_v62, %s5014_s11  ;;  %v8269_v62 = vld [vmem:[#allocation14_spill] sm:$0xff] }
 0x5d3   : > { %4068 = vrot.lane.b32.xlu0 %v8267_v60, %s5015_s14  ;;  %v3314_v49 = vpop.permute.xlu2 %3313  ;;  %v4230_v60 = vld [vmem:[%s8128_s2 + $0x18] sm:$0xff] }
 0x5d4   : > { %v3294_v14 = vpop.permute.xlu1 %3293  ;;  %3400 = vst.msk [vmem:[#allocation5 + $0x50] sm:$0xff] %vm3389_vm6, %v3314_v49  ;;  %4345 = vmatpush.msra.mxu1 %v4230_v60  ;;  %4966 = vmatpush.msra.mxu2 %v4230_v60  ;;  %v3828_v49 = vld [vmem:[#allocation4 + $0x111] sm:$0xff] }
 0x5d5   : > { %3390 = vst.msk [vmem:[#allocation5] sm:$0xff] %vm3389_vm6, %v3294_v14  ;;  %v3163_v56 = vpop.permute.xlu0 %3162 }
 0x5d6   : > { %3228 = vst.msk [vmem:[#allocation5 + $0xf8] sm:$0xff] %vm3196_vm5, %v3163_v56  ;;  %4346 = vmatpush.msra.mxu1 %v4229_v40  ;;  %4967 = vmatpush.msra.mxu2 %v4229_v40 }
 0x5d8   : > { %4347 = vmatpush.msra.mxu1 %v4228_v10  ;;  %4968 = vmatpush.msra.mxu2 %v4228_v10  ;;  %v3832_v10 = vld [vmem:[#allocation4 + $0x141] sm:$0xff] }
 0x5d9   : > { %3518 = vrot.lane.b32.xlu2 %v8268_v29, %s5012_s9 }
 0x5da   : > { %3686 = vrot.lane.b32.xlu1 %v6786_v7, %s5014_s11  ;;  %4348 = vmatpush.msra.mxu1 %v4227_v11 }
 0x5db   : > { %4070 = vrot.lane.b32.xlu0 %v8269_v62, %s5015_s14  ;;  %v3320_v43 = vpop.permute.xlu2 %3319  ;;  %4969 = vmatpush.msra.mxu2 %v4227_v11 }
 0x5dc   : > { %v3300_v5 = vpop.permute.xlu1 %3299  ;;  %3403 = vst.msk [vmem:[#allocation5 + $0x68] sm:$0xff] %vm3389_vm6, %v3320_v43  ;;  %v3442_v43 = vld [vmem:[#allocation4 + $0x10a] sm:$0xff] }
 0x5dd   : > { %3393 = vst.msk [vmem:[#allocation5 + $0x18] sm:$0xff] %vm3389_vm6, %v3300_v5  ;;  %v3298_v61 = vpop.permute.xlu0 %3297 }
 0x5de   : > { %3392 = vst.msk [vmem:[#allocation5 + $0x10] sm:$0xff] %vm3389_vm6, %v3298_v61 }
 0x5e1   : > { %4072 = vrot.lane.b32.xlu2 %v8270_v28, %s5015_s14 }
 0x5e2   : > { %3712 = vrot.lane.b32.xlu1 %v6909_v23, %s5014_s11 }
 0x5e3   : > { %3879 = vrot.lane.b32.xlu0 %v3812_v46, %s5013_s10  ;;  %v3326_v7 = vpop.permute.xlu2 %3325  ;;  %v3829_v46 = vld [vmem:[#allocation4 + $0x121] sm:$0xff] }
 0x5e4   : > { %v3306_v15 = vpop.permute.xlu1 %3305  ;;  %3406 = vst.msk [vmem:[#allocation5 + $0x80] sm:$0xff] %vm3389_vm6, %v3326_v7  ;;  %v4009_v7 = vld [vmem:[#allocation4 + $0x82] sm:$0xff] }
 0x5e5   : > { %3396 = vst.msk [vmem:[#allocation5 + $0x30] sm:$0xff] %vm3389_vm6, %v3306_v15  ;;  %v3304_v37 = vpop.permute.xlu0 %3303 }
 0x5e6   : > { %3395 = vst.msk [vmem:[#allocation5 + $0x28] sm:$0xff] %vm3389_vm6, %v3304_v37 }
 0x5e9   : > { %3494 = vrot.lane.b32.xlu2 %v8269_v62, %s5012_s9  ;;  %v3816_v62 = vld [vmem:[#allocation4 + $0x81] sm:$0xff] }
 0x5ea   : > { %4098 = vrot.lane.b32.xlu1 %v8271_v36, %s5015_s14 }
 0x5eb   : > { %3905 = vrot.lane.b32.xlu0 %v3825_v25, %s5013_s10  ;;  %v3332_v23 = vpop.permute.xlu2 %3331  ;;  %v4022_v25 = vld [vmem:[#allocation4 + $0x122] sm:$0xff] }
 0x5ec   : > { %v3312_v44 = vpop.permute.xlu1 %3311  ;;  %3409 = vst.msk [vmem:[#allocation5 + $0x98] sm:$0xff] %vm3389_vm6, %v3332_v23 }
 0x5ed   : > { %3399 = vst.msk [vmem:[#allocation5 + $0x48] sm:$0xff] %vm3389_vm6, %v3312_v44  ;;  %v3310_v39 = vpop.permute.xlu0 %3309 }
 0x5ee   : > { %3398 = vst.msk [vmem:[#allocation5 + $0x40] sm:$0xff] %vm3389_vm6, %v3310_v39 }
 0x5f1   : > { %3881 = vrot.lane.b32.xlu2 %v3813_v53, %s5013_s10  ;;  %v3637_v53 = vld [vmem:[#allocation4 + $0x128] sm:$0xff] }
 0x5f2   : > { %3520 = vrot.lane.b32.xlu1 %v8272_v35, %s5012_s9  ;;  %v3817_v35 = vld [vmem:[#allocation4 + $0x91] sm:$0xff] }
 0x5f3   : > { %3688 = vrot.lane.b32.xlu0 %v6839_v24, %s5014_s11  ;;  %v3338_v51 = vpop.permute.xlu2 %3337 }
 0x5f4   : > { %v3318_v19 = vpop.permute.xlu1 %3317  ;;  %3412 = vst.msk [vmem:[#allocation5 + $0xb0] sm:$0xff] %vm3389_vm6, %v3338_v51  ;;  %v3443_v51 = vld [vmem:[#allocation4 + $0x112] sm:$0xff] }
 0x5f5   : > { %3402 = vst.msk [vmem:[#allocation5 + $0x60] sm:$0xff] %vm3389_vm6, %v3318_v19  ;;  %v3316_v17 = vpop.permute.xlu0 %3315 }
 0x5f6   : > { %3401 = vst.msk [vmem:[#allocation5 + $0x58] sm:$0xff] %vm3389_vm6, %v3316_v17 }
 0x5f9   : > { %3907 = vrot.lane.b32.xlu2 %v3826_v32, %s5013_s10 }
 0x5fa   : > { %4074 = vrot.lane.b32.xlu1 %v4006_v22, %s5015_s14 }
 0x5fb   : > { %3714 = vrot.lane.b32.xlu0 %v6905_v21, %s5014_s11  ;;  %v3344_v26 = vpop.permute.xlu2 %3343 }
 0x5fc   : > { %v3324_v24 = vpop.permute.xlu1 %3323  ;;  %3415 = vst.msk [vmem:[#allocation5 + $0xc8] sm:$0xff] %vm3389_vm6, %v3344_v26  ;;  %v4023_v26 = vld [vmem:[#allocation4 + $0x12a] sm:$0xff] }
 0x5fd   : > { %3405 = vst.msk [vmem:[#allocation5 + $0x78] sm:$0xff] %vm3389_vm6, %v3324_v24  ;;  %v3322_v13 = vpop.permute.xlu0 %3321  ;;  %v3830_v24 = vld [vmem:[#allocation4 + $0x129] sm:$0xff] }
 0x5fe   : > { %3404 = vst.msk [vmem:[#allocation5 + $0x70] sm:$0xff] %vm3389_vm6, %v3322_v13  ;;  %v4010_v13 = vld [vmem:[#allocation4 + $0x92] sm:$0xff] }
 0x601   : > { %3690 = vrot.lane.b32.xlu2 %v6833_v45, %s5014_s11 }
 0x602   : > { %3496 = vrot.lane.b32.xlu1 %v3427_v55, %s5012_s9 }
 0x603   : > { %4100 = vrot.lane.b32.xlu0 %v8273_v9, %s5015_s14  ;;  %v3350_v58 = vpop.permute.xlu2 %3349 }
 0x604   : > { %v3330_v21 = vpop.permute.xlu1 %3329  ;;  %3418 = vst.msk [vmem:[#allocation5 + $0xe0] sm:$0xff] %vm3389_vm6, %v3350_v58 }
 0x605   : > { %3408 = vst.msk [vmem:[#allocation5 + $0x90] sm:$0xff] %vm3389_vm6, %v3330_v21  ;;  %v3328_v8 = vpop.permute.xlu0 %3327 }
 0x606   : > { %3407 = vst.msk [vmem:[#allocation5 + $0x88] sm:$0xff] %vm3389_vm6, %v3328_v8  ;;  %v3625_v8 = vld [vmem:[#allocation4 + $0x98] sm:$0xff] }
 0x609   : > { %3716 = vrot.lane.b32.xlu2 %v6847_v42, %s5014_s11  ;;  %v4007_v42 = vld [vmem:[#allocation4 + $0x6a] sm:$0xff] }
 0x60a   : > { %3883 = vrot.lane.b32.xlu1 %v3814_v48, %s5013_s10 }
 0x60b   : > { %3522 = vrot.lane.b32.xlu0 %v8271_v36, %s5012_s9  ;;  %v3356_v45 = vpop.permute.xlu2 %3355  ;;  %v3624_v36 = vld [vmem:[#allocation4 + $0x90] sm:$0xff] }
 0x60c   : > { %v3336_v20 = vpop.permute.xlu1 %3335  ;;  %3421 = vst.msk [vmem:[#allocation5 + $0xf8] sm:$0xff] %vm3389_vm6, %v3356_v45 }
 0x60d   : > { %3411 = vst.msk [vmem:[#allocation5 + $0xa8] sm:$0xff] %vm3389_vm6, %v3336_v20  ;;  %v3334_v41 = vpop.permute.xlu0 %3333 }
 0x60e   : > { %3410 = vst.msk [vmem:[#allocation5 + $0xa0] sm:$0xff] %vm3389_vm6, %v3334_v41 }
 0x611   : > { %4102 = vrot.lane.b32.xlu2 %v8274_v30, %s5015_s14  ;;  %v3638_v30 = vld [vmem:[#allocation4 + $0x138] sm:$0xff] }
 0x612   : > { %3909 = vrot.lane.b32.xlu1 %v3827_v57, %s5013_s10  ;;  %v4011_v57 = vld [vmem:[#allocation4 + $0x9a] sm:$0xff] }
 0x613   : > { %4076 = vrot.lane.b32.xlu0 %v4007_v42, %s5015_s14  ;;  %v3491_v1 = vpop.permute.xlu2 %3490 }
 0x614   : > { %v3342_v2 = vpop.permute.xlu1 %3341  ;;  %3585 = vst.msk [vmem:[#allocation5 + $0x10] sm:$0xff] %vm3582_vm7, %v3491_v1 }
 0x615   : > { %3414 = vst.msk [vmem:[#allocation5 + $0xc0] sm:$0xff] %vm3389_vm6, %v3342_v2  ;;  %v3340_v59 = vpop.permute.xlu0 %3339 }
 0x616   : > { %3413 = vst.msk [vmem:[#allocation5 + $0xb8] sm:$0xff] %vm3389_vm6, %v3340_v59 }
 0x619   : > { %3524 = vrot.lane.b32.xlu2 %v8273_v9, %s5012_s9 }
 0x61a   : > { %3692 = vrot.lane.b32.xlu1 %v3622_v3, %s5014_s11 }
 0x61b   : > { %3498 = vrot.lane.b32.xlu0 %v4006_v22, %s5012_s9  ;;  %v3874_v27 = vpop.permute.xlu2 %3873 }
 0x61c   : > { %v3348_v6 = vpop.permute.xlu1 %3347 }
 0x61d   : > { %3417 = vst.msk [vmem:[#allocation5 + $0xd8] sm:$0xff] %vm3389_vm6, %v3348_v6  ;;  %v3346_v34 = vpop.permute.xlu0 %3345  ;;  %v3626_v6 = vld [vmem:[#allocation4 + $0xa8] sm:$0xff] }
 0x61e   : > { %3416 = vst.msk [vmem:[#allocation5 + $0xd0] sm:$0xff] %vm3389_vm6, %v3346_v34 }
 0x621   : > { %4078 = vrot.lane.b32.xlu2 %v4008_v63, %s5015_s14 }
 0x622   : > { %3718 = vrot.lane.b32.xlu1 %v6917_v52, %s5014_s11  ;;  %v8275_v52 = vld [vmem:[#allocation24_spill] sm:$0xff] }
 0x623   : > { %3885 = vrot.lane.b32.xlu0 %v3815_v31, %s5013_s10  ;;  %v3876_v54 = vpop.permute.xlu2 %3875  ;;  %v4012_v31 = vld [vmem:[#allocation4 + $0xaa] sm:$0xff] }
 0x624   : > { %v3354_v38 = vpop.permute.xlu1 %3353 }
 0x625   : > { %3420 = vst.msk [vmem:[#allocation5 + $0xf0] sm:$0xff] %vm3389_vm6, %v3354_v38  ;;  %v3352_v0 = vpop.permute.xlu0 %3351 }
 0x626   : > { %3419 = vst.msk [vmem:[#allocation5 + $0xe8] sm:$0xff] %vm3389_vm6, %v3352_v0 }
 0x629   : > { %3500 = vrot.lane.b32.xlu2 %v4007_v42, %s5012_s9  ;;  %v3818_v42 = vld [vmem:[#allocation4 + $0x99] sm:$0xff] }
 0x62a   : > { %4104 = vrot.lane.b32.xlu1 %v8275_v52, %s5015_s14 }
 0x62b   : > { %3911 = vrot.lane.b32.xlu0 %v3828_v49, %s5013_s10  ;;  %v3878_v14 = vpop.permute.xlu2 %3877  ;;  %v3627_v49 = vld [vmem:[#allocation4 + $0xb0] sm:$0xff] }
 0x62c   : > { %v3489_v56 = vpop.permute.xlu1 %3488 }
 0x62d   : > { %3584 = vst.msk [vmem:[#allocation5 + $0x8] sm:$0xff] %vm3582_vm7, %v3489_v56  ;;  %v3487_v29 = vpop.permute.xlu0 %3486 }
 0x62e   : > { %3583 = vst.msk [vmem:[#allocation5] sm:$0xff] %vm3582_vm7, %v3487_v29 }
 0x631   : > { %3887 = vrot.lane.b32.xlu2 %v3816_v62, %s5013_s10 }
 0x632   : > { %3526 = vrot.lane.b32.xlu1 %v3442_v43, %s5012_s9  ;;  %v3640_v43 = vld [vmem:[#allocation4 + $0x150] sm:$0xff] }
 0x633   : > { %3694 = vrot.lane.b32.xlu0 %v6861_v47, %s5014_s11  ;;  %v3519_v5 = vpop.permute.xlu2 %3518 }
 0x634   : > { %v3681_v61 = vpop.permute.xlu1 %3680  ;;  %3599 = vst.msk [vmem:[#allocation5 + $0x80] sm:$0xff] %vm3582_vm7, %v3519_v5  ;;  %v3820_v5 = vld [vmem:[#allocation4 + $0xb1] sm:$0xff] }
 0x635   : > { %3777 = vst.msk [vmem:[#allocation5] sm:$0xff] %vm3776_vm8, %v3681_v61  ;;  %v3493_v28 = vpop.permute.xlu0 %3492 }
 0x636   : > { %3586 = vst.msk [vmem:[#allocation5 + $0x18] sm:$0xff] %vm3582_vm7, %v3493_v28 }
 0x637   : > { %3970 = vst.msk [vmem:[#allocation5] sm:$0xff] %vm3969_vm9, %v3874_v27 }
 0x639   : > { %3913 = vrot.lane.b32.xlu2 %v3829_v46, %s5013_s10 }
 0x63a   : > { %4080 = vrot.lane.b32.xlu1 %v4009_v7, %s5015_s14 }
 0x63b   : > { %3720 = vrot.lane.b32.xlu0 %v6913_v18, %s5014_s11  ;;  %v4073_v47 = vpop.permute.xlu2 %4072 }
 0x63c   : > { %v3683_v15 = vpop.permute.xlu1 %3682 }
 0x63d   : > { %3778 = vst.msk [vmem:[#allocation5 + $0x8] sm:$0xff] %vm3776_vm8, %v3683_v15  ;;  %v4067_v37 = vpop.permute.xlu0 %4066  ;;  %v4026_v15 = vld [vmem:[#allocation4 + $0x152] sm:$0xff] }
 0x63e   : > { %4163 = vst.msk [vmem:[#allocation5] sm:$0xff] %vm4162_vm10, %v4067_v37  ;;  %v3833_v37 = vld [vmem:[#allocation4 + $0x151] sm:$0xff] }
 0x63f   : > { %3971 = vst.msk [vmem:[#allocation5 + $0x8] sm:$0xff] %vm3969_vm9, %v3876_v54  ;;  %v3639_v54 = vld [vmem:[#allocation4 + $0x140] sm:$0xff] }
 0x641   : > { %3696 = vrot.lane.b32.xlu2 %v3624_v36, %s5014_s11  ;;  %v4013_v36 = vld [vmem:[#allocation4 + $0xb2] sm:$0xff] }
 0x642   : > { %3502 = vrot.lane.b32.xlu1 %v4008_v63, %s5012_s9 }
 0x643   : > { %4106 = vrot.lane.b32.xlu0 %v4022_v25, %s5015_s14  ;;  %v3495_v23 = vpop.permute.xlu2 %3494 }
 0x644   : > { %v3685_v18 = vpop.permute.xlu1 %3684  ;;  %3587 = vst.msk [vmem:[#allocation5 + $0x20] sm:$0xff] %vm3582_vm7, %v3495_v23 }
 0x645   : > { %3779 = vst.msk [vmem:[#allocation5 + $0x10] sm:$0xff] %vm3776_vm8, %v3685_v18  ;;  %v4069_v44 = vpop.permute.xlu0 %4068  ;;  %v4195_v39 = vld [vmem:[#allocation5] sm:$0xff] }
 0x646   : > { %3972 = vst.msk [vmem:[#allocation5 + $0x10] sm:$0xff] %vm3969_vm9, %v3878_v14  ;;  %4920 = vmatmul.msk.f32.vlgmr.msra.gmra.mxu1 %vm4236_vm11, %v4195_v39  ;;  %v4025_v14 = vld [vmem:[#allocation4 + $0x142] sm:$0xff] }
 0x647   : > { %4164 = vst.msk [vmem:[#allocation5 + $0x8] sm:$0xff] %vm4162_vm10, %v4069_v44  ;;  %v3628_v44 = vld [vmem:[#allocation4 + $0xc0] sm:$0xff] }
 0x649   : > { %3722 = vrot.lane.b32.xlu2 %v3637_v53, %s5014_s11 }
 0x64a   : > { %3889 = vrot.lane.b32.xlu1 %v3817_v35, %s5013_s10 }
 0x64b   : > { %3528 = vrot.lane.b32.xlu0 %v3443_v51, %s5012_s9  ;;  %v3882_v19 = vpop.permute.xlu2 %3881 }
 0x64c   : > { %v3687_v17 = vpop.permute.xlu1 %3686 }
 0x64d   : > { %3780 = vst.msk [vmem:[#allocation5 + $0x18] sm:$0xff] %vm3776_vm8, %v3687_v17  ;;  %v4071_v32 = vpop.permute.xlu0 %4070  ;;  %v3641_v17 = vld [vmem:[#allocation4 + $0x158] sm:$0xff] }
 0x64e   : > { %4165 = vst.msk [vmem:[#allocation5 + $0x10] sm:$0xff] %vm4162_vm10, %v4071_v32  ;;  %v4196_v22 = vld [vmem:[#allocation5 + $0x8] sm:$0xff]  ;;  %v3821_v32 = vld [vmem:[#allocation4 + $0xc1] sm:$0xff] }
 0x64f   : > { %4921 = vmatmul.msk.f32.gmra.mxu1 %vm4236_vm11, %v4196_v22 }
 0x651   : > { %4108 = vrot.lane.b32.xlu2 %v4023_v26, %s5015_s14 }
 0x652   : > { %3915 = vrot.lane.b32.xlu1 %v3830_v24, %s5013_s10 }
 0x653   : > { %4082 = vrot.lane.b32.xlu0 %v4010_v13, %s5015_s14  ;;  %v3908_v55 = vpop.permute.xlu2 %3907 }
 0x654   : > { %v3713_v9 = vpop.permute.xlu1 %3712 }
 0x655   : > { %3793 = vst.msk [vmem:[#allocation5 + $0x80] sm:$0xff] %vm3776_vm8, %v3713_v9  ;;  %v3880_v58 = vpop.permute.xlu0 %3879  ;;  %v4197_v21 = vld [vmem:[#allocation5 + $0x10] sm:$0xff] }
 0x656   : > { %3973 = vst.msk [vmem:[#allocation5 + $0x18] sm:$0xff] %vm3969_vm9, %v3880_v58  ;;  %v3834_v9 = vld [vmem:[#allocation4 + $0x159] sm:$0xff] }
 0x657   : > { %4166 = vst.msk [vmem:[#allocation5 + $0x18] sm:$0xff] %vm4162_vm10, %v4073_v47  ;;  %4922 = vmatmul.msk.f32.gmra.mxu1 %vm4236_vm11, %v4197_v21 }
 0x659   : > { %3530 = vrot.lane.b32.xlu2 %v4022_v25, %s5012_s9 }
 0x65a   : > { %3698 = vrot.lane.b32.xlu1 %v3625_v8, %s5014_s11 }
 0x65b   : > { %3504 = vrot.lane.b32.xlu0 %v4009_v7, %s5012_s9  ;;  %v3691_v48 = vpop.permute.xlu2 %3690 }
 0x65c   : > { %v4099_v45 = vpop.permute.xlu1 %4098 }
 0x65d   : > { %v3906_v20 = vpop.permute.xlu0 %3905 }
 0x65e   : > { %3986 = vst.msk [vmem:[#allocation5 + $0x80] sm:$0xff] %vm3969_vm9, %v3906_v20  ;;  %v4198_v41 = vld [vmem:[#allocation5 + $0x18] sm:$0xff] }
 0x65f   : > { %4179 = vst.msk [vmem:[#allocation5 + $0x80] sm:$0xff] %vm4162_vm10, %v4099_v45  ;;  %4923 = vmatmul.msk.f32.gmra.mxu1 %vm4236_vm11, %v4198_v41  ;;  %v3629_v45 = vld [vmem:[#allocation4 + $0xc8] sm:$0xff] }
 0x661   : > { %4084 = vrot.lane.b32.xlu2 %v4011_v57, %s5015_s14 }
 0x662   : > { %3724 = vrot.lane.b32.xlu1 %v3638_v30, %s5014_s11 }
 0x663   : > { %3891 = vrot.lane.b32.xlu0 %v3818_v42, %s5013_s10  ;;  %v3717_v1 = vpop.permute.xlu2 %3716  ;;  %v3835_v42 = vld [vmem:[#allocation4 + $0x169] sm:$0xff] }
 0x664   : > { %v3521_v12 = vpop.permute.xlu1 %3520 }
 0x665   : > { %3600 = vst.msk [vmem:[#allocation5 + $0x88] sm:$0xff] %vm3582_vm7, %v3521_v12  ;;  %v3689_v2 = vpop.permute.xlu0 %3688  ;;  %v3642_v12 = vld [vmem:[#allocation4 + $0x168] sm:$0xff] }
 0x666   : > { %3781 = vst.msk [vmem:[#allocation5 + $0x20] sm:$0xff] %vm3776_vm8, %v3689_v2  ;;  %v4211_v59 = vld [vmem:[#allocation5 + $0x80] sm:$0xff] }
 0x667   : > { %3974 = vst.msk [vmem:[#allocation5 + $0x20] sm:$0xff] %vm3969_vm9, %v3882_v19  ;;  %4936 = vmatmul.msk.f32.vlgmr.msra.gmra.mxu2 %vm4236_vm11, %v4211_v59  ;;  %v4014_v19 = vld [vmem:[#allocation4 + $0xc2] sm:$0xff] }
 0x669   : > { %3506 = vrot.lane.b32.xlu2 %v4010_v13, %s5012_s9 }
 0x66a   : > { %4110 = vrot.lane.b32.xlu1 %v4024_v33, %s5015_s14 }
 0x66b   : > { %3917 = vrot.lane.b32.xlu0 %v3831_v16, %s5013_s10  ;;  %v4103_v50 = vpop.permute.xlu2 %4102 }
 0x66c   : > { %v4075_v3 = vpop.permute.xlu1 %4074 }
 0x66d   : > { %4167 = vst.msk [vmem:[#allocation5 + $0x20] sm:$0xff] %vm4162_vm10, %v4075_v3  ;;  %v3715_v27 = vpop.permute.xlu0 %3714  ;;  %v4028_v3 = vld [vmem:[#allocation4 + $0x16a] sm:$0xff] }
 0x66e   : > { %3794 = vst.msk [vmem:[#allocation5 + $0x88] sm:$0xff] %vm3776_vm8, %v3715_v27 }
 0x66f   : > { %3987 = vst.msk [vmem:[#allocation5 + $0x88] sm:$0xff] %vm3969_vm9, %v3908_v55  ;;  %v4027_v55 = vld [vmem:[#allocation4 + $0x15a] sm:$0xff] }
 0x671   : > { %3893 = vrot.lane.b32.xlu2 %v3819_v4, %s5013_s10 }
 0x672   : > { %3532 = vrot.lane.b32.xlu1 %v4023_v26, %s5012_s9 }
 0x673   : > { %3700 = vrot.lane.b32.xlu0 %v3626_v6, %s5014_s11  ;;  %v3525_v34 = vpop.permute.xlu2 %3524 }
 0x674   : > { %v3497_v60 = vpop.permute.xlu1 %3496  ;;  %3602 = vst.msk [vmem:[#allocation5 + $0x98] sm:$0xff] %vm3582_vm7, %v3525_v34  ;;  %v4199_v40 = vld [vmem:[#allocation5 + $0x20] sm:$0xff] }
 0x675   : > { %3588 = vst.msk [vmem:[#allocation5 + $0x28] sm:$0xff] %vm3582_vm7, %v3497_v60  ;;  %v4101_v63 = vpop.permute.xlu0 %4100  ;;  %4924 = vmatmul.msk.f32.gmra.mxu1 %vm4236_vm11, %v4199_v40  ;;  %v3643_v34 = vld [vmem:[#allocation4 + $0x170] sm:$0xff]  ;;  %v3823_v60 = vld [vmem:[#allocation4 + $0xd9] sm:$0xff] }
 0x676   : > { %3782 = vst.msk [vmem:[#allocation5 + $0x28] sm:$0xff] %vm3776_vm8, %v3691_v48  ;;  %v3822_v48 = vld [vmem:[#allocation4 + $0xc9] sm:$0xff] }
 0x677   : > { %4180 = vst.msk [vmem:[#allocation5 + $0x88] sm:$0xff] %vm4162_vm10, %v4101_v63 }
 0x679   : > { %3919 = vrot.lane.b32.xlu2 %v3832_v10, %s5013_s10 }
 0x67a   : > { %4086 = vrot.lane.b32.xlu1 %v4012_v31, %s5015_s14 }
 0x67b   : > { %3726 = vrot.lane.b32.xlu0 %v3639_v54, %s5014_s11  ;;  %v4079_v11 = vpop.permute.xlu2 %4078 }
 0x67c   : > { %v3884_v38 = vpop.permute.xlu1 %3883 }
 0x67d   : > { %3975 = vst.msk [vmem:[#allocation5 + $0x28] sm:$0xff] %vm3969_vm9, %v3884_v38  ;;  %v3523_v0 = vpop.permute.xlu0 %3522  ;;  %v3836_v38 = vld [vmem:[#allocation4 + $0x171] sm:$0xff] }
 0x67e   : > { %3601 = vst.msk [vmem:[#allocation5 + $0x90] sm:$0xff] %vm3582_vm7, %v3523_v0  ;;  %v4212_v52 = vld [vmem:[#allocation5 + $0x88] sm:$0xff] }
 0x67f   : > { %3795 = vst.msk [vmem:[#allocation5 + $0x90] sm:$0xff] %vm3776_vm8, %v3717_v1  ;;  %4937 = vmatmul.msk.f32.gmra.mxu2 %vm4236_vm11, %v4212_v52  ;;  %v4015_v1 = vld [vmem:[#allocation4 + $0xca] sm:$0xff]  ;;  %v4016_v0 = vld [vmem:[#allocation4 + $0xda] sm:$0xff] }
 0x681   : > { %3702 = vrot.lane.b32.xlu2 %v3627_v49, %s5014_s11 }
 0x682   : > { %3508 = vrot.lane.b32.xlu1 %v4011_v57, %s5012_s9 }
 0x683   : > { %4112 = vrot.lane.b32.xlu0 %v4025_v14, %s5015_s14  ;;  %v3501_v56 = vpop.permute.xlu2 %3500 }
 0x684   : > { %v3910_v29 = vpop.permute.xlu1 %3909  ;;  %3590 = vst.msk [vmem:[#allocation5 + $0x38] sm:$0xff] %vm3582_vm7, %v3501_v56  ;;  %v3631_v56 = vld [vmem:[#allocation4 + $0xe0] sm:$0xff] }
 0x685   : > { %3988 = vst.msk [vmem:[#allocation5 + $0x90] sm:$0xff] %vm3969_vm9, %v3910_v29  ;;  %v4077_v62 = vpop.permute.xlu0 %4076 }
 0x686   : > { %4181 = vst.msk [vmem:[#allocation5 + $0x90] sm:$0xff] %vm4162_vm10, %v4103_v50  ;;  %v3630_v50 = vld [vmem:[#allocation4 + $0xd8] sm:$0xff] }
 0x687   : > { %4168 = vst.msk [vmem:[#allocation5 + $0x28] sm:$0xff] %vm4162_vm10, %v4077_v62 }
 0x689   : > { %3728 = vrot.lane.b32.xlu2 %v3640_v43, %s5014_s11 }
 0x68a   : > { %3895 = vrot.lane.b32.xlu1 %v3820_v5, %s5013_s10 }
 0x68b   : > { %3534 = vrot.lane.b32.xlu0 %v4024_v33, %s5012_s9  ;;  %v3888_v61 = vpop.permute.xlu2 %3887 }
 0x68c   : > { %v3693_v28 = vpop.permute.xlu1 %3692 }
 0x68d   : > { %v3499_v46 = vpop.permute.xlu0 %3498  ;;  %v4213_v7 = vld [vmem:[#allocation5 + $0x90] sm:$0xff] }
 0x68e   : > { %3589 = vst.msk [vmem:[#allocation5 + $0x30] sm:$0xff] %vm3582_vm7, %v3499_v46  ;;  %v4200_v47 = vld [vmem:[#allocation5 + $0x28] sm:$0xff]  ;;  %4938 = vmatmul.msk.f32.gmra.mxu2 %vm4236_vm11, %v4213_v7  ;;  %v3824_v46 = vld [vmem:[#allocation4 + $0xe1] sm:$0xff] }
 0x68f   : > { %3783 = vst.msk [vmem:[#allocation5 + $0x30] sm:$0xff] %vm3776_vm8, %v3693_v28  ;;  %4925 = vmatmul.msk.f32.gmra.mxu1 %vm4236_vm11, %v4200_v47  ;;  %v3644_v28 = vld [vmem:[#allocation4 + $0x180] sm:$0xff] }
 0x691   : > { %4114 = vrot.lane.b32.xlu2 %v4026_v15, %s5015_s14 }
 0x692   : > { %3921 = vrot.lane.b32.xlu1 %v3833_v37, %s5013_s10 }
 0x693   : > { %4088 = vrot.lane.b32.xlu0 %v4013_v36, %s5015_s14  ;;  %v3914_v25 = vpop.permute.xlu2 %3913 }
 0x694   : > { %v3719_v23 = vpop.permute.xlu1 %3718 }
 0x695   : > { %3796 = vst.msk [vmem:[#allocation5 + $0x98] sm:$0xff] %vm3776_vm8, %v3719_v23  ;;  %v3886_v18 = vpop.permute.xlu0 %3885 }
 0x696   : > { %3976 = vst.msk [vmem:[#allocation5 + $0x30] sm:$0xff] %vm3969_vm9, %v3886_v18 }
 0x697   : > { %4169 = vst.msk [vmem:[#allocation5 + $0x30] sm:$0xff] %vm4162_vm10, %v4079_v11  ;;  %v4029_v11 = vld [vmem:[#allocation4 + $0x172] sm:$0xff] }
 0x699   : > { %3536 = vrot.lane.b32.xlu2 %v4025_v14, %s5012_s9 }
 0x69a   : > { %3704 = vrot.lane.b32.xlu1 %v3628_v44, %s5014_s11 }
 0x69b   : > { %3510 = vrot.lane.b32.xlu0 %v4012_v31, %s5012_s9  ;;  %v3697_v39 = vpop.permute.xlu2 %3696 }
 0x69c   : > { %v4105_v53 = vpop.permute.xlu1 %4104 }
 0x69d   : > { %v3912_v35 = vpop.permute.xlu0 %3911 }
 0x69e   : > { %3989 = vst.msk [vmem:[#allocation5 + $0x98] sm:$0xff] %vm3969_vm9, %v3912_v35  ;;  %v4201_v51 = vld [vmem:[#allocation5 + $0x30] sm:$0xff]  ;;  %v3645_v35 = vld [vmem:[#allocation4 + $0x188] sm:$0xff] }
 0x69f   : > { %4182 = vst.msk [vmem:[#allocation5 + $0x98] sm:$0xff] %vm4162_vm10, %v4105_v53  ;;  %4926 = vmatmul.msk.f32.gmra.mxu1 %vm4236_vm11, %v4201_v51  ;;  %v3838_v53 = vld [vmem:[#allocation4 + $0x189] sm:$0xff] }
 0x6a1   : > { %4090 = vrot.lane.b32.xlu2 %v4014_v19, %s5015_s14 }
 0x6a2   : > { %3730 = vrot.lane.b32.xlu1 %v3641_v17, %s5014_s11 }
 0x6a3   : > { %3897 = vrot.lane.b32.xlu0 %v3821_v32, %s5013_s10  ;;  %v3723_v22 = vpop.permute.xlu2 %3722 }
 0x6a4   : > { %v3527_v26 = vpop.permute.xlu1 %3526 }
 0x6a5   : > { %3603 = vst.msk [vmem:[#allocation5 + $0xa0] sm:$0xff] %vm3582_vm7, %v3527_v26  ;;  %v3695_v24 = vpop.permute.xlu0 %3694  ;;  %v3839_v26 = vld [vmem:[#allocation4 + $0x199] sm:$0xff] }
 0x6a6   : > { %3784 = vst.msk [vmem:[#allocation5 + $0x38] sm:$0xff] %vm3776_vm8, %v3695_v24  ;;  %v4214_v13 = vld [vmem:[#allocation5 + $0x98] sm:$0xff] }
 0x6a7   : > { %3977 = vst.msk [vmem:[#allocation5 + $0x38] sm:$0xff] %vm3969_vm9, %v3888_v61  ;;  %4939 = vmatmul.msk.f32.gmra.mxu2 %vm4236_vm11, %v4214_v13  ;;  %v4017_v61 = vld [vmem:[#allocation4 + $0xe2] sm:$0xff] }
 0x6a9   : > { %3512 = vrot.lane.b32.xlu2 %v4013_v36, %s5012_s9  ;;  %v4030_v36 = vld [vmem:[#allocation4 + $0x182] sm:$0xff] }
 0x6aa   : > { %4116 = vrot.lane.b32.xlu1 %v4027_v55, %s5015_s14 }
 0x6ab   : > { %3923 = vrot.lane.b32.xlu0 %v3834_v9, %s5013_s10  ;;  %v4109_v58 = vpop.permute.xlu2 %4108 }
 0x6ac   : > { %v4081_v21 = vpop.permute.xlu1 %4080 }
 0x6ad   : > { %4170 = vst.msk [vmem:[#allocation5 + $0x38] sm:$0xff] %vm4162_vm10, %v4081_v21  ;;  %v3721_v8 = vpop.permute.xlu0 %3720  ;;  %v3647_v21 = vld [vmem:[#allocation4 + $0x1a0] sm:$0xff] }
 0x6ae   : > { %3797 = vst.msk [vmem:[#allocation5 + $0xa0] sm:$0xff] %vm3776_vm8, %v3721_v8 }
 0x6af   : > { %3990 = vst.msk [vmem:[#allocation5 + $0xa0] sm:$0xff] %vm3969_vm9, %v3914_v25  ;;  %v3837_v25 = vld [vmem:[#allocation4 + $0x181] sm:$0xff] }
 0x6b1   : > { %3899 = vrot.lane.b32.xlu2 %v3822_v48, %s5013_s10 }
 0x6b2   : > { %3538 = vrot.lane.b32.xlu1 %v4026_v15, %s5012_s9 }
 0x6b3   : > { %3706 = vrot.lane.b32.xlu0 %v3629_v45, %s5014_s11  ;;  %v3531_v20 = vpop.permute.xlu2 %3530 }
 0x6b4   : > { %v3503_v41 = vpop.permute.xlu1 %3502  ;;  %3605 = vst.msk [vmem:[#allocation5 + $0xb0] sm:$0xff] %vm3582_vm7, %v3531_v20  ;;  %v4202_v57 = vld [vmem:[#allocation5 + $0x38] sm:$0xff] }
 0x6b5   : > { %3591 = vst.msk [vmem:[#allocation5 + $0x40] sm:$0xff] %vm3582_vm7, %v3503_v41  ;;  %v4107_v30 = vpop.permute.xlu0 %4106  ;;  %4927 = vmatmul.msk.f32.gmra.mxu1 %vm4236_vm11, %v4202_v57  ;;  %v4033_v20 = vld [vmem:[#allocation4 + $0x1a2] sm:$0xff] }
 0x6b6   : > { %3785 = vst.msk [vmem:[#allocation5 + $0x40] sm:$0xff] %vm3776_vm8, %v3697_v39  ;;  %v4031_v39 = vld [vmem:[#allocation4 + $0x18a] sm:$0xff]  ;;  %v3840_v41 = vld [vmem:[#allocation4 + $0x1a1] sm:$0xff] }
 0x6b7   : > { %4183 = vst.msk [vmem:[#allocation5 + $0xa0] sm:$0xff] %vm4162_vm10, %v4107_v30 }
 0x6b9   : > { %3925 = vrot.lane.b32.xlu2 %v3835_v42, %s5013_s10 }
 0x6ba   : > { %4092 = vrot.lane.b32.xlu1 %v4015_v1, %s5015_s14 }
 0x6bb   : > { %3732 = vrot.lane.b32.xlu0 %v3642_v12, %s5014_s11  ;;  %v4085_v2 = vpop.permute.xlu2 %4084 }
 0x6bc   : > { %v3890_v59 = vpop.permute.xlu1 %3889 }
 0x6bd   : > { %3978 = vst.msk [vmem:[#allocation5 + $0x40] sm:$0xff] %vm3969_vm9, %v3890_v59  ;;  %v3529_v33 = vpop.permute.xlu0 %3528 }
 0x6be   : > { %3604 = vst.msk [vmem:[#allocation5 + $0xa8] sm:$0xff] %vm3582_vm7, %v3529_v33  ;;  %v4215_v16 = vld [vmem:[#allocation5 + $0xa0] sm:$0xff] }
 0x6bf   : > { %3798 = vst.msk [vmem:[#allocation5 + $0xa8] sm:$0xff] %vm3776_vm8, %v3723_v22  ;;  %4940 = vmatmul.msk.f32.gmra.mxu2 %vm4236_vm11, %v4215_v16  ;;  %v3646_v22 = vld [vmem:[#allocation4 + $0x198] sm:$0xff] }
 0x6c1   : > { %3708 = vrot.lane.b32.xlu2 %v3630_v50, %s5014_s11 }
 0x6c2   : > { %3514 = vrot.lane.b32.xlu1 %v4014_v19, %s5012_s9 }
 0x6c3   : > { %4118 = vrot.lane.b32.xlu0 %v4028_v3, %s5015_s14  ;;  %v3507_v27 = vpop.permute.xlu2 %3506 }
 0x6c4   : > { %v3916_v4 = vpop.permute.xlu1 %3915  ;;  %3593 = vst.msk [vmem:[#allocation5 + $0x50] sm:$0xff] %vm3582_vm7, %v3507_v27 }
 0x6c5   : > { %3991 = vst.msk [vmem:[#allocation5 + $0xa8] sm:$0xff] %vm3969_vm9, %v3916_v4  ;;  %v4083_v6 = vpop.permute.xlu0 %4082 }
 0x6c6   : > { %4184 = vst.msk [vmem:[#allocation5 + $0xa8] sm:$0xff] %vm4162_vm10, %v4109_v58  ;;  %v4032_v58 = vld [vmem:[#allocation4 + $0x19a] sm:$0xff] }
 0x6c7   : > { %4171 = vst.msk [vmem:[#allocation5 + $0x40] sm:$0xff] %vm4162_vm10, %v4083_v6 }
 0x6c9   : > { %3734 = vrot.lane.b32.xlu2 %v3643_v34, %s5014_s11 }
 0x6ca   : > { %3901 = vrot.lane.b32.xlu1 %v3823_v60, %s5013_s10 }
 0x6cb   : > { %3540 = vrot.lane.b32.xlu0 %v4027_v55, %s5012_s9  ;;  %v3894_v40 = vpop.permute.xlu2 %3893 }
 0x6cc   : > { %v3699_v63 = vpop.permute.xlu1 %3698 }
 0x6cd   : > { %v3505_v10 = vpop.permute.xlu0 %3504  ;;  %v4216_v31 = vld [vmem:[#allocation5 + $0xa8] sm:$0xff] }
 0x6ce   : > { %3592 = vst.msk [vmem:[#allocation5 + $0x48] sm:$0xff] %vm3582_vm7, %v3505_v10  ;;  %v4203_v54 = vld [vmem:[#allocation5 + $0x40] sm:$0xff]  ;;  %4941 = vmatmul.msk.f32.gmra.mxu2 %vm4236_vm11, %v4216_v31 }
 0x6cf   : > { %3786 = vst.msk [vmem:[#allocation5 + $0x48] sm:$0xff] %vm3776_vm8, %v3699_v63  ;;  %4928 = vmatmul.msk.f32.gmra.mxu1 %vm4236_vm11, %v4203_v54 }
 0x6d1   : > { %4120 = vrot.lane.b32.xlu2 %v4029_v11, %s5015_s14 }
 0x6d2   : > { %3927 = vrot.lane.b32.xlu1 %v3836_v38, %s5013_s10 }
 0x6d3   : > { %4094 = vrot.lane.b32.xlu0 %v4016_v0, %s5015_s14  ;;  %v3920_v52 = vpop.permute.xlu2 %3919 }
 0x6d4   : > { %v3725_v49 = vpop.permute.xlu1 %3724 }
 0x6d5   : > { %3799 = vst.msk [vmem:[#allocation5 + $0xb0] sm:$0xff] %vm3776_vm8, %v3725_v49  ;;  %v3892_v14 = vpop.permute.xlu0 %3891 }
 0x6d6   : > { %3979 = vst.msk [vmem:[#allocation5 + $0x48] sm:$0xff] %vm3969_vm9, %v3892_v14 }
 0x6d7   : > { %4172 = vst.msk [vmem:[#allocation5 + $0x48] sm:$0xff] %vm4162_vm10, %v4085_v2 }
 0x6d9   : > { %3542 = vrot.lane.b32.xlu2 %v4028_v3, %s5012_s9 }
 0x6da   : > { %3710 = vrot.lane.b32.xlu1 %v3631_v56, %s5014_s11 }
 0x6db   : > { %3516 = vrot.lane.b32.xlu0 %v4015_v1, %s5012_s9  ;;  %v3703_v29 = vpop.permute.xlu2 %3702 }
 0x6dc   : > { %v4111_v62 = vpop.permute.xlu1 %4110 }
 0x6dd   : > { %v3918_v43 = vpop.permute.xlu0 %3917 }
 0x6de   : > { %3992 = vst.msk [vmem:[#allocation5 + $0xb0] sm:$0xff] %vm3969_vm9, %v3918_v43  ;;  %v4204_v5 = vld [vmem:[#allocation5 + $0x48] sm:$0xff] }
 0x6df   : > { %4185 = vst.msk [vmem:[#allocation5 + $0xb0] sm:$0xff] %vm4162_vm10, %v4111_v62  ;;  %4929 = vmatmul.msk.f32.gmra.mxu1 %vm4236_vm11, %v4204_v5 }
 0x6e1   : > { %4096 = vrot.lane.b32.xlu2 %v4017_v61, %s5015_s14 }
 0x6e2   : > { %3736 = vrot.lane.b32.xlu1 %v3644_v28, %s5014_s11 }
 0x6e3   : > { %3903 = vrot.lane.b32.xlu0 %v3824_v46, %s5013_s10  ;;  %v3729_v7 = vpop.permute.xlu2 %3728 }
 0x6e4   : > { %v3533_v47 = vpop.permute.xlu1 %3532 }
 0x6e5   : > { %3606 = vst.msk [vmem:[#allocation5 + $0xb8] sm:$0xff] %vm3582_vm7, %v3533_v47  ;;  %v3701_v15 = vpop.permute.xlu0 %3700 }
 0x6e6   : > { %3787 = vst.msk [vmem:[#allocation5 + $0x50] sm:$0xff] %vm3776_vm8, %v3701_v15  ;;  %v4217_v37 = vld [vmem:[#allocation5 + $0xb0] sm:$0xff] }
 0x6e7   : > { %3980 = vst.msk [vmem:[#allocation5 + $0x50] sm:$0xff] %vm3969_vm9, %v3894_v40  ;;  %4942 = vmatmul.msk.f32.gmra.mxu2 %vm4236_vm11, %v4217_v37  ;;  %v7637_v37 = vpop.f32.mrf.mxu1 }
 0x6e9   : > { %3544 = vrot.lane.b32.xlu2 %v4029_v11, %s5012_s9 }
 0x6ea   : > { %4122 = vrot.lane.b32.xlu1 %v4030_v36, %s5015_s14 }
 0x6eb   : > { %3929 = vrot.lane.b32.xlu0 %v3837_v25, %s5013_s10  ;;  %v4115_v23 = vpop.permute.xlu2 %4114 }
 0x6ec   : > { %v4087_v18 = vpop.permute.xlu1 %4086 }
 0x6ed   : > { %4173 = vst.msk [vmem:[#allocation5 + $0x50] sm:$0xff] %vm4162_vm10, %v4087_v18  ;;  %v3727_v44 = vpop.permute.xlu0 %3726 }
 0x6ee   : > { %3800 = vst.msk [vmem:[#allocation5 + $0xb8] sm:$0xff] %vm3776_vm8, %v3727_v44 }
 0x6ef   : > { %3993 = vst.msk [vmem:[#allocation5 + $0xb8] sm:$0xff] %vm3969_vm9, %v3920_v52 }
 0x6f1   : > { %4124 = vrot.lane.b32.xlu2 %v4031_v39, %s5015_s14 }
 0x6f2   : > { %3931 = vrot.lane.b32.xlu1 %v3838_v53, %s5013_s10 }
 0x6f3   : > { %3738 = vrot.lane.b32.xlu0 %v3645_v35, %s5014_s11  ;;  %v3537_v51 = vpop.permute.xlu2 %3536 }
 0x6f4   : > { %v3509_v19 = vpop.permute.xlu1 %3508  ;;  %3608 = vst.msk [vmem:[#allocation5 + $0xc8] sm:$0xff] %vm3582_vm7, %v3537_v51  ;;  %v4205_v17 = vld [vmem:[#allocation5 + $0x50] sm:$0xff] }
 0x6f5   : > { %3594 = vst.msk [vmem:[#allocation5 + $0x58] sm:$0xff] %vm3582_vm7, %v3509_v19  ;;  %v4113_v32 = vpop.permute.xlu0 %4112  ;;  %4930 = vmatmul.msk.f32.gmra.mxu1 %vm4236_vm11, %v4205_v17 }
 0x6f6   : > { %3788 = vst.msk [vmem:[#allocation5 + $0x58] sm:$0xff] %vm3776_vm8, %v3703_v29 }
 0x6f7   : > { %4186 = vst.msk [vmem:[#allocation5 + $0xb8] sm:$0xff] %vm4162_vm10, %v4113_v32 }
 0x6f9   : > { %3933 = vrot.lane.b32.xlu2 %v3839_v26, %s5013_s10 }
 0x6fa   : > { %3740 = vrot.lane.b32.xlu1 %v3646_v22, %s5014_s11 }
 0x6fb   : > { %3546 = vrot.lane.b32.xlu0 %v4030_v36, %s5012_s9  ;;  %v4091_v24 = vpop.permute.xlu2 %4090 }
 0x6fc   : > { %v3896_v13 = vpop.permute.xlu1 %3895 }
 0x6fd   : > { %3981 = vst.msk [vmem:[#allocation5 + $0x58] sm:$0xff] %vm3969_vm9, %v3896_v13  ;;  %v3535_v55 = vpop.permute.xlu0 %3534 }
 0x6fe   : > { %3607 = vst.msk [vmem:[#allocation5 + $0xc0] sm:$0xff] %vm3582_vm7, %v3535_v55  ;;  %v4218_v9 = vld [vmem:[#allocation5 + $0xb8] sm:$0xff] }
 0x6ff   : > { %3801 = vst.msk [vmem:[#allocation5 + $0xc0] sm:$0xff] %vm3776_vm8, %v3729_v7  ;;  %4943 = vmatmul.msk.f32.gmra.mxu2 %vm4236_vm11, %v4218_v9 }
 0x701   : > { %3742 = vrot.lane.b32.xlu2 %v3647_v21, %s5014_s11 }
 0x702   : > { %3548 = vrot.lane.b32.xlu1 %v4031_v39, %s5012_s9  ;;  %v7645_v39 = vpop.f32.mrf.mxu1  ;;  %s7962_s9 = scalar_lea.vmem %s8129_s3, %s4954_s15 }
 0x703   : > { %4126 = vrot.lane.b32.xlu0 %v4032_v58, %s5015_s14  ;;  %v3513_v8 = vpop.permute.xlu2 %3512 }
 0x704   : > { %v3922_v48 = vpop.permute.xlu1 %3921  ;;  %3596 = vst.msk [vmem:[#allocation5 + $0x68] sm:$0xff] %vm3582_vm7, %v3513_v8 }
 0x705   : > { %3994 = vst.msk [vmem:[#allocation5 + $0xc0] sm:$0xff] %vm3969_vm9, %v3922_v48  ;;  %v4089_v45 = vpop.permute.xlu0 %4088  ;;  %v7667_v48 = vpop.f32.mrf.mxu2 }
 0x706   : > { %4187 = vst.msk [vmem:[#allocation5 + $0xc0] sm:$0xff] %vm4162_vm10, %v4115_v23 }
 0x707   : > { %4174 = vst.msk [vmem:[#allocation5 + $0x58] sm:$0xff] %vm4162_vm10, %v4089_v45 }
 0x70a   : > { %4128 = vrot.lane.b32.xlu1 %v4033_v20, %s5015_s14  ;;  %v7652_v17 = vpop.f32.mrf.mxu1 }
 0x70b   : > { %3935 = vrot.lane.b32.xlu0 %v3840_v41, %s5013_s10  ;;  %v3900_v57 = vpop.permute.xlu2 %3899 }
 0x70c   : > { %v3705_v30 = vpop.permute.xlu1 %3704 }
 0x70d   : > { %v3511_v42 = vpop.permute.xlu0 %3510  ;;  %v4219_v1 = vld [vmem:[#allocation5 + $0xc0] sm:$0xff]  ;;  %v7671_v20 = vpop.f32.mrf.mxu2 }
 0x70e   : > { %3595 = vst.msk [vmem:[#allocation5 + $0x60] sm:$0xff] %vm3582_vm7, %v3511_v42  ;;  %v4206_v12 = vld [vmem:[#allocation5 + $0x58] sm:$0xff]  ;;  %4944 = vmatmul.msk.f32.gmra.mxu2 %vm4236_vm11, %v4219_v1 }
 0x70f   : > { %3789 = vst.msk [vmem:[#allocation5 + $0x60] sm:$0xff] %vm3776_vm8, %v3705_v30  ;;  %4931 = vmatmul.msk.f32.gmra.mxu1 %vm4236_vm11, %v4206_v12 }
 0x713   : > { %v3926_v2 = vpop.permute.xlu2 %3925 }
 0x714   : > { %v3731_v59 = vpop.permute.xlu1 %3730 }
 0x715   : > { %3802 = vst.msk [vmem:[#allocation5 + $0xc8] sm:$0xff] %vm3776_vm8, %v3731_v59  ;;  %v3898_v33 = vpop.permute.xlu0 %3897 }
 0x716   : > { %3982 = vst.msk [vmem:[#allocation5 + $0x60] sm:$0xff] %vm3969_vm9, %v3898_v33 }
 0x717   : > { %4175 = vst.msk [vmem:[#allocation5 + $0x60] sm:$0xff] %vm4162_vm10, %v4091_v24  ;;  %v7657_v24 = vpop.f32.mrf.mxu1 }
 0x71b   : > { %v3709_v16 = vpop.permute.xlu2 %3708 }
 0x71c   : > { %v4117_v50 = vpop.permute.xlu1 %4116 }
 0x71d   : > { %v3924_v3 = vpop.permute.xlu0 %3923 }
 0x71e   : > { %3995 = vst.msk [vmem:[#allocation5 + $0xc8] sm:$0xff] %vm3969_vm9, %v3924_v3  ;;  %v4207_v27 = vld [vmem:[#allocation5 + $0x60] sm:$0xff]  ;;  %v4447_v3 = vsel %vm2152_vm12, %v7645_v39, 0.0 }
 0x71f   : > { %4188 = vst.msk [vmem:[#allocation5 + $0xc8] sm:$0xff] %vm4162_vm10, %v4117_v50  ;;  %4932 = vmatmul.msk.f32.gmra.mxu1 %vm4236_vm11, %v4207_v27  ;;  %v7662_v58 = vpop.f32.mrf.mxu1  ;;  %v4516_v50 = vmul.f32 %v7637_v37, %v7637_v37  ;;  %v4518_v27 = vmul.f32 %v7652_v17, %v7652_v17 }
 0x723   : > { %v3735_v4 = vpop.permute.xlu2 %3734 }
 0x724   : > { %v3539_v6 = vpop.permute.xlu1 %3538 }
 0x725   : > { %3609 = vst.msk [vmem:[#allocation5 + $0xd0] sm:$0xff] %vm3582_vm7, %v3539_v6  ;;  %v3707_v34 = vpop.permute.xlu0 %3706  ;;  %v4446_v6 = vsel %vm2152_vm12, %v7637_v37, 0.0 }
 0x726   : > { %3790 = vst.msk [vmem:[#allocation5 + $0x68] sm:$0xff] %vm3776_vm8, %v3707_v34  ;;  %v4220_v60 = vld [vmem:[#allocation5 + $0xc8] sm:$0xff] }
 0x727   : > { %3983 = vst.msk [vmem:[#allocation5 + $0x68] sm:$0xff] %vm3969_vm9, %v3900_v57  ;;  %4945 = vmatmul.msk.f32.gmra.mxu2 %vm4236_vm11, %v4220_v60  ;;  %v7665_v8 = vpop.f32.mrf.mxu1  ;;  %v7675_v57 = vpop.f32.mrf.mxu2  ;;  %v4449_v60 = vsel %vm2152_vm12, %v7652_v17, 0.0 }
 0x72b   : > { %v4121_v40 = vpop.permute.xlu2 %4120 }
 0x72c   : > { %v4093_v63 = vpop.permute.xlu1 %4092 }
 0x72d   : > { %4176 = vst.msk [vmem:[#allocation5 + $0x68] sm:$0xff] %vm4162_vm10, %v4093_v63  ;;  %v3733_v10 = vpop.permute.xlu0 %3732  ;;  %v4448_v63 = vadd.f32 %v4447_v3, %v4446_v6 }
 0x72e   : > { %3803 = vst.msk [vmem:[#allocation5 + $0xd0] sm:$0xff] %vm3776_vm8, %v3733_v10  ;;  %v4548_v10 = vsel %vm2152_vm12, %v4516_v50, 0.0 }
 0x72f   : > { %3996 = vst.msk [vmem:[#allocation5 + $0xd0] sm:$0xff] %vm3969_vm9, %v3926_v2  ;;  %v7669_v45 = vpop.f32.mrf.mxu1  ;;  %v7679_v42 = vpop.f32.mrf.mxu2 }
 0x733   : > { %v3543_v31 = vpop.permute.xlu2 %3542 }
 0x734   : > { %v3515_v54 = vpop.permute.xlu1 %3514  ;;  %3611 = vst.msk [vmem:[#allocation5 + $0xe0] sm:$0xff] %vm3582_vm7, %v3543_v31  ;;  %v4208_v11 = vld [vmem:[#allocation5 + $0x68] sm:$0xff]  ;;  %v4551_v31 = vsel %vm2152_vm12, %v4518_v27, 0.0 }
 0x735   : > { %3597 = vst.msk [vmem:[#allocation5 + $0x70] sm:$0xff] %vm3582_vm7, %v3515_v54  ;;  %v4119_v38 = vpop.permute.xlu0 %4118  ;;  %4933 = vmatmul.msk.f32.gmra.mxu1 %vm4236_vm11, %v4208_v11  ;;  %v4451_v54 = vsel %vm2152_vm12, %v7657_v24, 0.0  ;;  %v4520_v11 = vmul.f32 %v7662_v58, %v7662_v58 }
 0x736   : > { %3791 = vst.msk [vmem:[#allocation5 + $0x70] sm:$0xff] %vm3776_vm8, %v3709_v16  ;;  %v4517_v16 = vmul.f32 %v7645_v39, %v7645_v39 }
 0x737   : > { %4189 = vst.msk [vmem:[#allocation5 + $0xd0] sm:$0xff] %vm4162_vm10, %v4119_v38  ;;  %v7673_v41 = vpop.f32.mrf.mxu1 }
 0x738   : > { %v4549_v34 = vsel %vm2152_vm12, %v4517_v16, 0.0 }
 0x739   : > { %v4550_v38 = vadd.f32 %v4549_v34, %v4548_v10 }
 0x73b   : > { %v4097_v0 = vpop.permute.xlu2 %4096 }
 0x73c   : > { %v3902_v52 = vpop.permute.xlu1 %3901 }
 0x73d   : > { %3984 = vst.msk [vmem:[#allocation5 + $0x70] sm:$0xff] %vm3969_vm9, %v3902_v52  ;;  %v3541_v49 = vpop.permute.xlu0 %3540 }
 0x73e   : > { %3610 = vst.msk [vmem:[#allocation5 + $0xd8] sm:$0xff] %vm3582_vm7, %v3541_v49  ;;  %v4221_v14 = vld [vmem:[#allocation5 + $0xd0] sm:$0xff] }
 0x73f   : > { %3804 = vst.msk [vmem:[#allocation5 + $0xd8] sm:$0xff] %vm3776_vm8, %v3735_v4  ;;  %4946 = vmatmul.msk.f32.gmra.mxu2 %vm4236_vm11, %v4221_v14  ;;  %v4453_v14 = vsel %vm2152_vm12, %v7662_v58, 0.0 }
 0x742   : > { %v7683_v12 = vpop.f32.mrf.mxu2 }
 0x743   : > { %v3545_v56 = vpop.permute.xlu2 %3544 }
 0x744   : > { %v3928_v29 = vpop.permute.xlu1 %3927  ;;  %3612 = vst.msk [vmem:[#allocation5 + $0xe8] sm:$0xff] %vm3582_vm7, %v3545_v56  ;;  %v4521_v56 = vmul.f32 %v7665_v8, %v7665_v8 }
 0x745   : > { %3997 = vst.msk [vmem:[#allocation5 + $0xd8] sm:$0xff] %vm3969_vm9, %v3928_v29  ;;  %v4095_v62 = vpop.permute.xlu0 %4094  ;;  %v4552_v29 = vadd.f32 %v4551_v31, %v4550_v38 }
 0x746   : > { %4190 = vst.msk [vmem:[#allocation5 + $0xd8] sm:$0xff] %vm4162_vm10, %v4121_v40  ;;  %v4519_v40 = vmul.f32 %v7657_v24, %v7657_v24 }
 0x747   : > { %4177 = vst.msk [vmem:[#allocation5 + $0x70] sm:$0xff] %vm4162_vm10, %v4095_v62 }
 0x748   : > { %v4553_v49 = vsel %vm2152_vm12, %v4519_v40, 0.0 }
 0x74b   : > { %v4125_v25 = vpop.permute.xlu2 %4124 }
 0x74c   : > { %v3711_v43 = vpop.permute.xlu1 %3710  ;;  %v7677_v30 = vpop.f32.mrf.mxu1 }
 0x74d   : > { %v3517_v5 = vpop.permute.xlu0 %3516  ;;  %v4222_v61 = vld [vmem:[#allocation5 + $0xd8] sm:$0xff] }
 0x74e   : > { %3598 = vst.msk [vmem:[#allocation5 + $0x78] sm:$0xff] %vm3582_vm7, %v3517_v5  ;;  %v4209_v28 = vld [vmem:[#allocation5 + $0x70] sm:$0xff]  ;;  %4947 = vmatmul.msk.f32.gmra.mxu2 %vm4236_vm11, %v4222_v61  ;;  %v4455_v5 = vsel %vm2152_vm12, %v7665_v8, 0.0  ;;  %v4522_v61 = vmul.f32 %v7669_v45, %v7669_v45 }
 0x74f   : > { %3792 = vst.msk [vmem:[#allocation5 + $0x78] sm:$0xff] %vm3776_vm8, %v3711_v43  ;;  %4934 = vmatmul.msk.f32.gmra.mxu1 %vm4236_vm11, %v4209_v28  ;;  %v4555_v43 = vsel %vm2152_vm12, %v4520_v11, 0.0 }
 0x751   : > { %v7687_v59 = vpop.f32.mrf.mxu2 }
 0x753   : > { %v3934_v53 = vpop.permute.xlu2 %3933 }
 0x754   : > { %v3737_v46 = vpop.permute.xlu1 %3736 }
 0x755   : > { %3805 = vst.msk [vmem:[#allocation5 + $0xe0] sm:$0xff] %vm3776_vm8, %v3737_v46  ;;  %v3904_v7 = vpop.permute.xlu0 %3903  ;;  %v4554_v46 = vadd.f32 %v4553_v49, %v4552_v29 }
 0x756   : > { %3985 = vst.msk [vmem:[#allocation5 + $0x78] sm:$0xff] %vm3969_vm9, %v3904_v7 }
 0x757   : > { %4178 = vst.msk [vmem:[#allocation5 + $0x78] sm:$0xff] %vm4162_vm10, %v4097_v0  ;;  %v4450_v0 = vadd.f32 %v4449_v60, %v4448_v63 }
 0x759   : > { %v4452_v62 = vadd.f32 %v4451_v54, %v4450_v0 }
 0x75b   : > { %v3743_v22 = vpop.permute.xlu2 %3742  ;;  %v4454_v7 = vadd.f32 %v4453_v14, %v4452_v62 }
 0x75c   : > { %v4123_v47 = vpop.permute.xlu1 %4122  ;;  %v7681_v1 = vpop.f32.mrf.mxu1 }
 0x75d   : > { %v3930_v15 = vpop.permute.xlu0 %3929 }
 0x75e   : > { %3998 = vst.msk [vmem:[#allocation5 + $0xe0] sm:$0xff] %vm3969_vm9, %v3930_v15  ;;  %v4210_v36 = vld [vmem:[#allocation5 + $0x78] sm:$0xff]  ;;  %v4457_v15 = vsel %vm2152_vm12, %v7669_v45, 0.0 }
 0x75f   : > { %4191 = vst.msk [vmem:[#allocation5 + $0xe0] sm:$0xff] %vm4162_vm10, %v4123_v47  ;;  %4935 = vmatmul.msk.f32.gmra.mxu1 %vm4236_vm11, %v4210_v36  ;;  %v4557_v47 = vsel %vm2152_vm12, %v4521_v56, 0.0  ;;  %v4523_v36 = vmul.f32 %v7673_v41, %v7673_v41 }
 0x764   : > { %v3932_v23 = vpop.permute.xlu1 %3931 }
 0x765   : > { %v3739_v18 = vpop.permute.xlu0 %3738 }
 0x766   : > { %3806 = vst.msk [vmem:[#allocation5 + $0xe8] sm:$0xff] %vm3776_vm8, %v3739_v18  ;;  %v4223_v44 = vld [vmem:[#allocation5 + $0xe0] sm:$0xff]  ;;  %v4559_v18 = vsel %vm2152_vm12, %v4522_v61, 0.0 }
 0x767   : > { %3999 = vst.msk [vmem:[#allocation5 + $0xe8] sm:$0xff] %vm3969_vm9, %v3932_v23  ;;  %4948 = vmatmul.msk.f32.gmra.mxu2 %vm4236_vm11, %v4223_v44  ;;  %v4456_v23 = vadd.f32 %v4455_v5, %v4454_v7  ;;  %v4459_v44 = vsel %vm2152_vm12, %v7673_v41, 0.0 }
 0x768   : > { %4192 = vst.msk [vmem:[#allocation5 + $0xe8] sm:$0xff] %vm4162_vm10, %v4125_v25  ;;  %v4556_v25 = vadd.f32 %v4555_v43, %v4554_v46 }
 0x76a   : > { %v7699_v4 = vpop.f32.mrf.mxu2 }
 0x76c   : > { %v3741_v35 = vpop.permute.xlu1 %3740 }
 0x76d   : > { %v3547_v51 = vpop.permute.xlu0 %3546 }
 0x76e   : > { %3613 = vst.msk [vmem:[#allocation5 + $0xf0] sm:$0xff] %vm3582_vm7, %v3547_v51  ;;  %v4458_v51 = vadd.f32 %v4457_v15, %v4456_v23 }
 0x76f   : > { %3807 = vst.msk [vmem:[#allocation5 + $0xf0] sm:$0xff] %vm3776_vm8, %v3741_v35  ;;  %v4224_v19 = vld [vmem:[#allocation5 + $0xe8] sm:$0xff]  ;;  %v4558_v35 = vadd.f32 %v4557_v47, %v4556_v25 }
 0x770   : > { %4949 = vmatmul.msk.f32.gmra.mxu2 %vm4236_vm11, %v4224_v19  ;;  %4000 = vst.msk [vmem:[#allocation5 + $0xf0] sm:$0xff] %vm3969_vm9, %v3934_v53  ;;  %v4524_v53 = vmul.f32 %v7677_v30, %v7677_v30 }
 0x772   : > { %v7685_v2 = vpop.f32.mrf.mxu1 }
 0x773   : > { %v4526_v16 = vmul.f32 %v7685_v2, %v7685_v2  ;;  %v4465_v34 = vsel %vm2152_vm12, %v7685_v2, 0.0 }
 0x774   : > { %v3549_v32 = vpop.permute.xlu1 %3548 }
 0x775   : > { %3614 = vst.msk [vmem:[#allocation5 + $0xf8] sm:$0xff] %vm3582_vm7, %v3549_v32  ;;  %v4127_v26 = vpop.permute.xlu0 %4126  ;;  %v4561_v32 = vsel %vm2152_vm12, %v4523_v36, 0.0  ;;  %v4567_v10 = vsel %vm2152_vm12, %v4526_v16, 0.0 }
 0x776   : > { %4193 = vst.msk [vmem:[#allocation5 + $0xf0] sm:$0xff] %vm4162_vm10, %v4127_v26  ;;  %v4525_v26 = vmul.f32 %v7681_v1, %v7681_v1 }
 0x777   : > { %3808 = vst.msk [vmem:[#allocation5 + $0xf8] sm:$0xff] %vm3776_vm8, %v3743_v22  ;;  %v4461_v22 = vsel %vm2152_vm12, %v7677_v30, 0.0 }
 0x778   : > { %v4565_v6 = vsel %vm2152_vm12, %v4525_v26, 0.0 }
 0x77c   : > { %v4129_v13 = vpop.permute.xlu1 %4128 }
 0x77d   : > { %v3936_v55 = vpop.permute.xlu0 %3935  ;;  %v4225_v9 = vld [vmem:[#allocation5 + $0xf0] sm:$0xff] }
 0x77e   : > { %4001 = vst.msk [vmem:[#allocation5 + $0xf8] sm:$0xff] %vm3969_vm9, %v3936_v55  ;;  %4950 = vmatmul.msk.f32.gmra.mxu2 %vm4236_vm11, %v4225_v9  ;;  %v4460_v55 = vadd.f32 %v4459_v44, %v4458_v51  ;;  %v4563_v9 = vsel %vm2152_vm12, %v4524_v53, 0.0  ;;  %v4532_v51 = vmul.f32 %v7667_v48, %v7667_v48 }
 0x77f   : > { %4194 = vst.msk [vmem:[#allocation5 + $0xf8] sm:$0xff] %vm4162_vm10, %v4129_v13  ;;  %v4560_v13 = vadd.f32 %v4559_v18, %v4558_v35 }
 0x780   : > { %v4462_v27 = vadd.f32 %v4461_v22, %v4460_v55  ;;  %v4477_v55 = vsel %vm2152_vm12, %v7667_v48, 0.0 }
 0x781   : > { %v4562_v3 = vadd.f32 %v4561_v32, %v4560_v13 }
 0x782   : > { %v7726_v28 = vpop.f32.mrf.mxu2 }
 0x783   : > { %v4564_v40 = vadd.f32 %v4563_v9, %v4562_v3  ;;  %v4533_v9 = vmul.f32 %v7671_v20, %v7671_v20 }
 0x785   : > { %v4566_v11 = vadd.f32 %v4565_v6, %v4564_v40  ;;  %v4579_v6 = vsel %vm2152_vm12, %v4532_v51, 0.0  ;;  %v4489_v51 = vsel %vm2152_vm12, %v7699_v4, 0.0 }
 0x786   : > { %v4226_v21 = vld [vmem:[#allocation5 + $0xf8] sm:$0xff] }
 0x787   : > { %4951 = vmatmul.msk.f32.gmra.mxu2 %vm4236_vm11, %v4226_v21  ;;  %v4463_v21 = vsel %vm2152_vm12, %v7681_v1, 0.0  ;;  %v4568_v29 = vadd.f32 %v4567_v10, %v4566_v11  ;;  %v4581_v10 = vsel %vm2152_vm12, %v4533_v9, 0.0  ;;  %v4491_v9 = vsel %vm2152_vm12, %v7726_v28, 0.0 }
 0x788   : > { %v4464_v63 = vadd.f32 %v4463_v21, %v4462_v27 }
 0x78a   : > { %v4466_v38 = vadd.f32 %v4465_v34, %v4464_v63  ;;  %v4479_v34 = vsel %vm2152_vm12, %v7671_v20, 0.0 }
 0x78c   : > { %v7689_v33 = vpop.f32.mrf.mxu1 }
 0x78d   : > { %v4527_v60 = vmul.f32 %v7689_v33, %v7689_v33  ;;  %v4467_v31 = vsel %vm2152_vm12, %v7689_v33, 0.0 }
 0x78e   : > { %v4468_v62 = vadd.f32 %v4467_v31, %v4466_v38  ;;  %v4481_v31 = vsel %vm2152_vm12, %v7675_v57, 0.0 }
 0x78f   : > { %v4569_v49 = vsel %vm2152_vm12, %v4527_v60, 0.0  ;;  %v4534_v60 = vmul.f32 %v7675_v57, %v7675_v57 }
 0x790   : > { %v4570_v7 = vadd.f32 %v4569_v49, %v4568_v29 }
 0x791   : > { %v7750_v50 = vpop.f32.mrf.mxu2  ;;  %v4583_v49 = vsel %vm2152_vm12, %v4534_v60, 0.0 }
 0x792   : > { %v4493_v60 = vsel %vm2152_vm12, %v7750_v50, 0.0 }
 0x79c   : > { %v7714_v52 = vpop.f32.mrf.mxu1 }
 0x79d   : > { %v4528_v54 = vmul.f32 %v7714_v52, %v7714_v52  ;;  %v4469_v14 = vsel %vm2152_vm12, %v7714_v52, 0.0 }
 0x79e   : > { %v4470_v47 = vadd.f32 %v4469_v14, %v4468_v62  ;;  %v4483_v14 = vsel %vm2152_vm12, %v7679_v42, 0.0 }
 0x79f   : > { %v4571_v43 = vsel %vm2152_vm12, %v4528_v54, 0.0  ;;  %v4535_v54 = vmul.f32 %v7679_v42, %v7679_v42 }
 0x7a0   : > { %v4572_v25 = vadd.f32 %v4571_v43, %v4570_v7 }
 0x7a1   : > { %v4585_v43 = vsel %vm2152_vm12, %v4535_v54, 0.0 }
 0x7aa   : > { %v7770_v5 = vpop.f32.mrf.mxu2 }
 0x7ab   : > { %v4495_v54 = vsel %vm2152_vm12, %v7770_v5, 0.0 }
 0x7b2   : > { %v7738_v19 = vpop.f32.mrf.mxu1 }
 0x7b3   : > { %v4529_v56 = vmul.f32 %v7738_v19, %v7738_v19  ;;  %v4471_v61 = vsel %vm2152_vm12, %v7738_v19, 0.0 }
 0x7b4   : > { %v4472_v23 = vadd.f32 %v4471_v61, %v4470_v47  ;;  %v4485_v61 = vsel %vm2152_vm12, %v7683_v12, 0.0 }
 0x7b5   : > { %v4573_v15 = vsel %vm2152_vm12, %v4529_v56, 0.0  ;;  %v4536_v56 = vmul.f32 %v7683_v12, %v7683_v12 }
 0x7b6   : > { %v4574_v44 = vadd.f32 %v4573_v15, %v4572_v25  ;;  %v4487_v25 = vsel %vm2152_vm12, %v7687_v59, 0.0 }
 0x7c2   : > { %v7792_v21 = vpop.f32.mrf.mxu2 }
 0x7cc   : > { %v7762_v0 = vpop.f32.mrf.mxu1 }
 0x7cd   : > { %v4530_v46 = vmul.f32 %v7762_v0, %v7762_v0  ;;  %v4473_v36 = vsel %vm2152_vm12, %v7762_v0, 0.0 }
 0x7ce   : > { %v4474_v53 = vadd.f32 %v4473_v36, %v4472_v23  ;;  %v4587_v36 = vsel %vm2152_vm12, %v4536_v56, 0.0  ;;  %v4538_v23 = vmul.f32 %v7699_v4, %v7699_v4 }
 0x7cf   : > { %v4575_v18 = vsel %vm2152_vm12, %v4530_v46, 0.0  ;;  %v4537_v46 = vmul.f32 %v7687_v59, %v7687_v59 }
 0x7d0   : > { %v4576_v26 = vadd.f32 %v4575_v18, %v4574_v44 }
 0x7d1   : > { %v7815_v7 = vpop.f32.mrf.mxu2 }
 0x7dc   : > { %v7780_v35 = vpop.f32.mrf.mxu1 }
 0x7dd   : > { %v4475_v32 = vsel %vm2152_vm12, %v7780_v35, 0.0  ;;  %v4531_v22 = vmul.f32 %v7780_v35, %v7780_v35 }
 0x7de   : > { %v4476_v13 = vadd.f32 %v4475_v32, %v4474_v53  ;;  %v4589_v53 = vsel %vm2152_vm12, %v4537_v46, 0.0 }
 0x7df   : > { %v4577_v16 = vsel %vm2152_vm12, %v4531_v22, 0.0 }
 0x7e0   : > { %v4478_v3 = vadd.f32 %v4477_v55, %v4476_v13  ;;  %v4578_v27 = vadd.f32 %v4577_v16, %v4576_v26  ;;  %v4591_v26 = vsel %vm2152_vm12, %v4538_v23, 0.0  ;;  %v4539_v13 = vmul.f32 %v7726_v28, %v7726_v28 }
 0x7e2   : > { %v4480_v40 = vadd.f32 %v4479_v34, %v4478_v3  ;;  %v4580_v63 = vadd.f32 %v4579_v6, %v4578_v27  ;;  %v4593_v27 = vsel %vm2152_vm12, %v4539_v13, 0.0  ;;  %v4540_v6 = vmul.f32 %v7750_v50, %v7750_v50 }
 0x7e4   : > { %v4482_v11 = vadd.f32 %v4481_v31, %v4480_v40  ;;  %v4582_v38 = vadd.f32 %v4581_v10, %v4580_v63  ;;  %v4595_v63 = vsel %vm2152_vm12, %v4540_v6, 0.0  ;;  %v4541_v10 = vmul.f32 %v7770_v5, %v7770_v5 }
 0x7e6   : > { %v4484_v29 = vadd.f32 %v4483_v14, %v4482_v11  ;;  %v4584_v62 = vadd.f32 %v4583_v49, %v4582_v38  ;;  %v4597_v38 = vsel %vm2152_vm12, %v4541_v10, 0.0  ;;  %v4542_v49 = vmul.f32 %v7792_v21, %v7792_v21 }
 0x7e8   : > { %v4486_v47 = vadd.f32 %v4485_v61, %v4484_v29  ;;  %v4586_v15 = vadd.f32 %v4585_v43, %v4584_v62  ;;  %v4497_v29 = vsel %vm2152_vm12, %v7792_v21, 0.0  ;;  %v4599_v43 = vsel %vm2152_vm12, %v4542_v49, 0.0 }
 0x7e9   : > { %v4543_v61 = vmul.f32 %v7815_v7, %v7815_v7 }
 0x7ea   : > { %v4488_v18 = vadd.f32 %v4487_v25, %v4486_v47  ;;  %v4588_v44 = vadd.f32 %v4587_v36, %v4586_v15  ;;  %v7830_v16 = vpop.f32.mrf.mxu2  ;;  %v4499_v47 = vsel %vm2152_vm12, %v7815_v7, 0.0 }
 0x7eb   : > { %v4601_v36 = vsel %vm2152_vm12, %v4543_v61, 0.0  ;;  %v4544_v25 = vmul.f32 %v7830_v16, %v7830_v16 }
 0x7ec   : > { %v4590_v32 = vadd.f32 %v4589_v53, %v4588_v44  ;;  %v4490_v22 = vadd.f32 %v4489_v51, %v4488_v18  ;;  %v4501_v44 = vsel %vm2152_vm12, %v7830_v16, 0.0 }
 0x7ed   : > { %v4603_v51 = vsel %vm2152_vm12, %v4544_v25, 0.0 }
 0x7ee   : > { %v4592_v55 = vadd.f32 %v4591_v26, %v4590_v32  ;;  %v4492_v3 = vadd.f32 %v4491_v9, %v4490_v22 }
 0x7f0   : > { %v4594_v34 = vadd.f32 %v4593_v27, %v4592_v55  ;;  %v4494_v40 = vadd.f32 %v4493_v60, %v4492_v3 }
 0x7f2   : > { %v4596_v31 = vadd.f32 %v4595_v63, %v4594_v34  ;;  %v4496_v11 = vadd.f32 %v4495_v54, %v4494_v40 }
 0x7f3   : > { %v7845_v14 = vpop.f32.mrf.mxu2 }
 0x7f4   : > { %v4598_v56 = vadd.f32 %v4597_v38, %v4596_v31  ;;  %v4498_v62 = vadd.f32 %v4497_v29, %v4496_v11  ;;  %v4545_v32 = vmul.f32 %v7845_v14, %v7845_v14  ;;  %v4503_v13 = vsel %vm2152_vm12, %v7845_v14, 0.0 }
 0x7f6   : > { %v4600_v46 = vadd.f32 %v4599_v43, %v4598_v56  ;;  %v4500_v15 = vadd.f32 %v4499_v47, %v4498_v62  ;;  %v4605_v3 = vsel %vm2152_vm12, %v4545_v32, 0.0 }
 0x7f8   : > { %v4602_v18 = vadd.f32 %v4601_v36, %v4600_v46  ;;  %v4502_v53 = vadd.f32 %v4501_v44, %v4500_v15 }
 0x7fa   : > { %v4604_v26 = vadd.f32 %v4603_v51, %v4602_v18  ;;  %v4504_v9 = vadd.f32 %v4503_v13, %v4502_v53 }
 0x7fc   : > { %v4606_v6 = vadd.f32 %v4605_v3, %v4604_v26 }
 0x801   : > { %v7857_v23 = vpop.f32.mrf.mxu2 }
 0x802   : > { %v4546_v22 = vmul.f32 %v7857_v23, %v7857_v23  ;;  %v4505_v55 = vsel %vm2152_vm12, %v7857_v23, 0.0 }
 0x803   : > { %v4506_v34 = vadd.f32 %v4505_v55, %v4504_v9 }
 0x804   : > { %v4607_v27 = vsel %vm2152_vm12, %v4546_v22, 0.0 }
 0x805   : > { %v4608_v10 = vadd.f32 %v4607_v27, %v4606_v6 }
 0x80a   : > { %v7872_v60 = vpop.f32.mrf.mxu2 }
 0x80b   : > { %v4507_v40 = vsel %vm2152_vm12, %v7872_v60, 0.0  ;;  %v4547_v63 = vmul.f32 %v7872_v60, %v7872_v60 }
 0x80c   : > { %v4508_v31 = vadd.f32 %v4507_v40, %v4506_v34 }
 0x80d   : > { %v4609_v54 = vsel %vm2152_vm12, %v4547_v63, 0.0 }
 0x80e   : > { %v4509_v11 = vrot.slane %v4508_v31, 4  ;;  %v4610_v38 = vadd.f32 %v4609_v54, %v4608_v10 }
 0x810   : > { %v4510_v49 = vadd.f32 %v4509_v11, %v4508_v31  ;;  %v4611_v56 = vrot.slane %v4610_v38, 4 }
 0x812   : > { %v4511_v29 = vrot.slane %v4510_v49, 2  ;;  %v4612_v62 = vadd.f32 %v4611_v56, %v4610_v38 }
 0x814   : > { %v4512_v43 = vadd.f32 %v4511_v29, %v4510_v49  ;;  %v4613_v61 = vrot.slane %v4612_v62, 2 }
 0x816   : > { %v4513_v46 = vrot.slane %v4512_v43, 1  ;;  %v4614_v47 = vadd.f32 %v4613_v61, %v4612_v62 }
 0x818   : > { %v4514_v15 = vadd.f32 %v4513_v46, %v4512_v43  ;;  %v4615_v36 = vrot.slane %v4614_v47, 1 }
 0x81a   : > { %v7879_v25 = vmul.f32 0.00390625, %v4514_v15  ;;  %v4616_v18 = vadd.f32 %v4615_v36, %v4614_v47 }
 0x81c   : > { %v4617_v44 = vmul.f32 0.00390625, %v4616_v18  ;;  %v4618_v53 = vmul.f32 %v7879_v25, %v7879_v25  ;;  %v4620_v27 = vsub.f32 %v7637_v37, %v7879_v25  ;;  %v4621_v6 = vsub.f32 %v7645_v39, %v7879_v25 }
 0x81d   : > { %v4622_v34 = vsub.f32 %v7652_v17, %v7879_v25  ;;  %v4623_v40 = vsub.f32 %v7657_v24, %v7879_v25  ;;  %v4624_v63 = vsub.f32 %v7662_v58, %v7879_v25  ;;  %v4625_v10 = vsub.f32 %v7665_v8, %v7879_v25 }
 0x81e   : > { %v4619_v51 = vsub.f32 %v4617_v44, %v4618_v53  ;;  %v4626_v31 = vsub.f32 %v7669_v45, %v7879_v25  ;;  %v4627_v39 = vsub.f32 %v7673_v41, %v7879_v25  ;;  %v4628_v17 = vsub.f32 %v7677_v30, %v7879_v25 }
 0x81f   : > { %v4629_v24 = vsub.f32 %v7681_v1, %v7879_v25  ;;  %v4630_v58 = vsub.f32 %v7685_v2, %v7879_v25  ;;  %v4631_v8 = vsub.f32 %v7689_v33, %v7879_v25  ;;  %v4632_v45 = vsub.f32 %v7714_v52, %v7879_v25 }
 0x820   : > { %v4652_v32 = vadd.f32 1e-05, %v4619_v51  ;;  %v4633_v54 = vsub.f32 %v7738_v19, %v7879_v25  ;;  %v4634_v41 = vsub.f32 %v7762_v0, %v7879_v25  ;;  %v4635_v30 = vsub.f32 %v7780_v35, %v7879_v25 }
 0x821   : > { %v4636_v1 = vsub.f32 %v7667_v48, %v7879_v25  ;;  %v4637_v2 = vsub.f32 %v7671_v20, %v7879_v25  ;;  %v4638_v52 = vsub.f32 %v7675_v57, %v7879_v25  ;;  %v4639_v19 = vsub.f32 %v7679_v42, %v7879_v25 }
 0x822   : > { %4993 = vrsqrt.f32 %v4652_v32  ;;  %vm4659_vm14 = vweird.f32 %v4652_v32  ;;  %v4640_v0 = vsub.f32 %v7683_v12, %v7879_v25  ;;  %v4641_v38 = vsub.f32 %v7687_v59, %v7879_v25 }
 0x823   : > { %v4642_v49 = vsub.f32 %v7699_v4, %v7879_v25  ;;  %v4643_v56 = vsub.f32 %v7726_v28, %v7879_v25  ;;  %v4644_v62 = vsub.f32 %v7750_v50, %v7879_v25  ;;  %v4645_v43 = vsub.f32 %v7770_v5, %v7879_v25 }
 0x824   : > { %v4646_v61 = vsub.f32 %v7792_v21, %v7879_v25  ;;  %v4647_v47 = vsub.f32 %v7815_v7, %v7879_v25  ;;  %v4648_v15 = vsub.f32 %v7830_v16, %v7879_v25  ;;  %v4649_v44 = vsub.f32 %v7845_v14, %v7879_v25 }
 0x825   : > { %v8276_v16 = vsub.f32 %v7857_v23, %v7879_v25  ;;  %v8277_v14 = vsub.f32 %v7872_v60, %v7879_v25 }
 0x828   : > { %v4994_v22 = vpop.eup %4993 }
 0x829   : > { %v4654_v26 = vmul.f32 %v4994_v22, %v4652_v32  ;;  %vm4660_vm13 = vweird.f32 %v4994_v22 }
 0x82a   : > { %vm4661_vm15 = vmor %vm4659_vm14, %vm4660_vm13 }
 0x82b   : > { %v4655_v13 = vmul.f32 %v4994_v22, %v4654_v26 }
 0x82d   : > { %v4656_v55 = vmul.f32 0.5, %v4655_v13 }
 0x82f   : > { %v4657_v9 = vsub.f32 1.5, %v4656_v55 }
 0x831   : > { %v4658_v3 = vmul.f32 %v4994_v22, %v4657_v9 }
 0x833   : > { %v7897_v37 = vsel %vm4661_vm15, %v4994_v22, %v4658_v3 }
 0x834   : > { %v4663_v33 = vmul.f32 %v7897_v37, %v4620_v27  ;;  %v4664_v11 = vmul.f32 %v7897_v37, %v4621_v6  ;;  %v4665_v29 = vmul.f32 %v7897_v37, %v4622_v34  ;;  %v4666_v46 = vmul.f32 %v7897_v37, %v4623_v40 }
 0x835   : > { %v4667_v36 = vmul.f32 %v7897_v37, %v4624_v63  ;;  %v4668_v53 = vmul.f32 %v7897_v37, %v4625_v10  ;;  %v4669_v22 = vmul.f32 %v7897_v37, %v4626_v31  ;;  %v4670_v55 = vmul.f32 %v7897_v37, %v4627_v39 }
 0x836   : > { %v4727_v18 = vmul.f32 0.01, %v4663_v33  ;;  %vm4695_vm0 = vcmp.ge.f32.partialorder %v4663_v33, 0.0  ;;  %v4728_v51 = vmul.f32 0.01, %v4664_v11  ;;  %vm4696_vm1 = vcmp.ge.f32.partialorder %v4664_v11, 0.0 }
 0x837   : > { %v4729_v26 = vmul.f32 0.01, %v4665_v29  ;;  %vm4697_vm2 = vcmp.ge.f32.partialorder %v4665_v29, 0.0  ;;  %v4730_v9 = vmul.f32 0.01, %v4666_v46  ;;  %v4671_v3 = vmul.f32 %v7897_v37, %v4628_v17 }
 0x838   : > { %vm4698_vm3 = vcmp.ge.f32.partialorder %v4666_v46, 0.0  ;;  %v4731_v27 = vmul.f32 0.01, %v4667_v36  ;;  %v4759_v6 = vsel %vm4695_vm0, %v4663_v33, %v4727_v18  ;;  %v4672_v34 = vmul.f32 %v7897_v37, %v4629_v24 }
 0x839   : > { %vm4699_vm4 = vcmp.ge.f32.partialorder %v4667_v36, 0.0  ;;  %v4732_v40 = vmul.f32 0.01, %v4668_v53  ;;  %v4760_v63 = vsel %vm4696_vm1, %v4664_v11, %v4728_v51  ;;  %v4673_v10 = vmul.f32 %v7897_v37, %v4630_v58  ;;  %4791 = vst.msk [vmem:[%s7962_s9] sm:$0xff] %vm2152_vm12, %v4759_v6 }
 0x83a   : > { %vm4700_vm5 = vcmp.ge.f32.partialorder %v4668_v53, 0.0  ;;  %v4733_v31 = vmul.f32 0.01, %v4669_v22  ;;  %v4761_v39 = vsel %vm4697_vm2, %v4665_v29, %v4729_v26  ;;  %v4674_v13 = vmul.f32 %v7897_v37, %v4631_v8  ;;  %4792 = vst.msk [vmem:[%s7962_s9 + $0x8] sm:$0xff] %vm2152_vm12, %v4760_v63 }
 0x83b   : > { %vm4701_vm6 = vcmp.ge.f32.partialorder %v4669_v22, 0.0  ;;  %v4734_v17 = vmul.f32 0.01, %v4670_v55  ;;  %v4762_v32 = vsel %vm4698_vm3, %v4666_v46, %v4730_v9  ;;  %v4675_v24 = vmul.f32 %v7897_v37, %v4632_v45  ;;  %4793 = vst.msk [vmem:[%s7962_s9 + $0x10] sm:$0xff] %vm2152_vm12, %v4761_v39 }
 0x83c   : > { %vm4702_vm7 = vcmp.ge.f32.partialorder %v4670_v55, 0.0  ;;  %v4735_v33 = vmul.f32 0.01, %v4671_v3  ;;  %v4763_v18 = vsel %vm4699_vm4, %v4667_v36, %v4731_v27  ;;  %v4676_v58 = vmul.f32 %v7897_v37, %v4633_v54  ;;  %4794 = vst.msk [vmem:[%s7962_s9 + $0x18] sm:$0xff] %vm2152_vm12, %v4762_v32 }
 0x83d   : > { %vm4703_vm8 = vcmp.ge.f32.partialorder %v4671_v3, 0.0  ;;  %v4736_v11 = vmul.f32 0.01, %v4672_v34  ;;  %v4764_v8 = vsel %vm4700_vm5, %v4668_v53, %v4732_v40  ;;  %v4677_v29 = vmul.f32 %v7897_v37, %v4634_v41  ;;  %4795 = vst.msk [vmem:[%s7962_s9 + $0x20] sm:$0xff] %vm2152_vm12, %v4763_v18 }
 0x83e   : > { %vm4704_vm9 = vcmp.ge.f32.partialorder %v4672_v34, 0.0  ;;  %v4737_v46 = vmul.f32 0.01, %v4673_v10  ;;  %v4765_v45 = vsel %vm4701_vm6, %v4669_v22, %v4733_v31  ;;  %v4678_v54 = vmul.f32 %v7897_v37, %v4635_v30  ;;  %4796 = vst.msk [vmem:[%s7962_s9 + $0x28] sm:$0xff] %vm2152_vm12, %v4764_v8 }
 0x83f   : > { %vm4705_vm10 = vcmp.ge.f32.partialorder %v4673_v10, 0.0  ;;  %v4738_v36 = vmul.f32 0.01, %v4674_v13  ;;  %v4766_v53 = vsel %vm4702_vm7, %v4670_v55, %v4734_v17  ;;  %v4679_v41 = vmul.f32 %v7897_v37, %v4636_v1  ;;  %4797 = vst.msk [vmem:[%s7962_s9 + $0x30] sm:$0xff] %vm2152_vm12, %v4765_v45 }
 0x840   : > { %vm4706_vm11 = vcmp.ge.f32.partialorder %v4674_v13, 0.0  ;;  %v4739_v51 = vmul.f32 0.01, %v4675_v24  ;;  %v4767_v32 = vsel %vm4703_vm8, %v4671_v3, %v4735_v33  ;;  %v4680_v35 = vmul.f32 %v7897_v37, %v4637_v2  ;;  %4798 = vst.msk [vmem:[%s7962_s9 + $0x38] sm:$0xff] %vm2152_vm12, %v4766_v53 }
 0x841   : > { %vm4707_vm13 = vcmp.ge.f32.partialorder %v4675_v24, 0.0  ;;  %v4740_v30 = vmul.f32 0.01, %v4676_v58  ;;  %v4768_v22 = vsel %vm4704_vm9, %v4672_v34, %v4736_v11  ;;  %v4681_v48 = vmul.f32 %v7897_v37, %v4638_v52  ;;  %4799 = vst.msk [vmem:[%s7962_s9 + $0x40] sm:$0xff] %vm2152_vm12, %v4767_v32 }
 0x842   : > { %vm4708_vm14 = vcmp.ge.f32.partialorder %v4676_v58, 0.0  ;;  %v4741_v1 = vmul.f32 0.01, %v4677_v29  ;;  %v4769_v26 = vsel %vm4705_vm10, %v4673_v10, %v4737_v46  ;;  %v4682_v20 = vmul.f32 %v7897_v37, %v4639_v19  ;;  %4800 = vst.msk [vmem:[%s7962_s9 + $0x48] sm:$0xff] %vm2152_vm12, %v4768_v22 }
 0x843   : > { %vm4709_vm15 = vcmp.ge.f32.partialorder %v4677_v29, 0.0  ;;  %v4742_v2 = vmul.f32 0.01, %v4678_v54  ;;  %v4770_v55 = vsel %vm4706_vm11, %v4674_v13, %v4738_v36  ;;  %v4683_v57 = vmul.f32 %v7897_v37, %v4640_v0  ;;  %4801 = vst.msk [vmem:[%s7962_s9 + $0x50] sm:$0xff] %vm2152_vm12, %v4769_v26 }
 0x844   : > { %vm4710_vm0 = vcmp.ge.f32.partialorder %v4678_v54, 0.0  ;;  %v4743_v52 = vmul.f32 0.01, %v4679_v41  ;;  %v4771_v9 = vsel %vm4707_vm13, %v4675_v24, %v4739_v51  ;;  %v4684_v42 = vmul.f32 %v7897_v37, %v4641_v38  ;;  %4802 = vst.msk [vmem:[%s7962_s9 + $0x58] sm:$0xff] %vm2152_vm12, %v4770_v55 }
 0x845   : > { %vm4711_vm1 = vcmp.ge.f32.partialorder %v4679_v41, 0.0  ;;  %v4744_v19 = vmul.f32 0.01, %v4680_v35  ;;  %v4772_v13 = vsel %vm4708_vm14, %v4676_v58, %v4740_v30  ;;  %v4685_v12 = vmul.f32 %v7897_v37, %v4642_v49  ;;  %4803 = vst.msk [vmem:[%s7962_s9 + $0x60] sm:$0xff] %vm2152_vm12, %v4771_v9 }
 0x846   : > { %vm4712_vm2 = vcmp.ge.f32.partialorder %v4680_v35, 0.0  ;;  %v4745_v0 = vmul.f32 0.01, %v4681_v48  ;;  %v4773_v3 = vsel %vm4709_vm15, %v4677_v29, %v4741_v1  ;;  %v4686_v59 = vmul.f32 %v7897_v37, %v4643_v56  ;;  %4804 = vst.msk [vmem:[%s7962_s9 + $0x68] sm:$0xff] %vm2152_vm12, %v4772_v13 }
 0x847   : > { %vm4713_vm3 = vcmp.ge.f32.partialorder %v4681_v48, 0.0  ;;  %v4746_v38 = vmul.f32 0.01, %v4682_v20  ;;  %v4774_v27 = vsel %vm4710_vm0, %v4678_v54, %v4742_v2  ;;  %v4687_v4 = vmul.f32 %v7897_v37, %v4644_v62  ;;  %4805 = vst.msk [vmem:[%s7962_s9 + $0x70] sm:$0xff] %vm2152_vm12, %v4773_v3 }
 0x848   : > { %vm4714_vm4 = vcmp.ge.f32.partialorder %v4682_v20, 0.0  ;;  %v4747_v49 = vmul.f32 0.01, %v4683_v57  ;;  %v4775_v6 = vsel %vm4711_vm1, %v4679_v41, %v4743_v52  ;;  %v4688_v28 = vmul.f32 %v7897_v37, %v4645_v43  ;;  %4806 = vst.msk [vmem:[%s7962_s9 + $0x78] sm:$0xff] %vm2152_vm12, %v4774_v27 }
 0x849   : > { %vm4715_vm5 = vcmp.ge.f32.partialorder %v4683_v57, 0.0  ;;  %v4748_v56 = vmul.f32 0.01, %v4684_v42  ;;  %v4776_v34 = vsel %vm4712_vm2, %v4680_v35, %v4744_v19  ;;  %v4689_v50 = vmul.f32 %v7897_v37, %v4646_v61  ;;  %4807 = vst.msk [vmem:[%s7962_s9 + $0x80] sm:$0xff] %vm2152_vm12, %v4775_v6 }
 0x84a   : > { %vm4716_vm6 = vcmp.ge.f32.partialorder %v4684_v42, 0.0  ;;  %v4749_v62 = vmul.f32 0.01, %v4685_v12  ;;  %v4777_v40 = vsel %vm4713_vm3, %v4681_v48, %v4745_v0  ;;  %v4690_v5 = vmul.f32 %v7897_v37, %v4647_v47  ;;  %4808 = vst.msk [vmem:[%s7962_s9 + $0x88] sm:$0xff] %vm2152_vm12, %v4776_v34 }
 0x84b   : > { %vm4717_vm7 = vcmp.ge.f32.partialorder %v4685_v12, 0.0  ;;  %v4750_v43 = vmul.f32 0.01, %v4686_v59  ;;  %v4778_v63 = vsel %vm4714_vm4, %v4682_v20, %v4746_v38  ;;  %v4691_v21 = vmul.f32 %v7897_v37, %v4648_v15  ;;  %4809 = vst.msk [vmem:[%s7962_s9 + $0x90] sm:$0xff] %vm2152_vm12, %v4777_v40 }
 0x84c   : > { %vm4718_vm8 = vcmp.ge.f32.partialorder %v4686_v59, 0.0  ;;  %v4751_v61 = vmul.f32 0.01, %v4687_v4  ;;  %v4779_v10 = vsel %vm4715_vm5, %v4683_v57, %v4747_v49  ;;  %v4692_v7 = vmul.f32 %v7897_v37, %v4649_v44  ;;  %4810 = vst.msk [vmem:[%s7962_s9 + $0x98] sm:$0xff] %vm2152_vm12, %v4778_v63 }
 0x84d   : > { %vm4719_vm9 = vcmp.ge.f32.partialorder %v4687_v4, 0.0  ;;  %v4752_v47 = vmul.f32 0.01, %v4688_v28  ;;  %v4780_v31 = vsel %vm4716_vm6, %v4684_v42, %v4748_v56  ;;  %v4693_v15 = vmul.f32 %v7897_v37, %v8276_v16  ;;  %4811 = vst.msk [vmem:[%s7962_s9 + $0xa0] sm:$0xff] %vm2152_vm12, %v4779_v10 }
 0x84e   : > { %vm4720_vm10 = vcmp.ge.f32.partialorder %v4688_v28, 0.0  ;;  %v4753_v39 = vmul.f32 0.01, %v4689_v50  ;;  %v4781_v17 = vsel %vm4717_vm7, %v4685_v12, %v4749_v62  ;;  %v4694_v44 = vmul.f32 %v7897_v37, %v8277_v14  ;;  %4812 = vst.msk [vmem:[%s7962_s9 + $0xa8] sm:$0xff] %vm2152_vm12, %v4780_v31 }
 0x84f   : > { %vm4721_vm11 = vcmp.ge.f32.partialorder %v4689_v50, 0.0  ;;  %v4754_v24 = vmul.f32 0.01, %v4690_v5  ;;  %v4782_v33 = vsel %vm4718_vm8, %v4686_v59, %v4750_v43  ;;  %vm4722_vm13 = vcmp.ge.f32.partialorder %v4690_v5, 0.0  ;;  %4813 = vst.msk [vmem:[%s7962_s9 + $0xb0] sm:$0xff] %vm2152_vm12, %v4781_v17 }
 0x850   : > { %v4755_v23 = vmul.f32 0.01, %v4691_v21  ;;  %v4783_v18 = vsel %vm4719_vm9, %v4687_v4, %v4751_v61  ;;  %vm4723_vm14 = vcmp.ge.f32.partialorder %v4691_v21, 0.0  ;;  %v4756_v60 = vmul.f32 0.01, %v4692_v7  ;;  %4814 = vst.msk [vmem:[%s7962_s9 + $0xb8] sm:$0xff] %vm2152_vm12, %v4782_v33 }
 0x851   : > { %v4784_v25 = vsel %vm4720_vm10, %v4688_v28, %v4752_v47  ;;  %vm4724_vm15 = vcmp.ge.f32.partialorder %v4692_v7, 0.0  ;;  %v4757_v37 = vmul.f32 0.01, %v4693_v15  ;;  %v4785_v58 = vsel %vm4721_vm11, %v4689_v50, %v4753_v39  ;;  %4815 = vst.msk [vmem:[%s7962_s9 + $0xc0] sm:$0xff] %vm2152_vm12, %v4783_v18 }
 0x852   : > { %vm4725_vm0 = vcmp.ge.f32.partialorder %v4693_v15, 0.0  ;;  %v4758_v11 = vmul.f32 0.01, %v4694_v44  ;;  %v4786_v8 = vsel %vm4722_vm13, %v4690_v5, %v4754_v24  ;;  %vm4726_vm1 = vcmp.ge.f32.partialorder %v4694_v44, 0.0  ;;  %4816 = vst.msk [vmem:[%s7962_s9 + $0xc8] sm:$0xff] %vm2152_vm12, %v4784_v25 }
 0x853   : > { %v4787_v29 = vsel %vm4723_vm14, %v4691_v21, %v4755_v23  ;;  %v4788_v46 = vsel %vm4724_vm15, %v4692_v7, %v4756_v60  ;;  %4817 = vst.msk [vmem:[%s7962_s9 + $0xd0] sm:$0xff] %vm2152_vm12, %v4785_v58  ;;  %v4789_v45 = vsel %vm4725_vm0, %v4693_v15, %v4757_v37 }
 0x854   : > { %4818 = vst.msk [vmem:[%s7962_s9 + $0xd8] sm:$0xff] %vm2152_vm12, %v4786_v8  ;;  %v4790_v54 = vsel %vm4726_vm1, %v4694_v44, %v4758_v11 }
 0x855   : > { %4819 = vst.msk [vmem:[%s7962_s9 + $0xe0] sm:$0xff] %vm2152_vm12, %v4787_v29 }
 0x856   : > { %4820 = vst.msk [vmem:[%s7962_s9 + $0xe8] sm:$0xff] %vm2152_vm12, %v4788_v46 }
 0x857   : > { %4821 = vst.msk [vmem:[%s7962_s9 + $0xf0] sm:$0xff] %vm2152_vm12, %v4789_v45 }
 0x858   : > { %4822 = vst.msk [vmem:[%s7962_s9 + $0xf8] sm:$0xff] %vm2152_vm12, %v4790_v54 }
 0x859 PF: > { %s13_s12 = sadd.s32 1, %s5001_s12  }
 0x85a   : > { %p10_p4 = scmp.ge.s32.totalorder %s13_s12, 4  }
 0x85c   :  { %12 = sbr.rel (!%p10_p4) target bundleno = 1 (0x1), region = 66 }

</bundles_post_ra>
